<compile_context>
chip_gen: v7x
topology: tpu7x:2x2x1
jax: 0.10.0
libtpu: 0.0.40
codegen_flags: <defaults>
</compile_context>

<pallas_src>
import numpy as np
import jax
import jax.numpy as jnp
from jax import lax
from jax.experimental import pallas as pl
from jax.experimental.pallas import tpu as pltpu


# ----------------------------------------------------------------------------
# Fused kernel: whole Generator forward for ONE batch element.
# Per layer l the refs are: L (Kw, R_out, R_in), S (Kw, W_in, W_out),
# b (R_out, 1).  Activation layout: (C*H, W).
# ----------------------------------------------------------------------------
def _generator_kernel(x_ref, *refs):
    *layer_refs, out_ref = refs
    a = x_ref[...]                                    # (C0*H0, W0) float32
    n_layers = len(layer_refs) // 3
    for l in range(n_layers):
        l_ref = layer_refs[3 * l]
        s_ref = layer_refs[3 * l + 1]
        b_ref = layer_refs[3 * l + 2]
        kw = l_ref.shape[0]
        acc = None
        for j in range(kw):                           # static unroll, Kw <= 6
            t = jnp.dot(a, s_ref[j], preferred_element_type=jnp.float32)
            y = jnp.dot(l_ref[j], t, preferred_element_type=jnp.float32)
            acc = y if acc is None else acc + y
        acc = acc + b_ref[...]                        # folded BN shift
        if l < n_layers - 1:
            a = jnp.maximum(acc, 0.0)                 # ReLU
        else:
            a = jnp.tanh(acc)                         # final tanh
    out_ref[...] = a


# ----------------------------------------------------------------------------
# Host-side factorisation of (transposed) conv + folded BN into L_j / S_j / b.
# ----------------------------------------------------------------------------
def _sel(k, stride, pad, in_size, out_size, transposed):
    kk = np.arange(k)[:, None, None]
    oo = np.arange(out_size)[None, :, None]
    ii = np.arange(in_size)[None, None, :]
    if transposed:
        m = oo == stride * ii + kk - pad              # out = s*in + k - p
    else:
        m = ii == stride * oo + kk - pad              # in  = s*out + k - p
    return m.astype(np.float32)                       # (k, out, in)


def bn_fold(gamma, beta, mean, var, eps=1e-5):
    scale = gamma / jnp.sqrt(var + eps)
    shift = beta - mean * scale
    return scale, shift


def _layer_factors(w, scale, shift, stride, pad, h_in, w_in, transposed):
    if transposed:                                    # w: (Ci, Co, KH, KW)
        ci, co, kh, kw = w.shape
        oh = (h_in - 1) * stride - 2 * pad + kh
        ow = (w_in - 1) * stride - 2 * pad + kw
        sel_h = _sel(kh, stride, pad, h_in, oh, True)       # (KH, OH, Hin)
        L = jnp.einsum('cuij,ioh->juoch', w, sel_h,
                       precision=lax.Precision.HIGHEST)
    else:                                             # w: (Co, Ci, KH, KW)
        co, ci, kh, kw = w.shape
        oh = (h_in + 2 * pad - kh) // stride + 1
        ow = (w_in + 2 * pad - kw) // stride + 1
        sel_h = _sel(kh, stride, pad, h_in, oh, False)
        L = jnp.einsum('ucij,ioh->juoch', w, sel_h,
                       precision=lax.Precision.HIGHEST)
    L = L * scale[None, :, None, None, None]          # fold BN scale into rows
    L = L.reshape(kw, co * oh, ci * h_in)             # (KW, Co*OH, Ci*Hin)
    sel_w = _sel(kw, stride, pad, w_in, ow, transposed)     # (KW, OW, Win)
    S = jnp.asarray(np.transpose(sel_w, (0, 2, 1)))         # (KW, Win, OW)
    b = jnp.repeat(shift, oh)[:, None]                      # (Co*OH, 1)
    return L, S, b, co, oh, ow


# ----------------------------------------------------------------------------
# Generator forward (only the layers used in the PyTorch forward()).
# ----------------------------------------------------------------------------
_LAYERS = (
    ("conv1",  "norm1", 1, 1, False),
    ("conv2",  "norm2", 2, 2, False),
    ("conv3",  "norm3", 2, 2, False),
    ("convt1", "norm4", 2, 2, True),
    ("convt2", "norm5", 2, 2, True),
    ("convt3", None,    1, 0, True),
)


def generator_forward(x_nchw, params):
    n, c, h, w = x_nchw.shape
    # Dropout(p=0.12) is identity in eval mode; BatchNorm uses running stats.
    # TODO(synk): training-mode dropout / batch-stat BN not reproduced.
    flat_inputs = [x_nchw.reshape(n, c * h, w)]       # (C*H, W) == flat NCHW
    in_specs = [pl.BlockSpec((None, c * h, w), lambda i: (i, 0, 0))]

    cur_c, cur_h, cur_w = c, h, w
    for wname, bn_name, stride, pad, transposed in _LAYERS:
        wgt = params[wname]
        cout = wgt.shape[1] if transposed else wgt.shape[0]
        if bn_name is None:
            scale = jnp.ones((cout,), jnp.float32)
            shift = jnp.zeros((cout,), jnp.float32)
        else:
            scale, shift = bn_fold(*params[bn_name])
        L, S, b, cur_c, cur_h, cur_w = _layer_factors(
            wgt, scale, shift, stride, pad, cur_h, cur_w, transposed)
        flat_inputs += [L, S, b]
        in_specs += [pl.BlockSpec(L.shape, lambda i: (0, 0, 0)),
                     pl.BlockSpec(S.shape, lambda i: (0, 0, 0)),
                     pl.BlockSpec(b.shape, lambda i: (0, 0))]

    r_out = cur_c * cur_h
    out = pl.pallas_call(
        _generator_kernel,
        out_shape=jax.ShapeDtypeStruct((n, r_out, cur_w), jnp.float32),
        grid=(n,),
        in_specs=in_specs,
        out_specs=pl.BlockSpec((None, r_out, cur_w), lambda i: (i, 0, 0)),
        compiler_params=pltpu.CompilerParams(
            dimension_semantics=("parallel",)),      # 2 TCs on v7x; loop on v5e/v6e
    )(*flat_inputs)
    return out.reshape(n, cur_c, cur_h, cur_w)        # (C*H, W) -> NCHW for free


# ----------------------------------------------------------------------------
# Deterministic parameter init (shapes from the module's __init__).
# Layers c1..c5, cnorm1/2, norm6 exist in __init__ but are unused in forward().
# ----------------------------------------------------------------------------
def init_params(key):
    ks = jax.random.split(key, 12)

    def w_uniform(k, shape):
        fan_in = shape[1] * shape[2] * shape[3]
        bound = 1.0 / float(np.sqrt(fan_in))
        return jax.random.uniform(k, shape, jnp.float32, -bound, bound)

    def bn_p(k, c):
        k1, k2, k3, k4 = jax.random.split(k, 4)
        gamma = 1.0 + 0.1 * jax.random.normal(k1, (c,), jnp.float32)
        beta = 0.1 * jax.random.normal(k2, (c,), jnp.float32)
        mean = 0.1 * jax.random.normal(k3, (c,), jnp.float32)
        var = jax.random.uniform(k4, (c,), jnp.float32, 0.5, 1.5)
        return (gamma, beta, mean, var)

    return {
        "conv1": w_uniform(ks[0], (8, 3, 3, 3)),      # Conv2d(3, 8, 3, 1, 1)
        "conv2": w_uniform(ks[1], (16, 8, 5, 5)),     # Conv2d(8, 16, 5, 2, 2)
        "conv3": w_uniform(ks[2], (32, 16, 6, 6)),    # Conv2d(16, 32, 6, 2, 2)
        "convt1": w_uniform(ks[3], (32, 16, 6, 6)),   # ConvT(32, 16, 6, 2, 2)
        "convt2": w_uniform(ks[4], (16, 8, 4, 4)),    # ConvT(16, 8, 4, 2, 2)
        "convt3": w_uniform(ks[5], (8, 3, 3, 3)),     # ConvT(8, 3, 3, 1, 0)
        "norm1": bn_p(ks[6], 8),
        "norm2": bn_p(ks[7], 16),
        "norm3": bn_p(ks[8], 32),
        "norm4": bn_p(ks[9], 16),
        "norm5": bn_p(ks[10], 8),
    }


# ----------------------------------------------------------------------------
# Pure-JAX (XLA conv) reference for the correctness check.
# ----------------------------------------------------------------------------
def ref_forward(x, params):
    dn = ("NCHW", "OIHW", "NCHW")

    def conv(x, w, s, p):
        return lax.conv_general_dilated(
            x, w, (s, s), [(p, p), (p, p)], dimension_numbers=dn,
            precision=lax.Precision.HIGHEST)

    def convt(x, w, s, p):
        KH = w.shape[2]
        w_c = jnp.transpose(w[:, :, ::-1, ::-1], (1, 0, 2, 3))
        pe = KH - 1 - p
        return lax.conv_general_dilated(
            x, w_c, (1, 1), [(pe, pe), (pe, pe)], lhs_dilation=(s, s),
            dimension_numbers=dn, precision=lax.Precision.HIGHEST)

    def bn(x, g, b, m, v):
        s, sh = bn_fold(g, b, m, v)
        return x * s[None, :, None, None] + sh[None, :, None, None]

    x = jax.nn.relu(bn(conv(x, params["conv1"], 1, 1), *params["norm1"]))
    x = jax.nn.relu(bn(conv(x, params["conv2"], 2, 2), *params["norm2"]))
    x = jax.nn.relu(bn(conv(x, params["conv3"], 2, 2), *params["norm3"]))
    x = jax.nn.relu(bn(convt(x, params["convt1"], 2, 2), *params["norm4"]))
    x = jax.nn.relu(bn(convt(x, params["convt2"], 2, 2), *params["norm5"]))
    x = jnp.tanh(convt(x, params["convt3"], 1, 0))
    return x


if __name__ == "__main__":
    key = jax.random.PRNGKey(0)
    params = init_params(key)
    x = jax.random.normal(jax.random.fold_in(key, 100), (2, 3, 16, 16), jnp.float32)

    out = jax.jit(generator_forward)(x, params)
    out = jax.block_until_ready(out)
    assert out.shape == (2, 3, 16, 16), out.shape

    ref = jax.block_until_ready(ref_forward(x, params))
    np.testing.assert_allclose(np.asarray(out), np.asarray(ref), rtol=2e-2, atol=2e-2)

    print("KERNEL_OK")
</pallas_src>

<mosaic_0001>
module attributes {stable_mosaic.version = 11 : i64} {
  func.func @_generator_kernel(%arg0: i32, %arg1: memref<1x48x16xf32, #tpu.memory_space<vmem>>, %arg2: memref<3x128x48xf32, #tpu.memory_space<vmem>>, %arg3: memref<3x16x16xf32, #tpu.memory_space<vmem>>, %arg4: memref<128x1xf32, #tpu.memory_space<vmem>>, %arg5: memref<5x128x128xf32, #tpu.memory_space<vmem>>, %arg6: memref<5x16x8xf32, #tpu.memory_space<vmem>>, %arg7: memref<128x1xf32, #tpu.memory_space<vmem>>, %arg8: memref<6x128x128xf32, #tpu.memory_space<vmem>>, %arg9: memref<6x8x4xf32, #tpu.memory_space<vmem>>, %arg10: memref<128x1xf32, #tpu.memory_space<vmem>>, %arg11: memref<6x128x128xf32, #tpu.memory_space<vmem>>, %arg12: memref<6x4x8xf32, #tpu.memory_space<vmem>>, %arg13: memref<128x1xf32, #tpu.memory_space<vmem>>, %arg14: memref<4x112x128xf32, #tpu.memory_space<vmem>>, %arg15: memref<4x8x14xf32, #tpu.memory_space<vmem>>, %arg16: memref<112x1xf32, #tpu.memory_space<vmem>>, %arg17: memref<3x48x112xf32, #tpu.memory_space<vmem>>, %arg18: memref<3x14x16xf32, #tpu.memory_space<vmem>>, %arg19: memref<48x1xf32, #tpu.memory_space<vmem>>, %arg20: memref<1x48x16xf32, #tpu.memory_space<vmem>>) attributes {dimension_semantics = [#tpu.dimension_semantics<parallel>], iteration_bounds = array<i64: 2>, scalar_prefetch = 0 : i64, scratch_operands = 0 : i64, tpu.core_type = #tpu.core_type<tc>, window_params = [{transform_indices = @transform_0, window_bounds = array<i64: 1, 48, 16>}, {pipeline_mode = #tpu.pipeline_mode<synchronous>, transform_indices = @transform_1, window_bounds = array<i64: 3, 128, 48>}, {pipeline_mode = #tpu.pipeline_mode<synchronous>, transform_indices = @transform_2, window_bounds = array<i64: 3, 16, 16>}, {pipeline_mode = #tpu.pipeline_mode<synchronous>, transform_indices = @transform_3, window_bounds = array<i64: 128, 1>}, {pipeline_mode = #tpu.pipeline_mode<synchronous>, transform_indices = @transform_4, window_bounds = array<i64: 5, 128, 128>}, {pipeline_mode = #tpu.pipeline_mode<synchronous>, transform_indices = @transform_5, window_bounds = array<i64: 5, 16, 8>}, {pipeline_mode = #tpu.pipeline_mode<synchronous>, transform_indices = @transform_6, window_bounds = array<i64: 128, 1>}, {pipeline_mode = #tpu.pipeline_mode<synchronous>, transform_indices = @transform_7, window_bounds = array<i64: 6, 128, 128>}, {pipeline_mode = #tpu.pipeline_mode<synchronous>, transform_indices = @transform_8, window_bounds = array<i64: 6, 8, 4>}, {pipeline_mode = #tpu.pipeline_mode<synchronous>, transform_indices = @transform_9, window_bounds = array<i64: 128, 1>}, {pipeline_mode = #tpu.pipeline_mode<synchronous>, transform_indices = @transform_10, window_bounds = array<i64: 6, 128, 128>}, {pipeline_mode = #tpu.pipeline_mode<synchronous>, transform_indices = @transform_11, window_bounds = array<i64: 6, 4, 8>}, {pipeline_mode = #tpu.pipeline_mode<synchronous>, transform_indices = @transform_12, window_bounds = array<i64: 128, 1>}, {pipeline_mode = #tpu.pipeline_mode<synchronous>, transform_indices = @transform_13, window_bounds = array<i64: 4, 112, 128>}, {pipeline_mode = #tpu.pipeline_mode<synchronous>, transform_indices = @transform_14, window_bounds = array<i64: 4, 8, 14>}, {pipeline_mode = #tpu.pipeline_mode<synchronous>, transform_indices = @transform_15, window_bounds = array<i64: 112, 1>}, {pipeline_mode = #tpu.pipeline_mode<synchronous>, transform_indices = @transform_16, window_bounds = array<i64: 3, 48, 112>}, {pipeline_mode = #tpu.pipeline_mode<synchronous>, transform_indices = @transform_17, window_bounds = array<i64: 3, 14, 16>}, {pipeline_mode = #tpu.pipeline_mode<synchronous>, transform_indices = @transform_18, window_bounds = array<i64: 48, 1>}, {transform_indices = @transform_19, window_bounds = array<i64: 1, 48, 16>}]} {
    %c0 = arith.constant 0 : index
    %c0_0 = arith.constant 0 : index
    %c0_1 = arith.constant 0 : index
    %0 = vector.load %arg1[%c0, %c0_0, %c0_1] : memref<1x48x16xf32, #tpu.memory_space<vmem>>, vector<1x48x16xf32>
    %1 = vector.shape_cast %0 : vector<1x48x16xf32> to vector<48x16xf32>
    %c0_2 = arith.constant 0 : index
    %c0_3 = arith.constant 0 : index
    %c0_4 = arith.constant 0 : index
    %2 = vector.load %arg3[%c0_2, %c0_3, %c0_4] : memref<3x16x16xf32, #tpu.memory_space<vmem>>, vector<1x16x16xf32>
    %3 = vector.shape_cast %2 : vector<1x16x16xf32> to vector<16x16xf32>
    %cst = arith.constant dense<0.000000e+00> : vector<48x16xf32>
    %4 = tpu.matmul %1, %3, %cst {dimension_numbers = #tpu.dot_dimension_numbers<[1], [0], [0], [1], [0, 0, 1, 1], [], []>} : vector<48x16xf32>, vector<16x16xf32>, vector<48x16xf32> -> vector<48x16xf32>
    %c0_5 = arith.constant 0 : index
    %c0_6 = arith.constant 0 : index
    %c0_7 = arith.constant 0 : index
    %5 = vector.load %arg2[%c0_5, %c0_6, %c0_7] : memref<3x128x48xf32, #tpu.memory_space<vmem>>, vector<1x128x48xf32>
    %6 = vector.shape_cast %5 : vector<1x128x48xf32> to vector<128x48xf32>
    %cst_8 = arith.constant dense<0.000000e+00> : vector<128x16xf32>
    %7 = tpu.matmul %6, %4, %cst_8 {dimension_numbers = #tpu.dot_dimension_numbers<[1], [0], [0], [1], [0, 0, 1, 1], [], []>} : vector<128x48xf32>, vector<48x16xf32>, vector<128x16xf32> -> vector<128x16xf32>
    %c1 = arith.constant 1 : index
    %c0_9 = arith.constant 0 : index
    %c0_10 = arith.constant 0 : index
    %8 = vector.load %arg3[%c1, %c0_9, %c0_10] : memref<3x16x16xf32, #tpu.memory_space<vmem>>, vector<1x16x16xf32>
    %9 = vector.shape_cast %8 : vector<1x16x16xf32> to vector<16x16xf32>
    %cst_11 = arith.constant dense<0.000000e+00> : vector<48x16xf32>
    %10 = tpu.matmul %1, %9, %cst_11 {dimension_numbers = #tpu.dot_dimension_numbers<[1], [0], [0], [1], [0, 0, 1, 1], [], []>} : vector<48x16xf32>, vector<16x16xf32>, vector<48x16xf32> -> vector<48x16xf32>
    %c1_12 = arith.constant 1 : index
    %c0_13 = arith.constant 0 : index
    %c0_14 = arith.constant 0 : index
    %11 = vector.load %arg2[%c1_12, %c0_13, %c0_14] : memref<3x128x48xf32, #tpu.memory_space<vmem>>, vector<1x128x48xf32>
    %12 = vector.shape_cast %11 : vector<1x128x48xf32> to vector<128x48xf32>
    %cst_15 = arith.constant dense<0.000000e+00> : vector<128x16xf32>
    %13 = tpu.matmul %12, %10, %cst_15 {dimension_numbers = #tpu.dot_dimension_numbers<[1], [0], [0], [1], [0, 0, 1, 1], [], []>} : vector<128x48xf32>, vector<48x16xf32>, vector<128x16xf32> -> vector<128x16xf32>
    %14 = arith.addf %7, %13 : vector<128x16xf32>
    %c2 = arith.constant 2 : index
    %c0_16 = arith.constant 0 : index
    %c0_17 = arith.constant 0 : index
    %15 = vector.load %arg3[%c2, %c0_16, %c0_17] : memref<3x16x16xf32, #tpu.memory_space<vmem>>, vector<1x16x16xf32>
    %16 = vector.shape_cast %15 : vector<1x16x16xf32> to vector<16x16xf32>
    %cst_18 = arith.constant dense<0.000000e+00> : vector<48x16xf32>
    %17 = tpu.matmul %1, %16, %cst_18 {dimension_numbers = #tpu.dot_dimension_numbers<[1], [0], [0], [1], [0, 0, 1, 1], [], []>} : vector<48x16xf32>, vector<16x16xf32>, vector<48x16xf32> -> vector<48x16xf32>
    %c2_19 = arith.constant 2 : index
    %c0_20 = arith.constant 0 : index
    %c0_21 = arith.constant 0 : index
    %18 = vector.load %arg2[%c2_19, %c0_20, %c0_21] : memref<3x128x48xf32, #tpu.memory_space<vmem>>, vector<1x128x48xf32>
    %19 = vector.shape_cast %18 : vector<1x128x48xf32> to vector<128x48xf32>
    %cst_22 = arith.constant dense<0.000000e+00> : vector<128x16xf32>
    %20 = tpu.matmul %19, %17, %cst_22 {dimension_numbers = #tpu.dot_dimension_numbers<[1], [0], [0], [1], [0, 0, 1, 1], [], []>} : vector<128x48xf32>, vector<48x16xf32>, vector<128x16xf32> -> vector<128x16xf32>
    %21 = arith.addf %14, %20 : vector<128x16xf32>
    %c0_23 = arith.constant 0 : index
    %c0_24 = arith.constant 0 : index
    %22 = vector.load %arg4[%c0_23, %c0_24] : memref<128x1xf32, #tpu.memory_space<vmem>>, vector<128x1xf32>
    %23 = vector.broadcast %22 : vector<128x1xf32> to vector<128x16xf32>
    %24 = arith.addf %21, %23 : vector<128x16xf32>
    %cst_25 = arith.constant 0.000000e+00 : f32
    %25 = vector.broadcast %cst_25 : f32 to vector<128x16xf32>
    %26 = arith.maximumf %24, %25 : vector<128x16xf32>
    %c0_26 = arith.constant 0 : index
    %c0_27 = arith.constant 0 : index
    %c0_28 = arith.constant 0 : index
    %27 = vector.load %arg6[%c0_26, %c0_27, %c0_28] : memref<5x16x8xf32, #tpu.memory_space<vmem>>, vector<1x16x8xf32>
    %28 = vector.shape_cast %27 : vector<1x16x8xf32> to vector<16x8xf32>
    %cst_29 = arith.constant dense<0.000000e+00> : vector<128x8xf32>
    %29 = tpu.matmul %26, %28, %cst_29 {dimension_numbers = #tpu.dot_dimension_numbers<[1], [0], [0], [1], [0, 0, 1, 1], [], []>} : vector<128x16xf32>, vector<16x8xf32>, vector<128x8xf32> -> vector<128x8xf32>
    %c0_30 = arith.constant 0 : index
    %c0_31 = arith.constant 0 : index
    %c0_32 = arith.constant 0 : index
    %30 = vector.load %arg5[%c0_30, %c0_31, %c0_32] : memref<5x128x128xf32, #tpu.memory_space<vmem>>, vector<1x128x128xf32>
    %31 = vector.shape_cast %30 : vector<1x128x128xf32> to vector<128x128xf32>
    %cst_33 = arith.constant dense<0.000000e+00> : vector<128x8xf32>
    %32 = tpu.matmul %31, %29, %cst_33 {dimension_numbers = #tpu.dot_dimension_numbers<[1], [0], [0], [1], [0, 0, 1, 1], [], []>} : vector<128x128xf32>, vector<128x8xf32>, vector<128x8xf32> -> vector<128x8xf32>
    %c1_34 = arith.constant 1 : index
    %c0_35 = arith.constant 0 : index
    %c0_36 = arith.constant 0 : index
    %33 = vector.load %arg6[%c1_34, %c0_35, %c0_36] : memref<5x16x8xf32, #tpu.memory_space<vmem>>, vector<1x16x8xf32>
    %34 = vector.shape_cast %33 : vector<1x16x8xf32> to vector<16x8xf32>
    %cst_37 = arith.constant dense<0.000000e+00> : vector<128x8xf32>
    %35 = tpu.matmul %26, %34, %cst_37 {dimension_numbers = #tpu.dot_dimension_numbers<[1], [0], [0], [1], [0, 0, 1, 1], [], []>} : vector<128x16xf32>, vector<16x8xf32>, vector<128x8xf32> -> vector<128x8xf32>
    %c1_38 = arith.constant 1 : index
    %c0_39 = arith.constant 0 : index
    %c0_40 = arith.constant 0 : index
    %36 = vector.load %arg5[%c1_38, %c0_39, %c0_40] : memref<5x128x128xf32, #tpu.memory_space<vmem>>, vector<1x128x128xf32>
    %37 = vector.shape_cast %36 : vector<1x128x128xf32> to vector<128x128xf32>
    %cst_41 = arith.constant dense<0.000000e+00> : vector<128x8xf32>
    %38 = tpu.matmul %37, %35, %cst_41 {dimension_numbers = #tpu.dot_dimension_numbers<[1], [0], [0], [1], [0, 0, 1, 1], [], []>} : vector<128x128xf32>, vector<128x8xf32>, vector<128x8xf32> -> vector<128x8xf32>
    %39 = arith.addf %32, %38 : vector<128x8xf32>
    %c2_42 = arith.constant 2 : index
    %c0_43 = arith.constant 0 : index
    %c0_44 = arith.constant 0 : index
    %40 = vector.load %arg6[%c2_42, %c0_43, %c0_44] : memref<5x16x8xf32, #tpu.memory_space<vmem>>, vector<1x16x8xf32>
    %41 = vector.shape_cast %40 : vector<1x16x8xf32> to vector<16x8xf32>
    %cst_45 = arith.constant dense<0.000000e+00> : vector<128x8xf32>
    %42 = tpu.matmul %26, %41, %cst_45 {dimension_numbers = #tpu.dot_dimension_numbers<[1], [0], [0], [1], [0, 0, 1, 1], [], []>} : vector<128x16xf32>, vector<16x8xf32>, vector<128x8xf32> -> vector<128x8xf32>
    %c2_46 = arith.constant 2 : index
    %c0_47 = arith.constant 0 : index
    %c0_48 = arith.constant 0 : index
    %43 = vector.load %arg5[%c2_46, %c0_47, %c0_48] : memref<5x128x128xf32, #tpu.memory_space<vmem>>, vector<1x128x128xf32>
    %44 = vector.shape_cast %43 : vector<1x128x128xf32> to vector<128x128xf32>
    %cst_49 = arith.constant dense<0.000000e+00> : vector<128x8xf32>
    %45 = tpu.matmul %44, %42, %cst_49 {dimension_numbers = #tpu.dot_dimension_numbers<[1], [0], [0], [1], [0, 0, 1, 1], [], []>} : vector<128x128xf32>, vector<128x8xf32>, vector<128x8xf32> -> vector<128x8xf32>
    %46 = arith.addf %39, %45 : vector<128x8xf32>
    %c3 = arith.constant 3 : index
    %c0_50 = arith.constant 0 : index
    %c0_51 = arith.constant 0 : index
    %47 = vector.load %arg6[%c3, %c0_50, %c0_51] : memref<5x16x8xf32, #tpu.memory_space<vmem>>, vector<1x16x8xf32>
    %48 = vector.shape_cast %47 : vector<1x16x8xf32> to vector<16x8xf32>
    %cst_52 = arith.constant dense<0.000000e+00> : vector<128x8xf32>
    %49 = tpu.matmul %26, %48, %cst_52 {dimension_numbers = #tpu.dot_dimension_numbers<[1], [0], [0], [1], [0, 0, 1, 1], [], []>} : vector<128x16xf32>, vector<16x8xf32>, vector<128x8xf32> -> vector<128x8xf32>
    %c3_53 = arith.constant 3 : index
    %c0_54 = arith.constant 0 : index
    %c0_55 = arith.constant 0 : index
    %50 = vector.load %arg5[%c3_53, %c0_54, %c0_55] : memref<5x128x128xf32, #tpu.memory_space<vmem>>, vector<1x128x128xf32>
    %51 = vector.shape_cast %50 : vector<1x128x128xf32> to vector<128x128xf32>
    %cst_56 = arith.constant dense<0.000000e+00> : vector<128x8xf32>
    %52 = tpu.matmul %51, %49, %cst_56 {dimension_numbers = #tpu.dot_dimension_numbers<[1], [0], [0], [1], [0, 0, 1, 1], [], []>} : vector<128x128xf32>, vector<128x8xf32>, vector<128x8xf32> -> vector<128x8xf32>
    %53 = arith.addf %46, %52 : vector<128x8xf32>
    %c4 = arith.constant 4 : index
    %c0_57 = arith.constant 0 : index
    %c0_58 = arith.constant 0 : index
    %54 = vector.load %arg6[%c4, %c0_57, %c0_58] : memref<5x16x8xf32, #tpu.memory_space<vmem>>, vector<1x16x8xf32>
    %55 = vector.shape_cast %54 : vector<1x16x8xf32> to vector<16x8xf32>
    %cst_59 = arith.constant dense<0.000000e+00> : vector<128x8xf32>
    %56 = tpu.matmul %26, %55, %cst_59 {dimension_numbers = #tpu.dot_dimension_numbers<[1], [0], [0], [1], [0, 0, 1, 1], [], []>} : vector<128x16xf32>, vector<16x8xf32>, vector<128x8xf32> -> vector<128x8xf32>
    %c4_60 = arith.constant 4 : index
    %c0_61 = arith.constant 0 : index
    %c0_62 = arith.constant 0 : index
    %57 = vector.load %arg5[%c4_60, %c0_61, %c0_62] : memref<5x128x128xf32, #tpu.memory_space<vmem>>, vector<1x128x128xf32>
    %58 = vector.shape_cast %57 : vector<1x128x128xf32> to vector<128x128xf32>
    %cst_63 = arith.constant dense<0.000000e+00> : vector<128x8xf32>
    %59 = tpu.matmul %58, %56, %cst_63 {dimension_numbers = #tpu.dot_dimension_numbers<[1], [0], [0], [1], [0, 0, 1, 1], [], []>} : vector<128x128xf32>, vector<128x8xf32>, vector<128x8xf32> -> vector<128x8xf32>
    %60 = arith.addf %53, %59 : vector<128x8xf32>
    %c0_64 = arith.constant 0 : index
    %c0_65 = arith.constant 0 : index
    %61 = vector.load %arg7[%c0_64, %c0_65] : memref<128x1xf32, #tpu.memory_space<vmem>>, vector<128x1xf32>
    %62 = vector.broadcast %61 : vector<128x1xf32> to vector<128x8xf32>
    %63 = arith.addf %60, %62 : vector<128x8xf32>
    %cst_66 = arith.constant 0.000000e+00 : f32
    %64 = vector.broadcast %cst_66 : f32 to vector<128x8xf32>
    %65 = arith.maximumf %63, %64 : vector<128x8xf32>
    %c0_67 = arith.constant 0 : index
    %c0_68 = arith.constant 0 : index
    %c0_69 = arith.constant 0 : index
    %66 = vector.load %arg9[%c0_67, %c0_68, %c0_69] : memref<6x8x4xf32, #tpu.memory_space<vmem>>, vector<1x8x4xf32>
    %67 = vector.shape_cast %66 : vector<1x8x4xf32> to vector<8x4xf32>
    %cst_70 = arith.constant dense<0.000000e+00> : vector<128x4xf32>
    %68 = tpu.matmul %65, %67, %cst_70 {dimension_numbers = #tpu.dot_dimension_numbers<[1], [0], [0], [1], [0, 0, 1, 1], [], []>} : vector<128x8xf32>, vector<8x4xf32>, vector<128x4xf32> -> vector<128x4xf32>
    %c0_71 = arith.constant 0 : index
    %c0_72 = arith.constant 0 : index
    %c0_73 = arith.constant 0 : index
    %69 = vector.load %arg8[%c0_71, %c0_72, %c0_73] : memref<6x128x128xf32, #tpu.memory_space<vmem>>, vector<1x128x128xf32>
    %70 = vector.shape_cast %69 : vector<1x128x128xf32> to vector<128x128xf32>
    %cst_74 = arith.constant dense<0.000000e+00> : vector<128x4xf32>
    %71 = tpu.matmul %70, %68, %cst_74 {dimension_numbers = #tpu.dot_dimension_numbers<[1], [0], [0], [1], [0, 0, 1, 1], [], []>} : vector<128x128xf32>, vector<128x4xf32>, vector<128x4xf32> -> vector<128x4xf32>
    %c1_75 = arith.constant 1 : index
    %c0_76 = arith.constant 0 : index
    %c0_77 = arith.constant 0 : index
    %72 = vector.load %arg9[%c1_75, %c0_76, %c0_77] : memref<6x8x4xf32, #tpu.memory_space<vmem>>, vector<1x8x4xf32>
    %73 = vector.shape_cast %72 : vector<1x8x4xf32> to vector<8x4xf32>
    %cst_78 = arith.constant dense<0.000000e+00> : vector<128x4xf32>
    %74 = tpu.matmul %65, %73, %cst_78 {dimension_numbers = #tpu.dot_dimension_numbers<[1], [0], [0], [1], [0, 0, 1, 1], [], []>} : vector<128x8xf32>, vector<8x4xf32>, vector<128x4xf32> -> vector<128x4xf32>
    %c1_79 = arith.constant 1 : index
    %c0_80 = arith.constant 0 : index
    %c0_81 = arith.constant 0 : index
    %75 = vector.load %arg8[%c1_79, %c0_80, %c0_81] : memref<6x128x128xf32, #tpu.memory_space<vmem>>, vector<1x128x128xf32>
    %76 = vector.shape_cast %75 : vector<1x128x128xf32> to vector<128x128xf32>
    %cst_82 = arith.constant dense<0.000000e+00> : vector<128x4xf32>
    %77 = tpu.matmul %76, %74, %cst_82 {dimension_numbers = #tpu.dot_dimension_numbers<[1], [0], [0], [1], [0, 0, 1, 1], [], []>} : vector<128x128xf32>, vector<128x4xf32>, vector<128x4xf32> -> vector<128x4xf32>
    %78 = arith.addf %71, %77 : vector<128x4xf32>
    %c2_83 = arith.constant 2 : index
    %c0_84 = arith.constant 0 : index
    %c0_85 = arith.constant 0 : index
    %79 = vector.load %arg9[%c2_83, %c0_84, %c0_85] : memref<6x8x4xf32, #tpu.memory_space<vmem>>, vector<1x8x4xf32>
    %80 = vector.shape_cast %79 : vector<1x8x4xf32> to vector<8x4xf32>
    %cst_86 = arith.constant dense<0.000000e+00> : vector<128x4xf32>
    %81 = tpu.matmul %65, %80, %cst_86 {dimension_numbers = #tpu.dot_dimension_numbers<[1], [0], [0], [1], [0, 0, 1, 1], [], []>} : vector<128x8xf32>, vector<8x4xf32>, vector<128x4xf32> -> vector<128x4xf32>
    %c2_87 = arith.constant 2 : index
    %c0_88 = arith.constant 0 : index
    %c0_89 = arith.constant 0 : index
    %82 = vector.load %arg8[%c2_87, %c0_88, %c0_89] : memref<6x128x128xf32, #tpu.memory_space<vmem>>, vector<1x128x128xf32>
    %83 = vector.shape_cast %82 : vector<1x128x128xf32> to vector<128x128xf32>
    %cst_90 = arith.constant dense<0.000000e+00> : vector<128x4xf32>
    %84 = tpu.matmul %83, %81, %cst_90 {dimension_numbers = #tpu.dot_dimension_numbers<[1], [0], [0], [1], [0, 0, 1, 1], [], []>} : vector<128x128xf32>, vector<128x4xf32>, vector<128x4xf32> -> vector<128x4xf32>
    %85 = arith.addf %78, %84 : vector<128x4xf32>
    %c3_91 = arith.constant 3 : index
    %c0_92 = arith.constant 0 : index
    %c0_93 = arith.constant 0 : index
    %86 = vector.load %arg9[%c3_91, %c0_92, %c0_93] : memref<6x8x4xf32, #tpu.memory_space<vmem>>, vector<1x8x4xf32>
    %87 = vector.shape_cast %86 : vector<1x8x4xf32> to vector<8x4xf32>
    %cst_94 = arith.constant dense<0.000000e+00> : vector<128x4xf32>
    %88 = tpu.matmul %65, %87, %cst_94 {dimension_numbers = #tpu.dot_dimension_numbers<[1], [0], [0], [1], [0, 0, 1, 1], [], []>} : vector<128x8xf32>, vector<8x4xf32>, vector<128x4xf32> -> vector<128x4xf32>
    %c3_95 = arith.constant 3 : index
    %c0_96 = arith.constant 0 : index
    %c0_97 = arith.constant 0 : index
    %89 = vector.load %arg8[%c3_95, %c0_96, %c0_97] : memref<6x128x128xf32, #tpu.memory_space<vmem>>, vector<1x128x128xf32>
    %90 = vector.shape_cast %89 : vector<1x128x128xf32> to vector<128x128xf32>
    %cst_98 = arith.constant dense<0.000000e+00> : vector<128x4xf32>
    %91 = tpu.matmul %90, %88, %cst_98 {dimension_numbers = #tpu.dot_dimension_numbers<[1], [0], [0], [1], [0, 0, 1, 1], [], []>} : vector<128x128xf32>, vector<128x4xf32>, vector<128x4xf32> -> vector<128x4xf32>
    %92 = arith.addf %85, %91 : vector<128x4xf32>
    %c4_99 = arith.constant 4 : index
    %c0_100 = arith.constant 0 : index
    %c0_101 = arith.constant 0 : index
    %93 = vector.load %arg9[%c4_99, %c0_100, %c0_101] : memref<6x8x4xf32, #tpu.memory_space<vmem>>, vector<1x8x4xf32>
    %94 = vector.shape_cast %93 : vector<1x8x4xf32> to vector<8x4xf32>
    %cst_102 = arith.constant dense<0.000000e+00> : vector<128x4xf32>
    %95 = tpu.matmul %65, %94, %cst_102 {dimension_numbers = #tpu.dot_dimension_numbers<[1], [0], [0], [1], [0, 0, 1, 1], [], []>} : vector<128x8xf32>, vector<8x4xf32>, vector<128x4xf32> -> vector<128x4xf32>
    %c4_103 = arith.constant 4 : index
    %c0_104 = arith.constant 0 : index
    %c0_105 = arith.constant 0 : index
    %96 = vector.load %arg8[%c4_103, %c0_104, %c0_105] : memref<6x128x128xf32, #tpu.memory_space<vmem>>, vector<1x128x128xf32>
    %97 = vector.shape_cast %96 : vector<1x128x128xf32> to vector<128x128xf32>
    %cst_106 = arith.constant dense<0.000000e+00> : vector<128x4xf32>
    %98 = tpu.matmul %97, %95, %cst_106 {dimension_numbers = #tpu.dot_dimension_numbers<[1], [0], [0], [1], [0, 0, 1, 1], [], []>} : vector<128x128xf32>, vector<128x4xf32>, vector<128x4xf32> -> vector<128x4xf32>
    %99 = arith.addf %92, %98 : vector<128x4xf32>
    %c5 = arith.constant 5 : index
    %c0_107 = arith.constant 0 : index
    %c0_108 = arith.constant 0 : index
    %100 = vector.load %arg9[%c5, %c0_107, %c0_108] : memref<6x8x4xf32, #tpu.memory_space<vmem>>, vector<1x8x4xf32>
    %101 = vector.shape_cast %100 : vector<1x8x4xf32> to vector<8x4xf32>
    %cst_109 = arith.constant dense<0.000000e+00> : vector<128x4xf32>
    %102 = tpu.matmul %65, %101, %cst_109 {dimension_numbers = #tpu.dot_dimension_numbers<[1], [0], [0], [1], [0, 0, 1, 1], [], []>} : vector<128x8xf32>, vector<8x4xf32>, vector<128x4xf32> -> vector<128x4xf32>
    %c5_110 = arith.constant 5 : index
    %c0_111 = arith.constant 0 : index
    %c0_112 = arith.constant 0 : index
    %103 = vector.load %arg8[%c5_110, %c0_111, %c0_112] : memref<6x128x128xf32, #tpu.memory_space<vmem>>, vector<1x128x128xf32>
    %104 = vector.shape_cast %103 : vector<1x128x128xf32> to vector<128x128xf32>
    %cst_113 = arith.constant dense<0.000000e+00> : vector<128x4xf32>
    %105 = tpu.matmul %104, %102, %cst_113 {dimension_numbers = #tpu.dot_dimension_numbers<[1], [0], [0], [1], [0, 0, 1, 1], [], []>} : vector<128x128xf32>, vector<128x4xf32>, vector<128x4xf32> -> vector<128x4xf32>
    %106 = arith.addf %99, %105 : vector<128x4xf32>
    %c0_114 = arith.constant 0 : index
    %c0_115 = arith.constant 0 : index
    %107 = vector.load %arg10[%c0_114, %c0_115] : memref<128x1xf32, #tpu.memory_space<vmem>>, vector<128x1xf32>
    %108 = vector.broadcast %107 : vector<128x1xf32> to vector<128x4xf32>
    %109 = arith.addf %106, %108 : vector<128x4xf32>
    %cst_116 = arith.constant 0.000000e+00 : f32
    %110 = vector.broadcast %cst_116 : f32 to vector<128x4xf32>
    %111 = arith.maximumf %109, %110 : vector<128x4xf32>
    %c0_117 = arith.constant 0 : index
    %c0_118 = arith.constant 0 : index
    %c0_119 = arith.constant 0 : index
    %112 = vector.load %arg12[%c0_117, %c0_118, %c0_119] : memref<6x4x8xf32, #tpu.memory_space<vmem>>, vector<1x4x8xf32>
    %113 = vector.shape_cast %112 : vector<1x4x8xf32> to vector<4x8xf32>
    %cst_120 = arith.constant dense<0.000000e+00> : vector<128x8xf32>
    %114 = tpu.matmul %111, %113, %cst_120 {dimension_numbers = #tpu.dot_dimension_numbers<[1], [0], [0], [1], [0, 0, 1, 1], [], []>} : vector<128x4xf32>, vector<4x8xf32>, vector<128x8xf32> -> vector<128x8xf32>
    %c0_121 = arith.constant 0 : index
    %c0_122 = arith.constant 0 : index
    %c0_123 = arith.constant 0 : index
    %115 = vector.load %arg11[%c0_121, %c0_122, %c0_123] : memref<6x128x128xf32, #tpu.memory_space<vmem>>, vector<1x128x128xf32>
    %116 = vector.shape_cast %115 : vector<1x128x128xf32> to vector<128x128xf32>
    %cst_124 = arith.constant dense<0.000000e+00> : vector<128x8xf32>
    %117 = tpu.matmul %116, %114, %cst_124 {dimension_numbers = #tpu.dot_dimension_numbers<[1], [0], [0], [1], [0, 0, 1, 1], [], []>} : vector<128x128xf32>, vector<128x8xf32>, vector<128x8xf32> -> vector<128x8xf32>
    %c1_125 = arith.constant 1 : index
    %c0_126 = arith.constant 0 : index
    %c0_127 = arith.constant 0 : index
    %118 = vector.load %arg12[%c1_125, %c0_126, %c0_127] : memref<6x4x8xf32, #tpu.memory_space<vmem>>, vector<1x4x8xf32>
    %119 = vector.shape_cast %118 : vector<1x4x8xf32> to vector<4x8xf32>
    %cst_128 = arith.constant dense<0.000000e+00> : vector<128x8xf32>
    %120 = tpu.matmul %111, %119, %cst_128 {dimension_numbers = #tpu.dot_dimension_numbers<[1], [0], [0], [1], [0, 0, 1, 1], [], []>} : vector<128x4xf32>, vector<4x8xf32>, vector<128x8xf32> -> vector<128x8xf32>
    %c1_129 = arith.constant 1 : index
    %c0_130 = arith.constant 0 : index
    %c0_131 = arith.constant 0 : index
    %121 = vector.load %arg11[%c1_129, %c0_130, %c0_131] : memref<6x128x128xf32, #tpu.memory_space<vmem>>, vector<1x128x128xf32>
    %122 = vector.shape_cast %121 : vector<1x128x128xf32> to vector<128x128xf32>
    %cst_132 = arith.constant dense<0.000000e+00> : vector<128x8xf32>
    %123 = tpu.matmul %122, %120, %cst_132 {dimension_numbers = #tpu.dot_dimension_numbers<[1], [0], [0], [1], [0, 0, 1, 1], [], []>} : vector<128x128xf32>, vector<128x8xf32>, vector<128x8xf32> -> vector<128x8xf32>
    %124 = arith.addf %117, %123 : vector<128x8xf32>
    %c2_133 = arith.constant 2 : index
    %c0_134 = arith.constant 0 : index
    %c0_135 = arith.constant 0 : index
    %125 = vector.load %arg12[%c2_133, %c0_134, %c0_135] : memref<6x4x8xf32, #tpu.memory_space<vmem>>, vector<1x4x8xf32>
    %126 = vector.shape_cast %125 : vector<1x4x8xf32> to vector<4x8xf32>
    %cst_136 = arith.constant dense<0.000000e+00> : vector<128x8xf32>
    %127 = tpu.matmul %111, %126, %cst_136 {dimension_numbers = #tpu.dot_dimension_numbers<[1], [0], [0], [1], [0, 0, 1, 1], [], []>} : vector<128x4xf32>, vector<4x8xf32>, vector<128x8xf32> -> vector<128x8xf32>
    %c2_137 = arith.constant 2 : index
    %c0_138 = arith.constant 0 : index
    %c0_139 = arith.constant 0 : index
    %128 = vector.load %arg11[%c2_137, %c0_138, %c0_139] : memref<6x128x128xf32, #tpu.memory_space<vmem>>, vector<1x128x128xf32>
    %129 = vector.shape_cast %128 : vector<1x128x128xf32> to vector<128x128xf32>
    %cst_140 = arith.constant dense<0.000000e+00> : vector<128x8xf32>
    %130 = tpu.matmul %129, %127, %cst_140 {dimension_numbers = #tpu.dot_dimension_numbers<[1], [0], [0], [1], [0, 0, 1, 1], [], []>} : vector<128x128xf32>, vector<128x8xf32>, vector<128x8xf32> -> vector<128x8xf32>
    %131 = arith.addf %124, %130 : vector<128x8xf32>
    %c3_141 = arith.constant 3 : index
    %c0_142 = arith.constant 0 : index
    %c0_143 = arith.constant 0 : index
    %132 = vector.load %arg12[%c3_141, %c0_142, %c0_143] : memref<6x4x8xf32, #tpu.memory_space<vmem>>, vector<1x4x8xf32>
    %133 = vector.shape_cast %132 : vector<1x4x8xf32> to vector<4x8xf32>
    %cst_144 = arith.constant dense<0.000000e+00> : vector<128x8xf32>
    %134 = tpu.matmul %111, %133, %cst_144 {dimension_numbers = #tpu.dot_dimension_numbers<[1], [0], [0], [1], [0, 0, 1, 1], [], []>} : vector<128x4xf32>, vector<4x8xf32>, vector<128x8xf32> -> vector<128x8xf32>
    %c3_145 = arith.constant 3 : index
    %c0_146 = arith.constant 0 : index
    %c0_147 = arith.constant 0 : index
    %135 = vector.load %arg11[%c3_145, %c0_146, %c0_147] : memref<6x128x128xf32, #tpu.memory_space<vmem>>, vector<1x128x128xf32>
    %136 = vector.shape_cast %135 : vector<1x128x128xf32> to vector<128x128xf32>
    %cst_148 = arith.constant dense<0.000000e+00> : vector<128x8xf32>
    %137 = tpu.matmul %136, %134, %cst_148 {dimension_numbers = #tpu.dot_dimension_numbers<[1], [0], [0], [1], [0, 0, 1, 1], [], []>} : vector<128x128xf32>, vector<128x8xf32>, vector<128x8xf32> -> vector<128x8xf32>
    %138 = arith.addf %131, %137 : vector<128x8xf32>
    %c4_149 = arith.constant 4 : index
    %c0_150 = arith.constant 0 : index
    %c0_151 = arith.constant 0 : index
    %139 = vector.load %arg12[%c4_149, %c0_150, %c0_151] : memref<6x4x8xf32, #tpu.memory_space<vmem>>, vector<1x4x8xf32>
    %140 = vector.shape_cast %139 : vector<1x4x8xf32> to vector<4x8xf32>
    %cst_152 = arith.constant dense<0.000000e+00> : vector<128x8xf32>
    %141 = tpu.matmul %111, %140, %cst_152 {dimension_numbers = #tpu.dot_dimension_numbers<[1], [0], [0], [1], [0, 0, 1, 1], [], []>} : vector<128x4xf32>, vector<4x8xf32>, vector<128x8xf32> -> vector<128x8xf32>
    %c4_153 = arith.constant 4 : index
    %c0_154 = arith.constant 0 : index
    %c0_155 = arith.constant 0 : index
    %142 = vector.load %arg11[%c4_153, %c0_154, %c0_155] : memref<6x128x128xf32, #tpu.memory_space<vmem>>, vector<1x128x128xf32>
    %143 = vector.shape_cast %142 : vector<1x128x128xf32> to vector<128x128xf32>
    %cst_156 = arith.constant dense<0.000000e+00> : vector<128x8xf32>
    %144 = tpu.matmul %143, %141, %cst_156 {dimension_numbers = #tpu.dot_dimension_numbers<[1], [0], [0], [1], [0, 0, 1, 1], [], []>} : vector<128x128xf32>, vector<128x8xf32>, vector<128x8xf32> -> vector<128x8xf32>
    %145 = arith.addf %138, %144 : vector<128x8xf32>
    %c5_157 = arith.constant 5 : index
    %c0_158 = arith.constant 0 : index
    %c0_159 = arith.constant 0 : index
    %146 = vector.load %arg12[%c5_157, %c0_158, %c0_159] : memref<6x4x8xf32, #tpu.memory_space<vmem>>, vector<1x4x8xf32>
    %147 = vector.shape_cast %146 : vector<1x4x8xf32> to vector<4x8xf32>
    %cst_160 = arith.constant dense<0.000000e+00> : vector<128x8xf32>
    %148 = tpu.matmul %111, %147, %cst_160 {dimension_numbers = #tpu.dot_dimension_numbers<[1], [0], [0], [1], [0, 0, 1, 1], [], []>} : vector<128x4xf32>, vector<4x8xf32>, vector<128x8xf32> -> vector<128x8xf32>
    %c5_161 = arith.constant 5 : index
    %c0_162 = arith.constant 0 : index
    %c0_163 = arith.constant 0 : index
    %149 = vector.load %arg11[%c5_161, %c0_162, %c0_163] : memref<6x128x128xf32, #tpu.memory_space<vmem>>, vector<1x128x128xf32>
    %150 = vector.shape_cast %149 : vector<1x128x128xf32> to vector<128x128xf32>
    %cst_164 = arith.constant dense<0.000000e+00> : vector<128x8xf32>
    %151 = tpu.matmul %150, %148, %cst_164 {dimension_numbers = #tpu.dot_dimension_numbers<[1], [0], [0], [1], [0, 0, 1, 1], [], []>} : vector<128x128xf32>, vector<128x8xf32>, vector<128x8xf32> -> vector<128x8xf32>
    %152 = arith.addf %145, %151 : vector<128x8xf32>
    %c0_165 = arith.constant 0 : index
    %c0_166 = arith.constant 0 : index
    %153 = vector.load %arg13[%c0_165, %c0_166] : memref<128x1xf32, #tpu.memory_space<vmem>>, vector<128x1xf32>
    %154 = vector.broadcast %153 : vector<128x1xf32> to vector<128x8xf32>
    %155 = arith.addf %152, %154 : vector<128x8xf32>
    %cst_167 = arith.constant 0.000000e+00 : f32
    %156 = vector.broadcast %cst_167 : f32 to vector<128x8xf32>
    %157 = arith.maximumf %155, %156 : vector<128x8xf32>
    %c0_168 = arith.constant 0 : index
    %c0_169 = arith.constant 0 : index
    %c0_170 = arith.constant 0 : index
    %158 = vector.load %arg15[%c0_168, %c0_169, %c0_170] : memref<4x8x14xf32, #tpu.memory_space<vmem>>, vector<1x8x14xf32>
    %159 = vector.shape_cast %158 : vector<1x8x14xf32> to vector<8x14xf32>
    %cst_171 = arith.constant dense<0.000000e+00> : vector<128x14xf32>
    %160 = tpu.matmul %157, %159, %cst_171 {dimension_numbers = #tpu.dot_dimension_numbers<[1], [0], [0], [1], [0, 0, 1, 1], [], []>} : vector<128x8xf32>, vector<8x14xf32>, vector<128x14xf32> -> vector<128x14xf32>
    %c0_172 = arith.constant 0 : index
    %c0_173 = arith.constant 0 : index
    %c0_174 = arith.constant 0 : index
    %161 = vector.load %arg14[%c0_172, %c0_173, %c0_174] : memref<4x112x128xf32, #tpu.memory_space<vmem>>, vector<1x112x128xf32>
    %162 = vector.shape_cast %161 : vector<1x112x128xf32> to vector<112x128xf32>
    %cst_175 = arith.constant dense<0.000000e+00> : vector<112x14xf32>
    %163 = tpu.matmul %162, %160, %cst_175 {dimension_numbers = #tpu.dot_dimension_numbers<[1], [0], [0], [1], [0, 0, 1, 1], [], []>} : vector<112x128xf32>, vector<128x14xf32>, vector<112x14xf32> -> vector<112x14xf32>
    %c1_176 = arith.constant 1 : index
    %c0_177 = arith.constant 0 : index
    %c0_178 = arith.constant 0 : index
    %164 = vector.load %arg15[%c1_176, %c0_177, %c0_178] : memref<4x8x14xf32, #tpu.memory_space<vmem>>, vector<1x8x14xf32>
    %165 = vector.shape_cast %164 : vector<1x8x14xf32> to vector<8x14xf32>
    %cst_179 = arith.constant dense<0.000000e+00> : vector<128x14xf32>
    %166 = tpu.matmul %157, %165, %cst_179 {dimension_numbers = #tpu.dot_dimension_numbers<[1], [0], [0], [1], [0, 0, 1, 1], [], []>} : vector<128x8xf32>, vector<8x14xf32>, vector<128x14xf32> -> vector<128x14xf32>
    %c1_180 = arith.constant 1 : index
    %c0_181 = arith.constant 0 : index
    %c0_182 = arith.constant 0 : index
    %167 = vector.load %arg14[%c1_180, %c0_181, %c0_182] : memref<4x112x128xf32, #tpu.memory_space<vmem>>, vector<1x112x128xf32>
    %168 = vector.shape_cast %167 : vector<1x112x128xf32> to vector<112x128xf32>
    %cst_183 = arith.constant dense<0.000000e+00> : vector<112x14xf32>
    %169 = tpu.matmul %168, %166, %cst_183 {dimension_numbers = #tpu.dot_dimension_numbers<[1], [0], [0], [1], [0, 0, 1, 1], [], []>} : vector<112x128xf32>, vector<128x14xf32>, vector<112x14xf32> -> vector<112x14xf32>
    %170 = arith.addf %163, %169 : vector<112x14xf32>
    %c2_184 = arith.constant 2 : index
    %c0_185 = arith.constant 0 : index
    %c0_186 = arith.constant 0 : index
    %171 = vector.load %arg15[%c2_184, %c0_185, %c0_186] : memref<4x8x14xf32, #tpu.memory_space<vmem>>, vector<1x8x14xf32>
    %172 = vector.shape_cast %171 : vector<1x8x14xf32> to vector<8x14xf32>
    %cst_187 = arith.constant dense<0.000000e+00> : vector<128x14xf32>
    %173 = tpu.matmul %157, %172, %cst_187 {dimension_numbers = #tpu.dot_dimension_numbers<[1], [0], [0], [1], [0, 0, 1, 1], [], []>} : vector<128x8xf32>, vector<8x14xf32>, vector<128x14xf32> -> vector<128x14xf32>
    %c2_188 = arith.constant 2 : index
    %c0_189 = arith.constant 0 : index
    %c0_190 = arith.constant 0 : index
    %174 = vector.load %arg14[%c2_188, %c0_189, %c0_190] : memref<4x112x128xf32, #tpu.memory_space<vmem>>, vector<1x112x128xf32>
    %175 = vector.shape_cast %174 : vector<1x112x128xf32> to vector<112x128xf32>
    %cst_191 = arith.constant dense<0.000000e+00> : vector<112x14xf32>
    %176 = tpu.matmul %175, %173, %cst_191 {dimension_numbers = #tpu.dot_dimension_numbers<[1], [0], [0], [1], [0, 0, 1, 1], [], []>} : vector<112x128xf32>, vector<128x14xf32>, vector<112x14xf32> -> vector<112x14xf32>
    %177 = arith.addf %170, %176 : vector<112x14xf32>
    %c3_192 = arith.constant 3 : index
    %c0_193 = arith.constant 0 : index
    %c0_194 = arith.constant 0 : index
    %178 = vector.load %arg15[%c3_192, %c0_193, %c0_194] : memref<4x8x14xf32, #tpu.memory_space<vmem>>, vector<1x8x14xf32>
    %179 = vector.shape_cast %178 : vector<1x8x14xf32> to vector<8x14xf32>
    %cst_195 = arith.constant dense<0.000000e+00> : vector<128x14xf32>
    %180 = tpu.matmul %157, %179, %cst_195 {dimension_numbers = #tpu.dot_dimension_numbers<[1], [0], [0], [1], [0, 0, 1, 1], [], []>} : vector<128x8xf32>, vector<8x14xf32>, vector<128x14xf32> -> vector<128x14xf32>
    %c3_196 = arith.constant 3 : index
    %c0_197 = arith.constant 0 : index
    %c0_198 = arith.constant 0 : index
    %181 = vector.load %arg14[%c3_196, %c0_197, %c0_198] : memref<4x112x128xf32, #tpu.memory_space<vmem>>, vector<1x112x128xf32>
    %182 = vector.shape_cast %181 : vector<1x112x128xf32> to vector<112x128xf32>
    %cst_199 = arith.constant dense<0.000000e+00> : vector<112x14xf32>
    %183 = tpu.matmul %182, %180, %cst_199 {dimension_numbers = #tpu.dot_dimension_numbers<[1], [0], [0], [1], [0, 0, 1, 1], [], []>} : vector<112x128xf32>, vector<128x14xf32>, vector<112x14xf32> -> vector<112x14xf32>
    %184 = arith.addf %177, %183 : vector<112x14xf32>
    %c0_200 = arith.constant 0 : index
    %c0_201 = arith.constant 0 : index
    %185 = vector.load %arg16[%c0_200, %c0_201] : memref<112x1xf32, #tpu.memory_space<vmem>>, vector<112x1xf32>
    %186 = vector.broadcast %185 : vector<112x1xf32> to vector<112x14xf32>
    %187 = arith.addf %184, %186 : vector<112x14xf32>
    %cst_202 = arith.constant 0.000000e+00 : f32
    %188 = vector.broadcast %cst_202 : f32 to vector<112x14xf32>
    %189 = arith.maximumf %187, %188 : vector<112x14xf32>
    %c0_203 = arith.constant 0 : index
    %c0_204 = arith.constant 0 : index
    %c0_205 = arith.constant 0 : index
    %190 = vector.load %arg18[%c0_203, %c0_204, %c0_205] : memref<3x14x16xf32, #tpu.memory_space<vmem>>, vector<1x14x16xf32>
    %191 = vector.shape_cast %190 : vector<1x14x16xf32> to vector<14x16xf32>
    %cst_206 = arith.constant dense<0.000000e+00> : vector<112x16xf32>
    %192 = tpu.matmul %189, %191, %cst_206 {dimension_numbers = #tpu.dot_dimension_numbers<[1], [0], [0], [1], [0, 0, 1, 1], [], []>} : vector<112x14xf32>, vector<14x16xf32>, vector<112x16xf32> -> vector<112x16xf32>
    %c0_207 = arith.constant 0 : index
    %c0_208 = arith.constant 0 : index
    %c0_209 = arith.constant 0 : index
    %193 = vector.load %arg17[%c0_207, %c0_208, %c0_209] : memref<3x48x112xf32, #tpu.memory_space<vmem>>, vector<1x48x112xf32>
    %194 = vector.shape_cast %193 : vector<1x48x112xf32> to vector<48x112xf32>
    %cst_210 = arith.constant dense<0.000000e+00> : vector<48x16xf32>
    %195 = tpu.matmul %194, %192, %cst_210 {dimension_numbers = #tpu.dot_dimension_numbers<[1], [0], [0], [1], [0, 0, 1, 1], [], []>} : vector<48x112xf32>, vector<112x16xf32>, vector<48x16xf32> -> vector<48x16xf32>
    %c1_211 = arith.constant 1 : index
    %c0_212 = arith.constant 0 : index
    %c0_213 = arith.constant 0 : index
    %196 = vector.load %arg18[%c1_211, %c0_212, %c0_213] : memref<3x14x16xf32, #tpu.memory_space<vmem>>, vector<1x14x16xf32>
    %197 = vector.shape_cast %196 : vector<1x14x16xf32> to vector<14x16xf32>
    %cst_214 = arith.constant dense<0.000000e+00> : vector<112x16xf32>
    %198 = tpu.matmul %189, %197, %cst_214 {dimension_numbers = #tpu.dot_dimension_numbers<[1], [0], [0], [1], [0, 0, 1, 1], [], []>} : vector<112x14xf32>, vector<14x16xf32>, vector<112x16xf32> -> vector<112x16xf32>
    %c1_215 = arith.constant 1 : index
    %c0_216 = arith.constant 0 : index
    %c0_217 = arith.constant 0 : index
    %199 = vector.load %arg17[%c1_215, %c0_216, %c0_217] : memref<3x48x112xf32, #tpu.memory_space<vmem>>, vector<1x48x112xf32>
    %200 = vector.shape_cast %199 : vector<1x48x112xf32> to vector<48x112xf32>
    %cst_218 = arith.constant dense<0.000000e+00> : vector<48x16xf32>
    %201 = tpu.matmul %200, %198, %cst_218 {dimension_numbers = #tpu.dot_dimension_numbers<[1], [0], [0], [1], [0, 0, 1, 1], [], []>} : vector<48x112xf32>, vector<112x16xf32>, vector<48x16xf32> -> vector<48x16xf32>
    %202 = arith.addf %195, %201 : vector<48x16xf32>
    %c2_219 = arith.constant 2 : index
    %c0_220 = arith.constant 0 : index
    %c0_221 = arith.constant 0 : index
    %203 = vector.load %arg18[%c2_219, %c0_220, %c0_221] : memref<3x14x16xf32, #tpu.memory_space<vmem>>, vector<1x14x16xf32>
    %204 = vector.shape_cast %203 : vector<1x14x16xf32> to vector<14x16xf32>
    %cst_222 = arith.constant dense<0.000000e+00> : vector<112x16xf32>
    %205 = tpu.matmul %189, %204, %cst_222 {dimension_numbers = #tpu.dot_dimension_numbers<[1], [0], [0], [1], [0, 0, 1, 1], [], []>} : vector<112x14xf32>, vector<14x16xf32>, vector<112x16xf32> -> vector<112x16xf32>
    %c2_223 = arith.constant 2 : index
    %c0_224 = arith.constant 0 : index
    %c0_225 = arith.constant 0 : index
    %206 = vector.load %arg17[%c2_223, %c0_224, %c0_225] : memref<3x48x112xf32, #tpu.memory_space<vmem>>, vector<1x48x112xf32>
    %207 = vector.shape_cast %206 : vector<1x48x112xf32> to vector<48x112xf32>
    %cst_226 = arith.constant dense<0.000000e+00> : vector<48x16xf32>
    %208 = tpu.matmul %207, %205, %cst_226 {dimension_numbers = #tpu.dot_dimension_numbers<[1], [0], [0], [1], [0, 0, 1, 1], [], []>} : vector<48x112xf32>, vector<112x16xf32>, vector<48x16xf32> -> vector<48x16xf32>
    %209 = arith.addf %202, %208 : vector<48x16xf32>
    %c0_227 = arith.constant 0 : index
    %c0_228 = arith.constant 0 : index
    %210 = vector.load %arg19[%c0_227, %c0_228] : memref<48x1xf32, #tpu.memory_space<vmem>>, vector<48x1xf32>
    %211 = vector.broadcast %210 : vector<48x1xf32> to vector<48x16xf32>
    %212 = arith.addf %209, %211 : vector<48x16xf32>
    %213 = math.tanh %212 : vector<48x16xf32>
    %c0_229 = arith.constant 0 : index
    %c0_230 = arith.constant 0 : index
    %c0_231 = arith.constant 0 : index
    %214 = vector.load %arg20[%c0_229, %c0_230, %c0_231] : memref<1x48x16xf32, #tpu.memory_space<vmem>>, vector<1x48x16xf32>
    %215 = vector.shape_cast %214 : vector<1x48x16xf32> to vector<48x16xf32>
    %216 = vector.shape_cast %213 : vector<48x16xf32> to vector<1x48x16xf32>
    tpu.vector_store %arg20[%c0_229, %c0_230, %c0_231], %216 {strides = array<i32>} : memref<1x48x16xf32, #tpu.memory_space<vmem>>, vector<1x48x16xf32>,
    return
  }
  func.func @transform_0(%arg0: i32) -> (i32, i32, i32) {
    %c0_i32 = arith.constant 0 : i32
    %c0_i32_0 = arith.constant 0 : i32
    %c0_i32_1 = arith.constant 0 : i32
    return %arg0, %c0_i32, %c0_i32_0 : i32, i32, i32
  }
  func.func @transform_1(%arg0: i32) -> (i32, i32, i32) {
    %c0_i32 = arith.constant 0 : i32
    %c0_i32_0 = arith.constant 0 : i32
    %c0_i32_1 = arith.constant 0 : i32
    %c0_i32_2 = arith.constant 0 : i32
    return %c0_i32, %c0_i32_0, %c0_i32_1 : i32, i32, i32
  }
  func.func @transform_2(%arg0: i32) -> (i32, i32, i32) {
    %c0_i32 = arith.constant 0 : i32
    %c0_i32_0 = arith.constant 0 : i32
    %c0_i32_1 = arith.constant 0 : i32
    %c0_i32_2 = arith.constant 0 : i32
    return %c0_i32, %c0_i32_0, %c0_i32_1 : i32, i32, i32
  }
  func.func @transform_3(%arg0: i32) -> (i32, i32) {
    %c0_i32 = arith.constant 0 : i32
    %c0_i32_0 = arith.constant 0 : i32
    %c0_i32_1 = arith.constant 0 : i32
    return %c0_i32, %c0_i32_0 : i32, i32
  }
  func.func @transform_4(%arg0: i32) -> (i32, i32, i32) {
    %c0_i32 = arith.constant 0 : i32
    %c0_i32_0 = arith.constant 0 : i32
    %c0_i32_1 = arith.constant 0 : i32
    %c0_i32_2 = arith.constant 0 : i32
    return %c0_i32, %c0_i32_0, %c0_i32_1 : i32, i32, i32
  }
  func.func @transform_5(%arg0: i32) -> (i32, i32, i32) {
    %c0_i32 = arith.constant 0 : i32
    %c0_i32_0 = arith.constant 0 : i32
    %c0_i32_1 = arith.constant 0 : i32
    %c0_i32_2 = arith.constant 0 : i32
    return %c0_i32, %c0_i32_0, %c0_i32_1 : i32, i32, i32
  }
  func.func @transform_6(%arg0: i32) -> (i32, i32) {
    %c0_i32 = arith.constant 0 : i32
    %c0_i32_0 = arith.constant 0 : i32
    %c0_i32_1 = arith.constant 0 : i32
    return %c0_i32, %c0_i32_0 : i32, i32
  }
  func.func @transform_7(%arg0: i32) -> (i32, i32, i32) {
    %c0_i32 = arith.constant 0 : i32
    %c0_i32_0 = arith.constant 0 : i32
    %c0_i32_1 = arith.constant 0 : i32
    %c0_i32_2 = arith.constant 0 : i32
    return %c0_i32, %c0_i32_0, %c0_i32_1 : i32, i32, i32
  }
  func.func @transform_8(%arg0: i32) -> (i32, i32, i32) {
    %c0_i32 = arith.constant 0 : i32
    %c0_i32_0 = arith.constant 0 : i32
    %c0_i32_1 = arith.constant 0 : i32
    %c0_i32_2 = arith.constant 0 : i32
    return %c0_i32, %c0_i32_0, %c0_i32_1 : i32, i32, i32
  }
  func.func @transform_9(%arg0: i32) -> (i32, i32) {
    %c0_i32 = arith.constant 0 : i32
    %c0_i32_0 = arith.constant 0 : i32
    %c0_i32_1 = arith.constant 0 : i32
    return %c0_i32, %c0_i32_0 : i32, i32
  }
  func.func @transform_10(%arg0: i32) -> (i32, i32, i32) {
    %c0_i32 = arith.constant 0 : i32
    %c0_i32_0 = arith.constant 0 : i32
    %c0_i32_1 = arith.constant 0 : i32
    %c0_i32_2 = arith.constant 0 : i32
    return %c0_i32, %c0_i32_0, %c0_i32_1 : i32, i32, i32
  }
  func.func @transform_11(%arg0: i32) -> (i32, i32, i32) {
    %c0_i32 = arith.constant 0 : i32
    %c0_i32_0 = arith.constant 0 : i32
    %c0_i32_1 = arith.constant 0 : i32
    %c0_i32_2 = arith.constant 0 : i32
    return %c0_i32, %c0_i32_0, %c0_i32_1 : i32, i32, i32
  }
  func.func @transform_12(%arg0: i32) -> (i32, i32) {
    %c0_i32 = arith.constant 0 : i32
    %c0_i32_0 = arith.constant 0 : i32
    %c0_i32_1 = arith.constant 0 : i32
    return %c0_i32, %c0_i32_0 : i32, i32
  }
  func.func @transform_13(%arg0: i32) -> (i32, i32, i32) {
    %c0_i32 = arith.constant 0 : i32
    %c0_i32_0 = arith.constant 0 : i32
    %c0_i32_1 = arith.constant 0 : i32
    %c0_i32_2 = arith.constant 0 : i32
    return %c0_i32, %c0_i32_0, %c0_i32_1 : i32, i32, i32
  }
  func.func @transform_14(%arg0: i32) -> (i32, i32, i32) {
    %c0_i32 = arith.constant 0 : i32
    %c0_i32_0 = arith.constant 0 : i32
    %c0_i32_1 = arith.constant 0 : i32
    %c0_i32_2 = arith.constant 0 : i32
    return %c0_i32, %c0_i32_0, %c0_i32_1 : i32, i32, i32
  }
  func.func @transform_15(%arg0: i32) -> (i32, i32) {
    %c0_i32 = arith.constant 0 : i32
    %c0_i32_0 = arith.constant 0 : i32
    %c0_i32_1 = arith.constant 0 : i32
    return %c0_i32, %c0_i32_0 : i32, i32
  }
  func.func @transform_16(%arg0: i32) -> (i32, i32, i32) {
    %c0_i32 = arith.constant 0 : i32
    %c0_i32_0 = arith.constant 0 : i32
    %c0_i32_1 = arith.constant 0 : i32
    %c0_i32_2 = arith.constant 0 : i32
    return %c0_i32, %c0_i32_0, %c0_i32_1 : i32, i32, i32
  }
  func.func @transform_17(%arg0: i32) -> (i32, i32, i32) {
    %c0_i32 = arith.constant 0 : i32
    %c0_i32_0 = arith.constant 0 : i32
    %c0_i32_1 = arith.constant 0 : i32
    %c0_i32_2 = arith.constant 0 : i32
    return %c0_i32, %c0_i32_0, %c0_i32_1 : i32, i32, i32
  }
  func.func @transform_18(%arg0: i32) -> (i32, i32) {
    %c0_i32 = arith.constant 0 : i32
    %c0_i32_0 = arith.constant 0 : i32
    %c0_i32_1 = arith.constant 0 : i32
    return %c0_i32, %c0_i32_0 : i32, i32
  }
  func.func @transform_19(%arg0: i32) -> (i32, i32, i32) {
    %c0_i32 = arith.constant 0 : i32
    %c0_i32_0 = arith.constant 0 : i32
    %c0_i32_1 = arith.constant 0 : i32
    return %arg0, %c0_i32, %c0_i32_0 : i32, i32, i32
  }
}

</mosaic_0001>

<bundles_post_ra>
// kernel: generator_forward.1
= control target key start
LH: loop header
LB: loop body
LE: loop exit
PB: predicated region body
PF: predicated region fallthrough
CT: control target
= control target key end

     0   :  { %s18605_s0 = inlined_call_operand.vmem [shape: f32[2,48,16], index: 0, kind: input, shape index: {}]   ;;  %s18606_s1 = inlined_call_operand.vmem [shape: f32[3,128,48], index: 1, kind: input, shape index: {}]   ;;  %s18607_s2 = inlined_call_operand.vmem [shape: f32[3,16,16], index: 2, kind: input, shape index: {}]   ;;  %s18608_s3 = inlined_call_operand.vmem [shape: f32[128,1], index: 3, kind: input, shape index: {}]   ;;  %s18609_s4 = inlined_call_operand.vmem [shape: f32[5,128,128], index: 4, kind: input, shape index: {}]   ;;  %s18610_s5 = inlined_call_operand.vmem [shape: f32[5,16,8], index: 5, kind: input, shape index: {}]   ;;  %s18611_s6 = inlined_call_operand.vmem [shape: f32[128,1], index: 6, kind: input, shape index: {}]   ;;  %s18612_s7 = inlined_call_operand.vmem [shape: f32[6,128,128], index: 7, kind: input, shape index: {}]   ;;  %s18613_s8 = inlined_call_operand.vmem [shape: f32[6,8,4], index: 8, kind: input, shape index: {}]   ;;  %s18614_s9 = inlined_call_operand.vmem [shape: f32[128,1], index: 9, kind: input, shape index: {}]   ;;  %s18615_s10 = inlined_call_operand.vmem [shape: f32[6,128,128], index: 10, kind: input, shape index: {}]   ;;  %s18616_s11 = inlined_call_operand.vmem [shape: f32[6,4,8], index: 11, kind: input, shape index: {}]   ;;  %s18617_s12 = inlined_call_operand.vmem [shape: f32[128,1], index: 12, kind: input, shape index: {}]   ;;  %s18618_s13 = inlined_call_operand.vmem [shape: f32[4,112,128], index: 13, kind: input, shape index: {}]   ;;  %s18619_s14 = inlined_call_operand.vmem [shape: f32[4,8,14], index: 14, kind: input, shape index: {}]   ;;  %s18620_s15 = inlined_call_operand.vmem [shape: f32[112,1], index: 15, kind: input, shape index: {}]   ;;  %s18621_s16 = inlined_call_operand.vmem [shape: f32[3,48,112], index: 16, kind: input, shape index: {}]   ;;  %s18622_s17 = inlined_call_operand.vmem [shape: f32[3,14,16], index: 17, kind: input, shape index: {}]   ;;  %s18623_s18 = inlined_call_operand.vmem [shape: f32[48,1], index: 18, kind: input, shape index: {}]   ;;  %s18624_s19 = inlined_call_operand.hbm [shape: f32[2,48,16], index: 19, kind: output, shape index: {}]  }
   0x1   :  { %18635 = sst [smem:[#allocation11_spill]] %s18605_s0 }
   0x2   :  { %18636 = sst [smem:[#allocation12_spill]] %s18606_s1 }
   0x3   :  { %18637 = sst [smem:[#allocation13_spill]] %s18607_s2 }
   0x4   :  { %18638 = sst [smem:[#allocation14_spill]] %s18608_s3 }
   0x5   :  { %18639 = sst [smem:[#allocation15_spill]] %s18609_s4 }
   0x6   :  { %24 = vsyncpa [#allocation3], 0 }
   0x7   :  { %26 = vsyncpa [#allocation3 + $0x1], 0  ;;  %s15482_s0 = smov 0   ;;  %s15484_s30 = smov 0  }
   0x8   :  { %s15486_s20 = smov 0   ;;  %s15488_s21 = smov 0  }
   0x9 LB: > { %18640 = sst [smem:[#allocation5_spill]] %s15363_s0  ;;  %s15503_s1 = sadd.s32 4294967295, %s15375_s21   ;;  %s15375_s21 = sphi %s15488_s21, %s18659_s21   ;;  %s15371_s20 = sphi %s15486_s20, %s18661_s20   ;;  %s15367_s30 = sphi %s15484_s30, %s18663_s30   ;;  %s15363_s0 = sphi %s15482_s0, %s18662_s0  }
   0xa   : > { %18641 = sst [smem:[#allocation6_spill]] %s15371_s20  ;;  %s10006_s22 = sadd.s32 4294967294, %s15375_s21  }
   0xb   : > { %18642 = sst [smem:[#allocation7_spill]] %s15375_s21  ;;  %s15507_s2 = sadd.s32 1, %s15375_s21  }
   0xc   : > { %18643 = sst [smem:[#allocation8_spill]] %s15507_s2  ;;  %s443_s23 = sadd.s32 1, %s15371_s20 }
   0xd   : > { %s440_s24 = ssub.s32 %s15375_s21, %s15507_s2  ;;  %p453_p0 = scmp.ne.s32.totalorder %s15371_s20, %s15367_s30 }
   0xe   : > { %p441_p1 = scmp.eq.s32.totalorder %s440_s24, 0  ;;  %p454_p2 = scmp.eq.s32.totalorder %s15503_s1, 1 }
   0xf   : > { %p459_p3 = scmp.ne.s32.totalorder %s15367_s30, %s15363_s0  ;;  %p460_p4 = scmp.eq.s32.totalorder %s10006_s22, 1 }
  0x10   : > { %s15518_s25 = scalar_select %p441_p1, %s15371_s20, %s443_s23  }
  0x11   : > { %p15520_p5 = por %p454_p2, %p453_p0  ;;  %p15524_p6 = por %p460_p4, %p459_p3 }
  0x12   : > { %18644 = sst [smem:[#allocation9_spill]] %s15518_s25  ;;  %p10009_p7 = scmp.ge.s32.totalorder %s15375_s21, 1 }
  0x13   : > { %s18646_s26 = scalar_select %p15524_p6, 1, 0 }
  0x14   : > { %p540_p8 = scmp.lt.s32.totalorder %s15375_s21, 3 }
  0x15   : > { %18647 = sst [smem:[#allocation10_spill]] %s18646_s26 }
  0x16   : > { %p541_p9 = pnand %p10009_p7, %p540_p8 }
  0x17   : > { %s18648_s29 = sld [smem:[#allocation13_spill]] (!%p541_p9)  ;;  %p596_p10 = scmp.lt.s32.totalorder (!%p541_p9), %s15503_s1, 1  ;;  %vm609_vm0 = vcmask (!%p541_p9), 130048   ;;  %v15377_v15 = vmov (!%p541_p9), 0   ;;  %vm854_vm1 = vcmask (!%p541_p9), 392192   ;;  %v3337_v33 = vld [vmem:[%s18611_s6] sm:$0xff] (!%p541_p9) }
  0x18   : > { %544 = sbr.rel (%p541_p9) target bundleno = 3667 (0xe53), region = 96  ;;  %s18649_s23 = sld [smem:[#allocation11_spill]] (!%p541_p9)  ;;  %15299 = vset.pattern.permute.xlu0 (!%p541_p9), %v15377_v15  ;;  %15300 = vset.pattern.permute.xlu1 (!%p541_p9), %v15377_v15  ;;  %v3338_v34 = vld [vmem:[%s18611_s6 + $0x8] sm:$0xff] (!%p541_p9)  ;;  %v3339_v35 = vld [vmem:[%s18611_s6 + $0x10] sm:$0xff] (!%p541_p9)  ;;  %v3340_v36 = vld [vmem:[%s18611_s6 + $0x18] sm:$0xff] (!%p541_p9)  ;;  %vm3466_vm2 = vcmask (!%p541_p9), 64512  }
  0x19   : > { %s18650_s27 = sld [smem:[#allocation14_spill]] (!%p541_p9)  ;;  %s18651_s0 = sld [smem:[#allocation12_spill]] (!%p541_p9)  ;;  %v3341_v37 = vld [vmem:[%s18611_s6 + $0x20] sm:$0xff] (!%p541_p9)  ;;  %v3342_v38 = vld [vmem:[%s18611_s6 + $0x28] sm:$0xff] (!%p541_p9)  ;;  %v3343_v39 = vld [vmem:[%s18611_s6 + $0x30] sm:$0xff] (!%p541_p9)  ;;  %vm5608_vm3 = vcmask (!%p541_p9), 1043456  }
  0x1a   : > { %v3344_v40 = vld [vmem:[%s18611_s6 + $0x38] sm:$0xff] (!%p541_p9)  ;;  %v3345_v41 = vld [vmem:[%s18611_s6 + $0x40] sm:$0xff] (!%p541_p9)  ;;  %v3346_v42 = vld [vmem:[%s18611_s6 + $0x48] sm:$0xff] (!%p541_p9)  ;;  %s18653_s4 = sld [smem:[#allocation15_spill]] (!%p541_p9)  ;;  %vm5559_vm4 = vcmask (!%p541_p9), 31744   ;;  %vm9089_vm5 = vcmask (!%p541_p9), 1045504  }
  0x1b   : > { %v3347_v43 = vld [vmem:[%s18611_s6 + $0x50] sm:$0xff] (!%p541_p9)  ;;  %v3348_v44 = vld [vmem:[%s18611_s6 + $0x58] sm:$0xff] (!%p541_p9)  ;;  %v3349_v45 = vld [vmem:[%s18611_s6 + $0x60] sm:$0xff] (!%p541_p9)  ;;  %vm15378_vm6 = vmmov (!%p541_p9), 1   ;;  %vm9046_vm8 = vcmask (!%p541_p9), 113664   ;;  %vm9382_vm9 = vcmask (!%p541_p9), 916480  }
  0x1c   : > { %v3350_v46 = vld [vmem:[%s18611_s6 + $0x68] sm:$0xff] (!%p541_p9)  ;;  %v3351_v47 = vld [vmem:[%s18611_s6 + $0x70] sm:$0xff] (!%p541_p9)  ;;  %v3352_v48 = vld [vmem:[%s18611_s6 + $0x78] sm:$0xff] (!%p541_p9)  ;;  %s593_s28 = sand.u32 (!%p541_p9), 1, %s15367_s30  }
  0x1d   : > { %v607_v0 = vld [vmem:[%s18648_s29] sm:$0xff] (!%p541_p9)  ;;  %v608_v1 = vld [vmem:[%s18648_s29 + $0x8] sm:$0xff] (!%p541_p9)  ;;  %v10017_v2 = vld [vmem:[%s18648_s29 + $0x10] sm:$0xff] (!%p541_p9) }
  0x1e   : > { %v14101_v3 = vpack.c.bf16 (!%p541_p9), %v608_v1, %v607_v0  ;;  %v10018_v4 = vld [vmem:[%s18648_s29 + $0x18] sm:$0xff] (!%p541_p9)  ;;  %v10073_v5 = vld [vmem:[%s18648_s29 + $0x20] sm:$0xff] (!%p541_p9)  ;;  %v10074_v6 = vld [vmem:[%s18648_s29 + $0x28] sm:$0xff] (!%p541_p9) }
  0x1f   : > { %s597_s22 = scalar_select %p596_p10, %s15503_s1, 1  ;;  %v14105_v7 = vpack.c.bf16 %v10018_v4, %v10017_v2  ;;  %v14133_v8 = vpack.c.bf16 %v10074_v6, %v10073_v5  ;;  %v1565_v16 = vld [vmem:[%s18650_s27] sm:$0xff]  ;;  %v1567_v17 = vld [vmem:[%s18650_s27 + $0x10] sm:$0xff]  ;;  %v1566_v18 = vld [vmem:[%s18650_s27 + $0x8] sm:$0xff] }
  0x20   : > { %14102 = vmatprep.subr.bf16.mxu0 %v14101_v3  ;;  %1583 = vperm.xlu0 %15299, %v1565_v16   ;;  %v1568_v19 = vld [vmem:[%s18650_s27 + $0x18] sm:$0xff]  ;;  %v1569_v20 = vld [vmem:[%s18650_s27 + $0x20] sm:$0xff]  ;;  %v1570_v21 = vld [vmem:[%s18650_s27 + $0x28] sm:$0xff]  ;;  %s18652_s26 = smov %s18651_s0 }
  0x21   : > { %14104 = vmatpush3.bf16.msra.mxu0 %v14101_v3  ;;  %s15254_s25 = smul.u32 48, %s597_s22  ;;  %14134 = vmatprep.subr.bf16.mxu1 %v14133_v8  ;;  %v1571_v22 = vld [vmem:[%s18650_s27 + $0x30] sm:$0xff]  ;;  %v1572_v23 = vld [vmem:[%s18650_s27 + $0x38] sm:$0xff]  ;;  %v1573_v24 = vld [vmem:[%s18650_s27 + $0x40] sm:$0xff] }
  0x22   : > { %14106 = vmatprep.subr.bf16.mxu0 %v14105_v7  ;;  %14136 = vmatpush3.bf16.msra.mxu1 %v14133_v8  ;;  %v10025_v25 = vld [vmem:[%s18651_s0 + $0x80] sm:$0xff]  ;;  %v1574_v26 = vld [vmem:[%s18650_s27 + $0x48] sm:$0xff]  ;;  %v1575_v27 = vld [vmem:[%s18650_s27 + $0x50] sm:$0xff]  ;;  %s15253_s22 = smul.u32 48, %s593_s28  ;;  %s15379_s0 = smov [#allocation2]  }
  0x23   : > { %s600_s24 = scalar_lea.vmem %s18649_s23, %s15254_s25  ;;  %1593 = vperm.xlu1 %15300, %v1567_v17   ;;  %v1576_v28 = vld [vmem:[%s18650_s27 + $0x58] sm:$0xff]  ;;  %v1577_v29 = vld [vmem:[%s18650_s27 + $0x60] sm:$0xff]  ;;  %v1578_v30 = vld [vmem:[%s18650_s27 + $0x68] sm:$0xff]  ;;  %s15255_s25 = smul.u32 768, %s15503_s1 }
  0x24   : > { %v601_v9 = vld [vmem:[%s600_s24] sm:$0xff]  ;;  %v602_v10 = vld [vmem:[%s600_s24 + $0x8] sm:$0xff]  ;;  %v603_v11 = vld [vmem:[%s600_s24 + $0x10] sm:$0xff]  ;;  %1588 = vperm.xlu0 %15299, %v1566_v18   ;;  %s595_s21 = scalar_lea.vmem [#allocation2], %s15253_s22  ;;  %s18564_s1 = scalar_lea.sflag [#allocation3], %s593_s28 }
  0x25   : > { %12052 = vmatprep.mubr.msk.f32.mxu0 %vm609_vm0, %v601_v9  ;;  %12150 = vmatprep.mubr.msk.f32.mxu1 %vm609_vm0, %v601_v9  ;;  %v604_v12 = vld [vmem:[%s600_s24 + $0x18] sm:$0xff]  ;;  %v605_v13 = vld [vmem:[%s600_s24 + $0x20] sm:$0xff]  ;;  %v606_v14 = vld [vmem:[%s600_s24 + $0x28] sm:$0xff]  ;;  %s9944_s20 = sshll.u32 %s595_s21, 4  ;;  %s18556_s29 = scalar_lea.hbm %s18624_s19, %s15255_s25  ;;  %s18558_s20 = int_to_ptr.vmem [resolvable:$true] %s9944_s20 }
  0x26   : > { %12053 = vmatmul.mubr.msk.f32.vlgmr.msra.gmra.mrb[0].mxu0 %vm609_vm0, %v602_v10  ;;  %12151 = vmatmul.mubr.msk.f32.vlgmr.msra.gmra.mrb[0].mxu1 %vm609_vm0, %v602_v10  ;;  %v1579_v31 = vld [vmem:[%s18650_s27 + $0x70] sm:$0xff]  ;;  %v1580_v32 = vld [vmem:[%s18650_s27 + $0x78] sm:$0xff]  ;;  %v5430_v49 = vld [vmem:[%s18614_s9] sm:$0xff]  ;;  %s15313_s24 = scalar_lea.vmem %s18558_s20, 768  ;;  %s15317_s22 = sshll.u32 %s15379_s0, 4  ;;  %s15318_s22 = int_to_ptr.vmem [resolvable:$false] %s15317_s22 }
  0x27   : > { %14108 = vmatpush3.bf16.msra.mxu0 %v14105_v7  ;;  %12055 = vmatprep.mubr.msk.f32.mxu0 %vm609_vm0, %v603_v11  ;;  %v5431_v50 = vld [vmem:[%s18614_s9 + $0x8] sm:$0xff]  ;;  %v5432_v51 = vld [vmem:[%s18614_s9 + $0x10] sm:$0xff]  ;;  %v5433_v52 = vld [vmem:[%s18614_s9 + $0x18] sm:$0xff]  ;;  %p15314_p11 = scmp.ne.s32.totalorder %s18558_s20, %s15313_s24  ;;  %s15319_s25 = scalar_lea.vmem %s15318_s22, 1536 }
  0x28   : > { %12153 = vmatprep.mubr.msk.f32.mxu1 %vm609_vm0, %v603_v11  ;;  %1598 = vperm.xlu1 %15300, %v1568_v19   ;;  %v5434_v53 = vld [vmem:[%s18614_s9 + $0x20] sm:$0xff]  ;;  %v5435_v54 = vld [vmem:[%s18614_s9 + $0x28] sm:$0xff]  ;;  %v5436_v55 = vld [vmem:[%s18614_s9 + $0x30] sm:$0xff]  ;;  %p15320_p0 = scmp.lt.s32.totalorder %s18558_s20, %s15318_s22  ;;  %p15321_p1 = scmp.lt.s32.totalorder %s15319_s25, %s15313_s24 }
  0x29   : > { %1603 = vperm.xlu0 %15299, %v1569_v20   ;;  %v5437_v56 = vld [vmem:[%s18614_s9 + $0x38] sm:$0xff]  ;;  %v5438_v57 = vld [vmem:[%s18614_s9 + $0x40] sm:$0xff]  ;;  %v5439_v58 = vld [vmem:[%s18614_s9 + $0x48] sm:$0xff]  ;;  %p15315_p12 = pnand %p15314_p11, %p15520_p5 }
  0x2a   : > { %12056 = vmatmul.mubr.msk.f32.gmra.mrb[2].mxu0 %vm609_vm0, %v604_v12  ;;  %12154 = vmatmul.mubr.msk.f32.gmra.mrb[2].mxu1 %vm609_vm0, %v604_v12  ;;  %v5440_v59 = vld [vmem:[%s18614_s9 + $0x50] sm:$0xff]  ;;  %v5441_v60 = vld [vmem:[%s18614_s9 + $0x58] sm:$0xff]  ;;  %v5442_v61 = vld [vmem:[%s18614_s9 + $0x60] sm:$0xff]  ;;  %p15322_p2 = por %p15321_p1, %p15320_p0 }
  0x2b   : > { %12058 = vmatprep.mubr.msk.f32.mxu0 %vm609_vm0, %v605_v13  ;;  %12156 = vmatprep.mubr.msk.f32.mxu1 %vm609_vm0, %v605_v13  ;;  %v5443_v62 = vld [vmem:[%s18614_s9 + $0x68] sm:$0xff]  ;;  %v5444_v63 = vld [vmem:[%s18614_s9 + $0x70] sm:$0xff]  ;;  %v5445_v0 = vld [vmem:[%s18614_s9 + $0x78] sm:$0xff]  ;;  %p15316_p13 = pneg %p15315_p12 }
  0x2c   : > { %1608 = vperm.xlu1 %15300, %v1570_v21   ;;  %v7542_v1 = vld [vmem:[%s18617_s12] sm:$0xff]  ;;  %v7543_v2 = vld [vmem:[%s18617_s12 + $0x8] sm:$0xff]  ;;  %v7544_v3 = vld [vmem:[%s18617_s12 + $0x10] sm:$0xff] }
  0x2d   : > { %1613 = vperm.xlu0 %15299, %v1571_v22   ;;  %v7545_v4 = vld [vmem:[%s18617_s12 + $0x18] sm:$0xff]  ;;  %v7546_v5 = vld [vmem:[%s18617_s12 + $0x20] sm:$0xff]  ;;  %v7547_v6 = vld [vmem:[%s18617_s12 + $0x28] sm:$0xff]  ;;  %p15323_p3 = pnand %p15322_p2, %p15316_p13 }
  0x2e   : > { %12059 = vmatmul.mubr.msk.f32.gmra.mrb[4].mxu0 %vm609_vm0, %v606_v14  ;;  %12157 = vmatmul.mubr.msk.f32.gmra.mrb[4].mxu1 %vm609_vm0, %v606_v14  ;;  %v7548_v7 = vld [vmem:[%s18617_s12 + $0x30] sm:$0xff]  ;;  %v7549_v8 = vld [vmem:[%s18617_s12 + $0x38] sm:$0xff]  ;;  %v7555_v20 = vld [vmem:[%s18617_s12 + $0x68] sm:$0xff] }
  0x2f   : > { %12065 = vmatprep.mubr.msk.f32.mxu0 %vm609_vm0, %v601_v9  ;;  %v7550_v9 = vld [vmem:[%s18617_s12 + $0x40] sm:$0xff]  ;;  %v7556_v21 = vld [vmem:[%s18617_s12 + $0x70] sm:$0xff]  ;;  %vm18138_vm7 = vmpackc.low %vm9089_vm5, %vm15378_vm6 }
  0x30   : > { %1618 = vperm.xlu1 %15300, %v1572_v23  }
  0x31   : > { %1623 = vperm.xlu0 %15299, %v1573_v24  }
  0x32   : > { %12066 = vmatmul.mubr.msk.f32.vlgmr.msra.gmra.mrb[6].mxu0 %vm609_vm0, %v602_v10  ;;  %v7551_v10 = vld [vmem:[%s18617_s12 + $0x48] sm:$0xff] }
  0x33   : > { %12068 = vmatprep.mubr.msk.f32.mxu0 %vm609_vm0, %v603_v11  ;;  %v7552_v11 = vld [vmem:[%s18617_s12 + $0x50] sm:$0xff] }
  0x34   : > { %1628 = vperm.xlu1 %15300, %v1574_v26  }
  0x35   : > { %1633 = vperm.xlu0 %15299, %v1575_v27  }
  0x36   : > { %12069 = vmatmul.mubr.msk.f32.gmra.mrb[8].mxu0 %vm609_vm0, %v604_v12  ;;  %v7553_v12 = vld [vmem:[%s18617_s12 + $0x58] sm:$0xff] }
  0x37   : > { %12071 = vmatprep.mubr.msk.f32.mxu0 %vm609_vm0, %v605_v13  ;;  %v7554_v13 = vld [vmem:[%s18617_s12 + $0x60] sm:$0xff] }
  0x38   : > { %1638 = vperm.xlu1 %15300, %v1576_v28   ;;  %v7557_v28 = vld [vmem:[%s18617_s12 + $0x78] sm:$0xff] }
  0x39   : > { %1643 = vperm.xlu0 %15299, %v1577_v29   ;;  %v8932_v29 = vld [vmem:[%s18620_s15] sm:$0xff] }
  0x3a   : > { %12072 = vmatmul.mubr.msk.f32.gmra.mrb[10].mxu0 %vm609_vm0, %v606_v14 }
  0x3b   : > { %12086 = vmatprep.mubr.msk.f32.mxu0 %vm854_vm1, %v10025_v25 }
  0x3c   : > { %1648 = vperm.xlu1 %15300, %v1578_v30  }
  0x3d   : > { %1653 = vperm.xlu0 %15299, %v1579_v31  }
  0x40   : > { %1658 = vperm.xlu1 %15300, %v1580_v32  }
  0x41   : > { %3355 = vperm.xlu0 %15299, %v3337_v33  }
  0x44   : > { %3360 = vperm.xlu1 %15300, %v3338_v34  }
  0x45   : > { %3365 = vperm.xlu0 %15299, %v3339_v35  }
  0x48   : > { %3370 = vperm.xlu1 %15300, %v3340_v36   ;;  %v8933_v36 = vld [vmem:[%s18620_s15 + $0x8] sm:$0xff] }
  0x49   : > { %3375 = vperm.xlu0 %15299, %v3341_v37   ;;  %v8934_v37 = vld [vmem:[%s18620_s15 + $0x10] sm:$0xff] }
  0x4c   : > { %3380 = vperm.xlu1 %15300, %v3342_v38  }
  0x4d   : > { %3385 = vperm.xlu0 %15299, %v3343_v39  }
  0x50   : > { %3390 = vperm.xlu1 %15300, %v3344_v40  }
  0x51   : > { %3395 = vperm.xlu0 %15299, %v3345_v41   ;;  %v8935_v41 = vld [vmem:[%s18620_s15 + $0x18] sm:$0xff] }
  0x54   : > { %3400 = vperm.xlu1 %15300, %v3346_v42   ;;  %v8936_v42 = vld [vmem:[%s18620_s15 + $0x20] sm:$0xff] }
  0x55   : > { %3405 = vperm.xlu0 %15299, %v3347_v43  }
  0x58   : > { %3410 = vperm.xlu1 %15300, %v3348_v44  }
  0x59   : > { %3415 = vperm.xlu0 %15299, %v3349_v45  }
  0x5c   : > { %3420 = vperm.xlu1 %15300, %v3350_v46   ;;  %v8937_v46 = vld [vmem:[%s18620_s15 + $0x28] sm:$0xff] }
  0x5d   : > { %3425 = vperm.xlu0 %15299, %v3351_v47   ;;  %v8938_v47 = vld [vmem:[%s18620_s15 + $0x30] sm:$0xff] }
  0x60   : > { %3430 = vperm.xlu1 %15300, %v3352_v48  }
  0x61   : > { %5448 = vperm.xlu0 %15299, %v5430_v49  }
  0x64   : > { %5453 = vperm.xlu1 %15300, %v5431_v50  }
  0x65   : > { %5458 = vperm.xlu0 %15299, %v5432_v51   ;;  %v8939_v51 = vld [vmem:[%s18620_s15 + $0x38] sm:$0xff] }
  0x68   : > { %5463 = vperm.xlu1 %15300, %v5433_v52   ;;  %v8940_v52 = vld [vmem:[%s18620_s15 + $0x40] sm:$0xff] }
  0x69   : > { %5468 = vperm.xlu0 %15299, %v5434_v53   ;;  %v10026_v53 = vld [vmem:[%s18652_s26 + $0x88] sm:$0xff] }
  0x6c   : > { %5473 = vperm.xlu1 %15300, %v5435_v54   ;;  %v10027_v54 = vld [vmem:[%s18652_s26 + $0x90] sm:$0xff] }
  0x6d   : > { %5478 = vperm.xlu0 %15299, %v5436_v55   ;;  %v8941_v55 = vld [vmem:[%s18620_s15 + $0x48] sm:$0xff] }
  0x70   : > { %5483 = vperm.xlu1 %15300, %v5437_v56   ;;  %v8942_v56 = vld [vmem:[%s18620_s15 + $0x50] sm:$0xff] }
  0x71   : > { %5488 = vperm.xlu0 %15299, %v5438_v57   ;;  %v10028_v57 = vld [vmem:[%s18652_s26 + $0x98] sm:$0xff] }
  0x74   : > { %5493 = vperm.xlu1 %15300, %v5439_v58   ;;  %v10029_v58 = vld [vmem:[%s18652_s26 + $0xa0] sm:$0xff] }
  0x75   : > { %5498 = vperm.xlu0 %15299, %v5440_v59   ;;  %v8943_v59 = vld [vmem:[%s18620_s15 + $0x58] sm:$0xff] }
  0x78   : > { %5503 = vperm.xlu1 %15300, %v5441_v60   ;;  %v8944_v60 = vld [vmem:[%s18620_s15 + $0x60] sm:$0xff] }
  0x79   : > { %5508 = vperm.xlu0 %15299, %v5442_v61   ;;  %v10030_v61 = vld [vmem:[%s18652_s26 + $0xa8] sm:$0xff] }
  0x7c   : > { %5513 = vperm.xlu1 %15300, %v5443_v62   ;;  %v10031_v62 = vld [vmem:[%s18652_s26 + $0xb0] sm:$0xff] }
  0x7d   : > { %5518 = vperm.xlu0 %15299, %v5444_v63   ;;  %v8945_v63 = vld [vmem:[%s18620_s15 + $0x68] sm:$0xff] }
  0x80   : > { %5523 = vperm.xlu1 %15300, %v5445_v0   ;;  %v9876_v0 = vld [vmem:[%s18623_s18] sm:$0xff] }
  0x81   : > { %7560 = vperm.xlu0 %15299, %v7542_v1   ;;  %v10032_v1 = vld [vmem:[%s18652_s26 + $0xb8] sm:$0xff] }
  0x84   : > { %7565 = vperm.xlu1 %15300, %v7543_v2   ;;  %v10033_v2 = vld [vmem:[%s18652_s26 + $0xc0] sm:$0xff] }
  0x85   : > { %7570 = vperm.xlu0 %15299, %v7544_v3   ;;  %v9877_v3 = vld [vmem:[%s18623_s18 + $0x8] sm:$0xff] }
  0x88   : > { %7575 = vperm.xlu1 %15300, %v7545_v4   ;;  %v9878_v4 = vld [vmem:[%s18623_s18 + $0x10] sm:$0xff] }
  0x89   : > { %7580 = vperm.xlu0 %15299, %v7546_v5   ;;  %v10034_v5 = vld [vmem:[%s18652_s26 + $0xc8] sm:$0xff] }
  0x8c   : > { %7585 = vperm.xlu1 %15300, %v7547_v6   ;;  %v10035_v6 = vld [vmem:[%s18652_s26 + $0xd0] sm:$0xff] }
  0x8d   : > { %7590 = vperm.xlu0 %15299, %v7548_v7   ;;  %v1693_v7 = vld [vmem:[%s18610_s5] sm:$0xff] }
  0x90   : > { %7595 = vperm.xlu1 %15300, %v7549_v8   ;;  %v1694_v8 = vld [vmem:[%s18610_s5 + $0x8] sm:$0xff] }
  0x91   : > { %7600 = vperm.xlu0 %15299, %v7550_v9   ;;  %v9879_v9 = vld [vmem:[%s18623_s18 + $0x18] sm:$0xff] }
  0x94   : > { %7605 = vperm.xlu1 %15300, %v7551_v10   ;;  %v14149_v10 = vpack.c.bf16 %v1694_v8, %v1693_v7 }
  0x95   : > { %7610 = vperm.xlu0 %15299, %v7552_v11   ;;  %v9880_v11 = vld [vmem:[%s18623_s18 + $0x20] sm:$0xff] }
  0x96   : > { %14150 = vmatprep.subr.bf16.mxu1 %v14149_v10 }
  0x97   : > { %14152 = vmatpush3.bf16.msra.mxu1 %v14149_v10 }
  0x98   : > { %7615 = vperm.xlu1 %15300, %v7553_v12   ;;  %v10036_v12 = vld [vmem:[%s18652_s26 + $0xd8] sm:$0xff] }
  0x99   : > { %7620 = vperm.xlu0 %15299, %v7554_v13   ;;  %v10037_v13 = vld [vmem:[%s18652_s26 + $0xe0] sm:$0xff] }
  0x9c   : > { %7625 = vperm.xlu1 %15300, %v7555_v20   ;;  %v724_v20 = vld [vmem:[%s18652_s26 + $0x8] sm:$0xff] }
  0x9d   : > { %7630 = vperm.xlu0 %15299, %v7556_v21   ;;  %v725_v21 = vld [vmem:[%s18652_s26 + $0x10] sm:$0xff] }
  0xa0   : > { %7635 = vperm.xlu1 %15300, %v7557_v28   ;;  %v733_v28 = vld [vmem:[%s18652_s26 + $0x50] sm:$0xff] }
  0xa1   : > { %8948 = vperm.xlu0 %15299, %v8932_v29   ;;  %v734_v29 = vld [vmem:[%s18652_s26 + $0x58] sm:$0xff] }
  0xa4   : > { %8953 = vperm.xlu1 %15300, %v8933_v36   ;;  %v10083_v36 = vld [vmem:[%s18652_s26 + $0x110] sm:$0xff] }
  0xa5   : > { %8958 = vperm.xlu0 %15299, %v8934_v37   ;;  %v10084_v37 = vld [vmem:[%s18652_s26 + $0x118] sm:$0xff] }
  0xa8   : > { %8963 = vperm.xlu1 %15300, %v8935_v41   ;;  %v10088_v41 = vld [vmem:[%s18652_s26 + $0x138] sm:$0xff] }
  0xa9   : > { %8968 = vperm.xlu0 %15299, %v8936_v42   ;;  %v10089_v42 = vld [vmem:[%s18652_s26 + $0x140] sm:$0xff] }
  0xac   : > { %8973 = vperm.xlu1 %15300, %v8937_v46   ;;  %v10093_v46 = vld [vmem:[%s18652_s26 + $0x160] sm:$0xff] }
  0xad   : > { %8978 = vperm.xlu0 %15299, %v8938_v47   ;;  %v10094_v47 = vld [vmem:[%s18652_s26 + $0x168] sm:$0xff] }
  0xb0   : > { %8983 = vperm.xlu1 %15300, %v8939_v51   ;;  %v10164_v51 = vld [vmem:[%s18610_s5 + $0x28] sm:$0xff] }
  0xb1   : > { %8988 = vperm.xlu0 %15299, %v8940_v52  }
  0xb4   : > { %8993 = vperm.xlu1 %15300, %v8941_v55  }
  0xb5   : > { %8998 = vperm.xlu0 %15299, %v8942_v56   ;;  %v10197_v56 = vld [vmem:[%s18610_s5 + $0x30] sm:$0xff] }
  0xb8   : > { %9003 = vperm.xlu1 %15300, %v8943_v59   ;;  %v1594_v59 = vpop.permute.xlu1 %1593 }
  0xb9   : > { %9008 = vperm.xlu0 %15299, %v8944_v60   ;;  %v1584_v60 = vpop.permute.xlu0 %1583 }
  0xbc   : > { %9013 = vperm.xlu1 %15300, %v8945_v63  }
  0xbd   : > { %9884 = vperm.xlu0 %15299, %v9876_v0  }
  0xc0   : > { %9889 = vperm.xlu1 %15300, %v9877_v3  }
  0xc1   : > { %9894 = vperm.xlu0 %15299, %v9878_v4  }
  0xc4   : > { %9899 = vperm.xlu1 %15300, %v9879_v9  }
  0xc5   : > { %9904 = vperm.xlu0 %15299, %v9880_v11  }
  0xf9   : > { %v12054_v14 = vpop.f32.mrb[0].mxu0  ;;  %v12152_v15 = vpop.f32.mrb[0].mxu1 }
  0xfa   : > { %v694_v16 = vpop.f32.mrb[1].mxu0  ;;  %v1310_v17 = vpop.f32.mrb[1].mxu1 }
  0xfb   : > { %v14121_v18 = vpack.c.bf16 %v12054_v14, %v694_v16  ;;  %v15758_v19 = vpack.c.bf16 %v12152_v15, %v1310_v17  ;;  %v9881_v14 = vld [vmem:[%s18623_s18 + $0x28] sm:$0xff]  ;;  %v10039_v16 = vld [vmem:[%s18652_s26 + $0xf0] sm:$0xff]  ;;  %v10040_v17 = vld [vmem:[%s18652_s26 + $0xf8] sm:$0xff] }
  0xfc   : > { %v10038_v15 = vld [vmem:[%s18652_s26 + $0xe8] sm:$0xff]  ;;  %9909 = vperm.xlu1 %15300, %v9881_v14  }
  0xfd   : > { %v12057_v22 = vpop.f32.mrb[2].mxu0  ;;  %v12155_v23 = vpop.f32.mrb[2].mxu1 }
  0xfe   : > { %v704_v24 = vpop.f32.mrb[3].mxu0  ;;  %v1320_v25 = vpop.f32.mrb[3].mxu1 }
  0xff   : > { %v14125_v26 = vpack.c.bf16 %v12057_v22, %v704_v24  ;;  %v15766_v27 = vpack.c.bf16 %v12155_v23, %v1320_v25  ;;  %v726_v22 = vld [vmem:[%s18652_s26 + $0x18] sm:$0xff]  ;;  %v727_v23 = vld [vmem:[%s18652_s26 + $0x20] sm:$0xff]  ;;  %v729_v24 = vld [vmem:[%s18652_s26 + $0x30] sm:$0xff] }
 0x100   : > { %v730_v25 = vld [vmem:[%s18652_s26 + $0x38] sm:$0xff] }
 0x101   : > { %v12060_v30 = vpop.f32.mrb[4].mxu0  ;;  %v12158_v31 = vpop.f32.mrb[4].mxu1 }
 0x102   : > { %v714_v32 = vpop.f32.mrb[5].mxu0  ;;  %v1330_v33 = vpop.f32.mrb[5].mxu1 }
 0x103   : > { %v14129_v34 = vpack.c.bf16 %v12060_v30, %v714_v32  ;;  %v15774_v35 = vpack.c.bf16 %v12158_v31, %v1330_v33  ;;  %v735_v30 = vld [vmem:[%s18652_s26 + $0x60] sm:$0xff]  ;;  %v736_v31 = vld [vmem:[%s18652_s26 + $0x68] sm:$0xff]  ;;  %v737_v32 = vld [vmem:[%s18652_s26 + $0x70] sm:$0xff] }
 0x104   : > { %v738_v33 = vld [vmem:[%s18652_s26 + $0x78] sm:$0xff] }
 0x105   : > { %v12067_v38 = vpop.f32.mrb[6].mxu0 }
 0x106   : > { %v808_v39 = vpop.f32.mrb[7].mxu0 }
 0x107   : > { %v14109_v40 = vpack.c.bf16 %v12067_v38, %v808_v39  ;;  %v10085_v38 = vld [vmem:[%s18652_s26 + $0x120] sm:$0xff]  ;;  %v10086_v39 = vld [vmem:[%s18652_s26 + $0x128] sm:$0xff] }
 0x109   : > { %v12070_v43 = vpop.f32.mrb[8].mxu0  ;;  %14110 = vmatprep.subr.bf16.mxu0 %v14109_v40 }
 0x10a   : > { %v818_v44 = vpop.f32.mrb[9].mxu0  ;;  %14112 = vmatpush3.bf16.msra.mxu0 %v14109_v40  ;;  %v10087_v40 = vld [vmem:[%s18652_s26 + $0x130] sm:$0xff] }
 0x10b   : > { %v14113_v45 = vpack.c.bf16 %v12070_v43, %v818_v44  ;;  %v10090_v43 = vld [vmem:[%s18652_s26 + $0x148] sm:$0xff]  ;;  %v10091_v44 = vld [vmem:[%s18652_s26 + $0x150] sm:$0xff] }
 0x10d   : > { %v12073_v48 = vpop.f32.mrb[10].mxu0  ;;  %14114 = vmatprep.subr.bf16.mxu0 %v14113_v45 }
 0x10e   : > { %v828_v49 = vpop.f32.mrb[11].mxu0  ;;  %14116 = vmatpush3.bf16.msra.mxu0 %v14113_v45  ;;  %v10092_v45 = vld [vmem:[%s18652_s26 + $0x158] sm:$0xff] }
 0x10f   : > { %v14117_v50 = vpack.c.bf16 %v12073_v48, %v828_v49  ;;  %v10095_v48 = vld [vmem:[%s18652_s26 + $0x170] sm:$0xff]  ;;  %v10096_v49 = vld [vmem:[%s18652_s26 + $0x178] sm:$0xff] }
 0x111   : > { %14118 = vmatprep.subr.bf16.mxu0 %v14117_v50 }
 0x112   : > { %14120 = vmatpush3.bf16.msra.mxu0 %v14117_v50  ;;  %v10163_v50 = vld [vmem:[%s18610_s5 + $0x20] sm:$0xff] }
 0x113   : > { %14122 = vmatprep.subr.bf16.mxu0 %v14121_v18  ;;  %v14221_v52 = vpack.c.bf16 %v10164_v51, %v10163_v50 }
 0x115   : > { %12087 = vmatmul.mubr.msk.f32.vlgmr.msra.gmra.mrb[12].mxu0 %vm854_vm1, %v10026_v53  ;;  %v10129_v53 = vld [vmem:[%s18610_s5 + $0x10] sm:$0xff] }
 0x116   : > { %14124 = vmatpush3.bf16.msra.mxu0 %v14121_v18  ;;  %12089 = vmatprep.mubr.msk.f32.mxu0 %vm854_vm1, %v10027_v54  ;;  %v723_v18 = vld [vmem:[%s18652_s26] sm:$0xff]  ;;  %v10130_v54 = vld [vmem:[%s18610_s5 + $0x18] sm:$0xff] }
 0x117   : > { %14126 = vmatprep.subr.bf16.mxu0 %v14125_v26  ;;  %v14153_v55 = vpack.c.bf16 %v10130_v54, %v10129_v53 }
 0x119   : > { %12090 = vmatmul.mubr.msk.f32.gmra.mrb[14].mxu0 %vm854_vm1, %v10028_v57  ;;  %14154 = vmatprep.subr.bf16.mxu1 %v14153_v55  ;;  %v10198_v57 = vld [vmem:[%s18610_s5 + $0x38] sm:$0xff] }
 0x11a   : > { %14128 = vmatpush3.bf16.msra.mxu0 %v14125_v26  ;;  %12092 = vmatprep.mubr.msk.f32.mxu0 %vm854_vm1, %v10029_v58  ;;  %v731_v26 = vld [vmem:[%s18652_s26 + $0x40] sm:$0xff]  ;;  %v14257_v58 = vpack.c.bf16 %v10198_v57, %v10197_v56 }
 0x11b   : > { %14130 = vmatprep.subr.bf16.mxu0 %v14129_v34 }
 0x11d   : > { %12093 = vmatmul.mubr.msk.f32.gmra.mrb[16].mxu0 %vm854_vm1, %v10030_v61  ;;  %v1599_v61 = vpop.permute.xlu1 %1598 }
 0x11e   : > { %14132 = vmatpush3.bf16.msra.mxu0 %v14129_v34  ;;  %12095 = vmatprep.mubr.msk.f32.mxu0 %vm854_vm1, %v10031_v62  ;;  %v10081_v34 = vld [vmem:[%s18652_s26 + $0x100] sm:$0xff]  ;;  %v1589_v62 = vpop.permute.xlu0 %1588 }
 0x11f   : > { %14138 = vmatprep.subr.bf16.mxu0 %v15758_v19 }
 0x121   : > { %12096 = vmatmul.mubr.msk.f32.gmra.mrb[18].mxu0 %vm854_vm1, %v10032_v1  ;;  %v1609_v63 = vpop.permute.xlu1 %1608 }
 0x122   : > { %12098 = vmatprep.mubr.msk.f32.mxu0 %vm854_vm1, %v10033_v2  ;;  %v1604_v0 = vpop.permute.xlu0 %1603 }
 0x125   : > { %12099 = vmatmul.mubr.msk.f32.gmra.mrb[20].mxu0 %vm854_vm1, %v10034_v5  ;;  %v10231_v5 = vld [vmem:[%s18610_s5 + $0x40] sm:$0xff]  ;;  %v1619_v7 = vpop.permute.xlu1 %1618 }
 0x126   : > { %12101 = vmatprep.mubr.msk.f32.mxu0 %vm854_vm1, %v10035_v6  ;;  %v10232_v6 = vld [vmem:[%s18610_s5 + $0x48] sm:$0xff]  ;;  %v1614_v10 = vpop.permute.xlu0 %1613 }
 0x127   : > { %v16061_v14 = vpack.c.bf16 %v10232_v6, %v10231_v5 }
 0x129   : > { %12102 = vmatmul.mubr.msk.f32.gmra.mrb[22].mxu0 %vm854_vm1, %v10036_v12 }
 0x12a   : > { %12104 = vmatprep.mubr.msk.f32.mxu0 %vm854_vm1, %v10037_v13 }
 0x12d   : > { %12105 = vmatmul.mubr.msk.f32.gmra.mrb[24].mxu0 %vm854_vm1, %v10038_v15 }
 0x12e   : > { %12107 = vmatprep.mubr.msk.f32.mxu0 %vm854_vm1, %v10039_v16 }
 0x131   : > { %12108 = vmatmul.mubr.msk.f32.gmra.mrb[26].mxu0 %vm854_vm1, %v10040_v17 }
 0x132   : > { %12122 = vmatprep.mubr.msk.f32.mxu0 %vm854_vm1, %v723_v18 }
 0x135   : > { %12123 = vmatmul.mubr.msk.f32.vlgmr.msra.gmra.mrb[12].mxu0 %vm854_vm1, %v724_v20 }
 0x136   : > { %14140 = vmatpush3.bf16.msra.mxu0 %v15758_v19  ;;  %12125 = vmatprep.mubr.msk.f32.mxu0 %vm854_vm1, %v725_v21  ;;  %v728_v19 = vld [vmem:[%s18652_s26 + $0x28] sm:$0xff] }
 0x137   : > { %14142 = vmatprep.subr.bf16.mxu0 %v15766_v27 }
 0x139   : > { %12126 = vmatmul.mubr.msk.f32.gmra.mrb[14].mxu0 %vm854_vm1, %v726_v22  ;;  %v1629_v22 = vpop.permute.xlu1 %1628 }
 0x13a   : > { %12128 = vmatprep.mubr.msk.f32.mxu0 %vm854_vm1, %v727_v23  ;;  %14144 = vmatpush3.bf16.msra.mxu0 %v15766_v27  ;;  %v732_v27 = vld [vmem:[%s18652_s26 + $0x48] sm:$0xff] }
 0x13b   : > { %14146 = vmatprep.subr.bf16.mxu0 %v15774_v35 }
 0x13d   : > { %12129 = vmatmul.mubr.msk.f32.gmra.mrb[16].mxu0 %vm854_vm1, %v728_v19  ;;  %v1624_v19 = vpop.permute.xlu0 %1623 }
 0x13e   : > { %12131 = vmatprep.mubr.msk.f32.mxu0 %vm854_vm1, %v729_v24  ;;  %14148 = vmatpush3.bf16.msra.mxu0 %v15774_v35  ;;  %v10082_v35 = vld [vmem:[%s18652_s26 + $0x108] sm:$0xff] }
 0x13f   : > { %14222 = vmatprep.subr.bf16.mxu0 %v14221_v52 }
 0x141   : > { %12132 = vmatmul.mubr.msk.f32.gmra.mrb[18].mxu0 %vm854_vm1, %v730_v25 }
 0x142   : > { %12134 = vmatprep.mubr.msk.f32.mxu0 %vm854_vm1, %v731_v26 }
 0x145   : > { %12135 = vmatmul.mubr.msk.f32.gmra.mrb[20].mxu0 %vm854_vm1, %v732_v27 }
 0x146   : > { %12137 = vmatprep.mubr.msk.f32.mxu0 %vm854_vm1, %v733_v28 }
 0x149   : > { %12138 = vmatmul.mubr.msk.f32.gmra.mrb[22].mxu0 %vm854_vm1, %v734_v29 }
 0x14a   : > { %12140 = vmatprep.mubr.msk.f32.mxu0 %vm854_vm1, %v735_v30  ;;  %v1639_v30 = vpop.permute.xlu1 %1638 }
 0x14d   : > { %12141 = vmatmul.mubr.msk.f32.gmra.mrb[24].mxu0 %vm854_vm1, %v736_v31 }
 0x14e   : > { %12143 = vmatprep.mubr.msk.f32.mxu0 %vm854_vm1, %v737_v32 }
 0x151   : > { %12144 = vmatmul.mubr.msk.f32.gmra.mrb[26].mxu0 %vm854_vm1, %v738_v33  ;;  %v1634_v33 = vpop.permute.xlu0 %1633 }
 0x152   : > { %12171 = vmatprep.mubr.msk.f32.mxu0 %vm854_vm1, %v10081_v34 }
 0x155   : > { %12172 = vmatmul.mubr.msk.f32.vlgmr.msra.gmra.mrb[12].mxu0 %vm854_vm1, %v10082_v35 }
 0x156   : > { %12174 = vmatprep.mubr.msk.f32.mxu0 %vm854_vm1, %v10083_v36  ;;  %14224 = vmatpush3.bf16.msra.mxu0 %v14221_v52 }
 0x157   : > { %14258 = vmatprep.subr.bf16.mxu0 %v14257_v58 }
 0x159   : > { %12175 = vmatmul.mubr.msk.f32.gmra.mrb[14].mxu0 %vm854_vm1, %v10084_v37 }
 0x15a   : > { %12177 = vmatprep.mubr.msk.f32.mxu0 %vm854_vm1, %v10085_v38 }
 0x15d   : > { %12178 = vmatmul.mubr.msk.f32.gmra.mrb[16].mxu0 %vm854_vm1, %v10086_v39 }
 0x15e   : > { %12180 = vmatprep.mubr.msk.f32.mxu0 %vm854_vm1, %v10087_v40 }
 0x161   : > { %12181 = vmatmul.mubr.msk.f32.gmra.mrb[18].mxu0 %vm854_vm1, %v10088_v41 }
 0x162   : > { %12183 = vmatprep.mubr.msk.f32.mxu0 %vm854_vm1, %v10089_v42 }
 0x165   : > { %12184 = vmatmul.mubr.msk.f32.gmra.mrb[20].mxu0 %vm854_vm1, %v10090_v43  ;;  %v1649_v43 = vpop.permute.xlu1 %1648 }
 0x166   : > { %12186 = vmatprep.mubr.msk.f32.mxu0 %vm854_vm1, %v10091_v44 }
 0x169   : > { %12187 = vmatmul.mubr.msk.f32.gmra.mrb[22].mxu0 %vm854_vm1, %v10092_v45  ;;  %v1644_v45 = vpop.permute.xlu0 %1643  ;;  %v1659_v52 = vpop.permute.xlu1 %1658 }
 0x16a   : > { %12189 = vmatprep.mubr.msk.f32.mxu0 %vm854_vm1, %v10093_v46 }
 0x16d   : > { %12190 = vmatmul.mubr.msk.f32.gmra.mrb[24].mxu0 %vm854_vm1, %v10094_v47 }
 0x16e   : > { %12192 = vmatprep.mubr.msk.f32.mxu0 %vm854_vm1, %v10095_v48 }
 0x171   : > { %12193 = vmatmul.mubr.msk.f32.gmra.mrb[26].mxu0 %vm854_vm1, %v10096_v49 }
 0x228   : > { %v12173_v1 = vpop.f32.mrb[12].mxu0 }
 0x229   : > { %v1662_v2 = vadd.f32 %v12173_v1, %v1589_v62  ;;  %v1470_v3 = vpop.f32.mrb[13].mxu0  ;;  %v10147_v62 = vld [vmem:[%s18653_s4 + $0x80] sm:$0xff] }
 0x22a   : > { %v1661_v4 = vadd.f32 %v1584_v60, %v1470_v3 }
 0x22b   : > { %v16059_v11 = vmax.f32 %v1662_v2, 0.0 }
 0x22c   : > { %v16057_v8 = vmax.f32 %v1661_v4, 0.0  ;;  %v12176_v9 = vpop.f32.mrb[14].mxu0 }
 0x22d   : > { %v1664_v12 = vadd.f32 %v12176_v9, %v1599_v61  ;;  %v1480_v13 = vpop.f32.mrb[15].mxu0 }
 0x22e   : > { %v1663_v15 = vadd.f32 %v1594_v59, %v1480_v13  ;;  %12199 = vmatprep.mubr.msk.f32.mxu1 %vm609_vm0, %v16057_v8  ;;  %12367 = vmatprep.mubr.msk.f32.mxu0 %vm609_vm0, %v16057_v8 }
 0x22f   : > { %12200 = vmatmul.mubr.msk.f32.vlgmr.msra.gmra.mrb[6].mxu1 %vm609_vm0, %v16059_v11  ;;  %12368 = vmatmul.mubr.msk.f32.vlgmr.msra.gmra.mrb[28].mxu0 %vm609_vm0, %v16059_v11  ;;  %v16073_v18 = vmax.f32 %v1664_v12, 0.0 }
 0x230   : > { %v16071_v16 = vmax.f32 %v1663_v15, 0.0  ;;  %v12179_v17 = vpop.f32.mrb[16].mxu0  ;;  %14156 = vmatpush3.bf16.msra.mxu1 %v14153_v55  ;;  %14260 = vmatpush3.bf16.msra.mxu0 %v14257_v58  ;;  %v1654_v55 = vpop.permute.xlu0 %1653 }
 0x231   : > { %v1666_v20 = vadd.f32 %v12179_v17, %v1609_v63  ;;  %v1490_v21 = vpop.f32.mrb[17].mxu0  ;;  %14294 = vmatprep.subr.bf16.mxu0 %v16061_v14 }
 0x232   : > { %v1665_v23 = vadd.f32 %v1604_v0, %v1490_v21  ;;  %12202 = vmatprep.mubr.msk.f32.mxu1 %vm609_vm0, %v16071_v16  ;;  %12370 = vmatprep.mubr.msk.f32.mxu0 %vm609_vm0, %v16071_v16 }
 0x233   : > { %12203 = vmatmul.mubr.msk.f32.gmra.mrb[8].mxu1 %vm609_vm0, %v16073_v18  ;;  %12371 = vmatmul.mubr.msk.f32.gmra.mrb[30].mxu0 %vm609_vm0, %v16073_v18  ;;  %v16086_v26 = vmax.f32 %v1666_v20, 0.0 }
 0x234   : > { %v16084_v24 = vmax.f32 %v1665_v23, 0.0  ;;  %v12182_v25 = vpop.f32.mrb[18].mxu0 }
 0x235   : > { %v1668_v27 = vadd.f32 %v12182_v25, %v1619_v7  ;;  %v1500_v28 = vpop.f32.mrb[19].mxu0 }
 0x236   : > { %v1667_v29 = vadd.f32 %v1614_v10, %v1500_v28  ;;  %12205 = vmatprep.mubr.msk.f32.mxu1 %vm609_vm0, %v16084_v24  ;;  %12373 = vmatprep.mubr.msk.f32.mxu0 %vm609_vm0, %v16084_v24 }
 0x237   : > { %12206 = vmatmul.mubr.msk.f32.gmra.mrb[10].mxu1 %vm609_vm0, %v16086_v26  ;;  %12374 = vmatmul.mubr.msk.f32.gmra.mrb[32].mxu0 %vm609_vm0, %v16086_v26  ;;  %v16098_v34 = vmax.f32 %v1668_v27, 0.0 }
 0x238   : > { %v16096_v31 = vmax.f32 %v1667_v29, 0.0  ;;  %v12185_v32 = vpop.f32.mrb[20].mxu0 }
 0x239   : > { %v1670_v35 = vadd.f32 %v12185_v32, %v1629_v22  ;;  %v1510_v36 = vpop.f32.mrb[21].mxu0 }
 0x23a   : > { %v1669_v37 = vadd.f32 %v1624_v19, %v1510_v36  ;;  %12208 = vmatprep.mubr.msk.f32.mxu1 %vm609_vm0, %v16096_v31  ;;  %12376 = vmatprep.mubr.msk.f32.mxu0 %vm609_vm0, %v16096_v31 }
 0x23b   : > { %12209 = vmatmul.mubr.msk.f32.gmra.mrb[12].mxu1 %vm609_vm0, %v16098_v34  ;;  %12377 = vmatmul.mubr.msk.f32.gmra.mrb[34].mxu0 %vm609_vm0, %v16098_v34  ;;  %v16110_v40 = vmax.f32 %v1670_v35, 0.0 }
 0x23c   : > { %v16108_v38 = vmax.f32 %v1669_v37, 0.0  ;;  %v12188_v39 = vpop.f32.mrb[22].mxu0 }
 0x23d   : > { %v1672_v41 = vadd.f32 %v12188_v39, %v1639_v30  ;;  %v1520_v42 = vpop.f32.mrb[23].mxu0 }
 0x23e   : > { %v1671_v44 = vadd.f32 %v1634_v33, %v1520_v42  ;;  %12211 = vmatprep.mubr.msk.f32.mxu1 %vm609_vm0, %v16108_v38  ;;  %12379 = vmatprep.mubr.msk.f32.mxu0 %vm609_vm0, %v16108_v38 }
 0x23f   : > { %12212 = vmatmul.mubr.msk.f32.gmra.mrb[14].mxu1 %vm609_vm0, %v16110_v40  ;;  %12380 = vmatmul.mubr.msk.f32.gmra.mrb[36].mxu0 %vm609_vm0, %v16110_v40  ;;  %v16122_v48 = vmax.f32 %v1672_v41, 0.0 }
 0x240   : > { %v16120_v46 = vmax.f32 %v1671_v44, 0.0  ;;  %v12191_v47 = vpop.f32.mrb[24].mxu0 }
 0x241   : > { %v1674_v49 = vadd.f32 %v12191_v47, %v1649_v43  ;;  %v1530_v50 = vpop.f32.mrb[25].mxu0 }
 0x242   : > { %v1673_v51 = vadd.f32 %v1644_v45, %v1530_v50  ;;  %12214 = vmatprep.mubr.msk.f32.mxu1 %vm609_vm0, %v16120_v46  ;;  %12382 = vmatprep.mubr.msk.f32.mxu0 %vm609_vm0, %v16120_v46 }
 0x243   : > { %12215 = vmatmul.mubr.msk.f32.gmra.mrb[16].mxu1 %vm609_vm0, %v16122_v48  ;;  %12383 = vmatmul.mubr.msk.f32.gmra.mrb[38].mxu0 %vm609_vm0, %v16122_v48  ;;  %v1690_v56 = vmax.f32 %v1674_v49, 0.0 }
 0x244   : > { %v1689_v53 = vmax.f32 %v1673_v51, 0.0  ;;  %v12194_v54 = vpop.f32.mrb[26].mxu0 }
 0x245   : > { %v1676_v57 = vadd.f32 %v12194_v54, %v1659_v52  ;;  %v1540_v58 = vpop.f32.mrb[27].mxu0 }
 0x246   : > { %v1675_v59 = vadd.f32 %v1654_v55, %v1540_v58  ;;  %12217 = vmatprep.mubr.msk.f32.mxu1 %vm609_vm0, %v1689_v53  ;;  %12385 = vmatprep.mubr.msk.f32.mxu0 %vm609_vm0, %v1689_v53 }
 0x247   : > { %12218 = vmatmul.mubr.msk.f32.gmra.mrb[18].mxu1 %vm609_vm0, %v1690_v56  ;;  %12386 = vmatmul.mubr.msk.f32.gmra.mrb[40].mxu0 %vm609_vm0, %v1690_v56  ;;  %v1692_v61 = vmax.f32 %v1676_v57, 0.0 }
 0x248   : > { %v1691_v60 = vmax.f32 %v1675_v59, 0.0 }
 0x24a   : > { %12220 = vmatprep.mubr.msk.f32.mxu1 %vm609_vm0, %v1691_v60  ;;  %12388 = vmatprep.mubr.msk.f32.mxu0 %vm609_vm0, %v1691_v60 }
 0x24b   : > { %12221 = vmatmul.mubr.msk.f32.gmra.mrb[20].mxu1 %vm609_vm0, %v1692_v61  ;;  %12389 = vmatmul.mubr.msk.f32.gmra.mrb[42].mxu0 %vm609_vm0, %v1692_v61 }
 0x24c   : > { %12227 = vmatprep.mubr.msk.f32.mxu1 %vm609_vm0, %v16057_v8  ;;  %12451 = vmatprep.mubr.msk.f32.mxu0 %vm609_vm0, %v16057_v8 }
 0x24f   : > { %12228 = vmatmul.mubr.msk.f32.vlgmr.msra.gmra.mrb[22].mxu1 %vm609_vm0, %v16059_v11  ;;  %12452 = vmatmul.mubr.msk.f32.vlgmr.msra.gmra.mrb[44].mxu0 %vm609_vm0, %v16059_v11 }
 0x250   : > { %12230 = vmatprep.mubr.msk.f32.mxu1 %vm609_vm0, %v16071_v16  ;;  %12454 = vmatprep.mubr.msk.f32.mxu0 %vm609_vm0, %v16071_v16 }
 0x251   : > { %14296 = vmatpush3.bf16.msra.mxu0 %v16061_v14 }
 0x253   : > { %12231 = vmatmul.mubr.msk.f32.gmra.mrb[24].mxu1 %vm609_vm0, %v16073_v18  ;;  %12455 = vmatmul.mubr.msk.f32.gmra.mrb[46].mxu0 %vm609_vm0, %v16073_v18 }
 0x254   : > { %12233 = vmatprep.mubr.msk.f32.mxu1 %vm609_vm0, %v16084_v24  ;;  %12457 = vmatprep.mubr.msk.f32.mxu0 %vm609_vm0, %v16084_v24 }
 0x257   : > { %12234 = vmatmul.mubr.msk.f32.gmra.mrb[26].mxu1 %vm609_vm0, %v16086_v26  ;;  %12458 = vmatmul.mubr.msk.f32.gmra.mrb[48].mxu0 %vm609_vm0, %v16086_v26 }
 0x258   : > { %12236 = vmatprep.mubr.msk.f32.mxu1 %vm609_vm0, %v16096_v31  ;;  %12460 = vmatprep.mubr.msk.f32.mxu0 %vm609_vm0, %v16096_v31 }
 0x25b   : > { %12237 = vmatmul.mubr.msk.f32.gmra.mrb[28].mxu1 %vm609_vm0, %v16098_v34  ;;  %12461 = vmatmul.mubr.msk.f32.gmra.mrb[50].mxu0 %vm609_vm0, %v16098_v34 }
 0x25c   : > { %12239 = vmatprep.mubr.msk.f32.mxu1 %vm609_vm0, %v16108_v38  ;;  %12463 = vmatprep.mubr.msk.f32.mxu0 %vm609_vm0, %v16108_v38 }
 0x25f   : > { %12240 = vmatmul.mubr.msk.f32.gmra.mrb[30].mxu1 %vm609_vm0, %v16110_v40  ;;  %12464 = vmatmul.mubr.msk.f32.gmra.mrb[52].mxu0 %vm609_vm0, %v16110_v40 }
 0x260   : > { %12242 = vmatprep.mubr.msk.f32.mxu1 %vm609_vm0, %v16120_v46  ;;  %12466 = vmatprep.mubr.msk.f32.mxu0 %vm609_vm0, %v16120_v46 }
 0x263   : > { %12243 = vmatmul.mubr.msk.f32.gmra.mrb[32].mxu1 %vm609_vm0, %v16122_v48  ;;  %12467 = vmatmul.mubr.msk.f32.gmra.mrb[54].mxu0 %vm609_vm0, %v16122_v48 }
 0x264   : > { %12245 = vmatprep.mubr.msk.f32.mxu1 %vm609_vm0, %v1689_v53  ;;  %12469 = vmatprep.mubr.msk.f32.mxu0 %vm609_vm0, %v1689_v53 }
 0x267   : > { %12246 = vmatmul.mubr.msk.f32.gmra.mrb[34].mxu1 %vm609_vm0, %v1690_v56  ;;  %12470 = vmatmul.mubr.msk.f32.gmra.mrb[56].mxu0 %vm609_vm0, %v1690_v56 }
 0x268   : > { %12248 = vmatprep.mubr.msk.f32.mxu1 %vm609_vm0, %v1691_v60  ;;  %12472 = vmatprep.mubr.msk.f32.mxu0 %vm609_vm0, %v1691_v60 }
 0x26b   : > { %12249 = vmatmul.mubr.msk.f32.gmra.mrb[36].mxu1 %vm609_vm0, %v1692_v61  ;;  %12473 = vmatmul.mubr.msk.f32.gmra.mrb[58].mxu0 %vm609_vm0, %v1692_v61 }
 0x26c   : > { %12535 = vmatprep.mubr.msk.f32.mxu0 %vm609_vm0, %v16057_v8  ;;  %12283 = vmatprep.mubr.f32.mxu1 %v10147_v62 }
 0x26f   : > { %12536 = vmatmul.mubr.msk.f32.vlgmr.msra.gmra.mrb[60].mxu0 %vm609_vm0, %v16059_v11 }
 0x270   : > { %12538 = vmatprep.mubr.msk.f32.mxu0 %vm609_vm0, %v16071_v16 }
 0x273   : > { %12539 = vmatmul.mubr.msk.f32.gmra.mrb[62].mxu0 %vm609_vm0, %v16073_v18 }
 0x274   : > { %12541 = vmatprep.mubr.msk.f32.mxu0 %vm609_vm0, %v16084_v24 }
 0x277   : > { %12542 = vmatmul.mubr.msk.f32.gmra.mrb[64].mxu0 %vm609_vm0, %v16086_v26 }
 0x278   : > { %12544 = vmatprep.mubr.msk.f32.mxu0 %vm609_vm0, %v16096_v31 }
 0x27b   : > { %12545 = vmatmul.mubr.msk.f32.gmra.mrb[66].mxu0 %vm609_vm0, %v16098_v34 }
 0x27c   : > { %12547 = vmatprep.mubr.msk.f32.mxu0 %vm609_vm0, %v16108_v38 }
 0x27f   : > { %12548 = vmatmul.mubr.msk.f32.gmra.mrb[68].mxu0 %vm609_vm0, %v16110_v40 }
 0x280   : > { %12550 = vmatprep.mubr.msk.f32.mxu0 %vm609_vm0, %v16120_v46 }
 0x283   : > { %12551 = vmatmul.mubr.msk.f32.gmra.mrb[70].mxu0 %vm609_vm0, %v16122_v48 }
 0x284   : > { %12553 = vmatprep.mubr.msk.f32.mxu0 %vm609_vm0, %v1689_v53 }
 0x287   : > { %12554 = vmatmul.mubr.msk.f32.gmra.mrb[72].mxu0 %vm609_vm0, %v1690_v56 }
 0x288   : > { %12556 = vmatprep.mubr.msk.f32.mxu0 %vm609_vm0, %v1691_v60 }
 0x28b   : > { %12557 = vmatmul.mubr.msk.f32.gmra.mrb[74].mxu0 %vm609_vm0, %v1692_v61 }
 0x302   : > { %v12201_v63 = vpop.f32.mrb[6].mxu1  ;;  %v12369_v0 = vpop.f32.mrb[28].mxu0 }
 0x303   : > { %v1809_v1 = vpop.f32.mrb[7].mxu1  ;;  %v2428_v2 = vpop.f32.mrb[29].mxu0 }
 0x304   : > { %v16228_v3 = vpack.c.bf16 %v12201_v63, %v1809_v1  ;;  %v16230_v4 = vpack.c.bf16 %v12369_v0, %v2428_v2 }
 0x306   : > { %v12204_v5 = vpop.f32.mrb[8].mxu1  ;;  %v12372_v6 = vpop.f32.mrb[30].mxu0 }
 0x307   : > { %v1819_v7 = vpop.f32.mrb[9].mxu1  ;;  %v2438_v8 = vpop.f32.mrb[31].mxu0 }
 0x308   : > { %v16232_v9 = vpack.c.bf16 %v12204_v5, %v1819_v7  ;;  %v16234_v10 = vpack.c.bf16 %v12372_v6, %v2438_v8 }
 0x30a   : > { %v12207_v11 = vpop.f32.mrb[10].mxu1  ;;  %v12375_v12 = vpop.f32.mrb[32].mxu0 }
 0x30b   : > { %v1829_v13 = vpop.f32.mrb[11].mxu1  ;;  %v2448_v14 = vpop.f32.mrb[33].mxu0 }
 0x30c   : > { %v16236_v15 = vpack.c.bf16 %v12207_v11, %v1829_v13  ;;  %v16238_v16 = vpack.c.bf16 %v12375_v12, %v2448_v14 }
 0x30e   : > { %v12210_v17 = vpop.f32.mrb[12].mxu1  ;;  %v12378_v18 = vpop.f32.mrb[34].mxu0 }
 0x30f   : > { %v1839_v20 = vpop.f32.mrb[13].mxu1  ;;  %v2458_v21 = vpop.f32.mrb[35].mxu0 }
 0x310   : > { %v16240_v22 = vpack.c.bf16 %v12210_v17, %v1839_v20  ;;  %v16242_v23 = vpack.c.bf16 %v12378_v18, %v2458_v21 }
 0x312   : > { %v12213_v19 = vpop.f32.mrb[14].mxu1  ;;  %v12381_v24 = vpop.f32.mrb[36].mxu0 }
 0x313   : > { %v1849_v25 = vpop.f32.mrb[15].mxu1  ;;  %v2468_v26 = vpop.f32.mrb[37].mxu0 }
 0x314   : > { %v16244_v27 = vpack.c.bf16 %v12213_v19, %v1849_v25  ;;  %v16246_v28 = vpack.c.bf16 %v12381_v24, %v2468_v26 }
 0x316   : > { %v12216_v29 = vpop.f32.mrb[16].mxu1  ;;  %v12384_v30 = vpop.f32.mrb[38].mxu0 }
 0x317   : > { %v1859_v31 = vpop.f32.mrb[17].mxu1  ;;  %v2478_v32 = vpop.f32.mrb[39].mxu0 }
 0x318   : > { %v16248_v33 = vpack.c.bf16 %v12216_v29, %v1859_v31  ;;  %v16250_v34 = vpack.c.bf16 %v12384_v30, %v2478_v32 }
 0x31a   : > { %v12219_v35 = vpop.f32.mrb[18].mxu1  ;;  %v12387_v36 = vpop.f32.mrb[40].mxu0 }
 0x31b   : > { %v1869_v37 = vpop.f32.mrb[19].mxu1  ;;  %v2488_v38 = vpop.f32.mrb[41].mxu0 }
 0x31c   : > { %v16252_v39 = vpack.c.bf16 %v12219_v35, %v1869_v37  ;;  %v16254_v40 = vpack.c.bf16 %v12387_v36, %v2488_v38 }
 0x31e   : > { %v12222_v41 = vpop.f32.mrb[20].mxu1  ;;  %v12390_v42 = vpop.f32.mrb[42].mxu0 }
 0x31f   : > { %v1879_v43 = vpop.f32.mrb[21].mxu1  ;;  %v2498_v44 = vpop.f32.mrb[43].mxu0 }
 0x320   : > { %v16256_v45 = vpack.c.bf16 %v12222_v41, %v1879_v43  ;;  %v16258_v46 = vpack.c.bf16 %v12390_v42, %v2498_v44 }
 0x322   : > { %v12229_v47 = vpop.f32.mrb[22].mxu1  ;;  %v12453_v48 = vpop.f32.mrb[44].mxu0 }
 0x323   : > { %v1973_v49 = vpop.f32.mrb[23].mxu1  ;;  %v2754_v50 = vpop.f32.mrb[45].mxu0 }
 0x324   : > { %v14157_v51 = vpack.c.bf16 %v12229_v47, %v1973_v49  ;;  %v16260_v52 = vpack.c.bf16 %v12453_v48, %v2754_v50  ;;  %v10148_v49 = vld [vmem:[%s18653_s4 + $0x88] sm:$0xff] }
 0x326   : > { %v12232_v53 = vpop.f32.mrb[24].mxu1  ;;  %14158 = vmatprep.subr.bf16.mxu1 %v14157_v51  ;;  %v12456_v54 = vpop.f32.mrb[46].mxu0 }
 0x327   : > { %v1983_v55 = vpop.f32.mrb[25].mxu1  ;;  %14160 = vmatpush3.bf16.msra.mxu1 %v14157_v51  ;;  %v2764_v56 = vpop.f32.mrb[47].mxu0  ;;  %v10149_v51 = vld [vmem:[%s18653_s4 + $0x90] sm:$0xff] }
 0x328   : > { %v14161_v57 = vpack.c.bf16 %v12232_v53, %v1983_v55  ;;  %v16262_v58 = vpack.c.bf16 %v12456_v54, %v2764_v56  ;;  %v10150_v55 = vld [vmem:[%s18653_s4 + $0x98] sm:$0xff] }
 0x32a   : > { %v12235_v59 = vpop.f32.mrb[26].mxu1  ;;  %14162 = vmatprep.subr.bf16.mxu1 %v14161_v57  ;;  %v12459_v60 = vpop.f32.mrb[48].mxu0 }
 0x32b   : > { %v1993_v61 = vpop.f32.mrb[27].mxu1  ;;  %14164 = vmatpush3.bf16.msra.mxu1 %v14161_v57  ;;  %v2774_v62 = vpop.f32.mrb[49].mxu0  ;;  %v10151_v57 = vld [vmem:[%s18653_s4 + $0xa0] sm:$0xff] }
 0x32c   : > { %v14165_v63 = vpack.c.bf16 %v12235_v59, %v1993_v61  ;;  %v16264_v0 = vpack.c.bf16 %v12459_v60, %v2774_v62  ;;  %v10153_v62 = vld [vmem:[%s18653_s4 + $0xb0] sm:$0xff] }
 0x32e   : > { %v12238_v1 = vpop.f32.mrb[28].mxu1  ;;  %14166 = vmatprep.subr.bf16.mxu1 %v14165_v63  ;;  %v12462_v2 = vpop.f32.mrb[50].mxu0 }
 0x32f   : > { %v2003_v5 = vpop.f32.mrb[29].mxu1  ;;  %14168 = vmatpush3.bf16.msra.mxu1 %v14165_v63  ;;  %v2784_v6 = vpop.f32.mrb[51].mxu0 }
 0x330   : > { %v14169_v7 = vpack.c.bf16 %v12238_v1, %v2003_v5  ;;  %v16266_v8 = vpack.c.bf16 %v12462_v2, %v2784_v6  ;;  %v10155_v5 = vld [vmem:[%s18653_s4 + $0xc0] sm:$0xff] }
 0x332   : > { %v12241_v11 = vpop.f32.mrb[30].mxu1  ;;  %14170 = vmatprep.subr.bf16.mxu1 %v14169_v7  ;;  %v12465_v12 = vpop.f32.mrb[52].mxu0 }
 0x333   : > { %v2013_v13 = vpop.f32.mrb[31].mxu1  ;;  %14172 = vmatpush3.bf16.msra.mxu1 %v14169_v7  ;;  %v2794_v14 = vpop.f32.mrb[53].mxu0 }
 0x334   : > { %v14173_v17 = vpack.c.bf16 %v12241_v11, %v2013_v13  ;;  %v16268_v18 = vpack.c.bf16 %v12465_v12, %v2794_v14  ;;  %v10157_v12 = vld [vmem:[%s18653_s4 + $0xd0] sm:$0xff] }
 0x336   : > { %v12244_v20 = vpop.f32.mrb[32].mxu1  ;;  %14174 = vmatprep.subr.bf16.mxu1 %v14173_v17  ;;  %v12468_v21 = vpop.f32.mrb[54].mxu0 }
 0x337   : > { %v2023_v19 = vpop.f32.mrb[33].mxu1  ;;  %14176 = vmatpush3.bf16.msra.mxu1 %v14173_v17  ;;  %v2804_v24 = vpop.f32.mrb[55].mxu0 }
 0x338   : > { %v14177_v25 = vpack.c.bf16 %v12244_v20, %v2023_v19  ;;  %v16270_v26 = vpack.c.bf16 %v12468_v21, %v2804_v24  ;;  %v10159_v20 = vld [vmem:[%s18653_s4 + $0xe0] sm:$0xff] }
 0x33a   : > { %v12247_v29 = vpop.f32.mrb[34].mxu1  ;;  %14178 = vmatprep.subr.bf16.mxu1 %v14177_v25  ;;  %v12471_v30 = vpop.f32.mrb[56].mxu0 }
 0x33b   : > { %v2033_v31 = vpop.f32.mrb[35].mxu1  ;;  %14180 = vmatpush3.bf16.msra.mxu1 %v14177_v25  ;;  %v2814_v32 = vpop.f32.mrb[57].mxu0  ;;  %v10161_v25 = vld [vmem:[%s18653_s4 + $0xf0] sm:$0xff] }
 0x33c   : > { %v14181_v35 = vpack.c.bf16 %v12247_v29, %v2033_v31  ;;  %v16272_v36 = vpack.c.bf16 %v12471_v30, %v2814_v32  ;;  %v1888_v32 = vld [vmem:[%s18653_s4] sm:$0xff] }
 0x33e   : > { %v12250_v37 = vpop.f32.mrb[36].mxu1  ;;  %14182 = vmatprep.subr.bf16.mxu1 %v14181_v35  ;;  %v12474_v38 = vpop.f32.mrb[58].mxu0 }
 0x33f   : > { %v2043_v41 = vpop.f32.mrb[37].mxu1  ;;  %14184 = vmatpush3.bf16.msra.mxu1 %v14181_v35  ;;  %v2824_v42 = vpop.f32.mrb[59].mxu0  ;;  %v3465_v35 = vld [vmem:[%s18613_s8] sm:$0xff] }
 0x340   : > { %v14185_v43 = vpack.c.bf16 %v12250_v37, %v2043_v41  ;;  %v16274_v44 = vpack.c.bf16 %v12474_v38, %v2824_v42  ;;  %v1890_v37 = vld [vmem:[%s18653_s4 + $0x10] sm:$0xff]  ;;  %12615 = vmatprep.subr.mxu0 %v3465_v35  ;;  %v1892_v38 = vld [vmem:[%s18653_s4 + $0x20] sm:$0xff]  ;;  %v1893_v41 = vld [vmem:[%s18653_s4 + $0x28] sm:$0xff] }
 0x341   : > { %12616 = vmatpush3.msra.mxu0 %v3465_v35  ;;  %v1895_v42 = vld [vmem:[%s18653_s4 + $0x38] sm:$0xff]  ;;  %v10281_v35 = vld [vmem:[%s18613_s8 + $0x8] sm:$0xff] }
 0x342   : > { %14186 = vmatprep.subr.bf16.mxu1 %v14185_v43  ;;  %v12537_v47 = vpop.f32.mrb[60].mxu0  ;;  %12641 = vmatprep.subr.mxu0 %v10281_v35 }
 0x343   : > { %14188 = vmatpush3.bf16.msra.mxu1 %v14185_v43  ;;  %v3080_v48 = vpop.f32.mrb[61].mxu0  ;;  %v1897_v43 = vld [vmem:[%s18653_s4 + $0x48] sm:$0xff] }
 0x344   : > { %v16279_v50 = vpack.c.bf16 %v12537_v47, %v3080_v48  ;;  %14190 = vmatprep.subr.bf16.mxu1 %v16228_v3  ;;  %v1899_v47 = vld [vmem:[%s18653_s4 + $0x58] sm:$0xff]  ;;  %v1901_v48 = vld [vmem:[%s18653_s4 + $0x68] sm:$0xff] }
 0x346   : > { %12284 = vmatmul.mubr.f32.vlgmr.msra.gmra.mrb[38].mxu1 %v10148_v49  ;;  %v12540_v53 = vpop.f32.mrb[62].mxu0  ;;  %v1903_v49 = vld [vmem:[%s18653_s4 + $0x78] sm:$0xff] }
 0x347   : > { %14192 = vmatpush3.bf16.msra.mxu1 %v16228_v3  ;;  %v3090_v54 = vpop.f32.mrb[63].mxu0  ;;  %12286 = vmatprep.mubr.f32.mxu1 %v10149_v51  ;;  %v10152_v3 = vld [vmem:[%s18653_s4 + $0xa8] sm:$0xff] }
 0x348   : > { %v16289_v56 = vpack.c.bf16 %v12540_v53, %v3090_v54  ;;  %14194 = vmatprep.subr.bf16.mxu1 %v16232_v9  ;;  %v10182_v51 = vld [vmem:[%s18653_s4 + $0x108] sm:$0xff]  ;;  %v10184_v53 = vld [vmem:[%s18653_s4 + $0x118] sm:$0xff] }
 0x349   : > { %v10186_v54 = vld [vmem:[%s18653_s4 + $0x128] sm:$0xff] }
 0x34a   : > { %12287 = vmatmul.mubr.f32.gmra.mrb[40].mxu1 %v10150_v55  ;;  %v12543_v59 = vpop.f32.mrb[64].mxu0  ;;  %v10188_v55 = vld [vmem:[%s18653_s4 + $0x138] sm:$0xff] }
 0x34b   : > { %14196 = vmatpush3.bf16.msra.mxu1 %v16232_v9  ;;  %v3100_v60 = vpop.f32.mrb[65].mxu0  ;;  %12289 = vmatprep.mubr.f32.mxu1 %v10151_v57  ;;  %v10154_v9 = vld [vmem:[%s18653_s4 + $0xb8] sm:$0xff]  ;;  %v10190_v57 = vld [vmem:[%s18653_s4 + $0x148] sm:$0xff] }
 0x34c   : > { %v16299_v61 = vpack.c.bf16 %v12543_v59, %v3100_v60  ;;  %14198 = vmatprep.subr.bf16.mxu1 %v16236_v15  ;;  %v10192_v59 = vld [vmem:[%s18653_s4 + $0x158] sm:$0xff]  ;;  %v10194_v60 = vld [vmem:[%s18653_s4 + $0x168] sm:$0xff] }
 0x34e   : > { %12290 = vmatmul.mubr.f32.gmra.mrb[42].mxu1 %v10152_v3  ;;  %v12546_v63 = vpop.f32.mrb[66].mxu0  ;;  %v10196_v3 = vld [vmem:[%s18653_s4 + $0x178] sm:$0xff] }
 0x34f   : > { %14200 = vmatpush3.bf16.msra.mxu1 %v16236_v15  ;;  %v3110_v1 = vpop.f32.mrb[67].mxu0  ;;  %12292 = vmatprep.mubr.f32.mxu1 %v10153_v62  ;;  %v10156_v15 = vld [vmem:[%s18653_s4 + $0xc8] sm:$0xff] }
 0x350   : > { %v16309_v2 = vpack.c.bf16 %v12546_v63, %v3110_v1  ;;  %14202 = vmatprep.subr.bf16.mxu1 %v16240_v22  ;;  %v10216_v62 = vld [vmem:[%s18653_s4 + $0x188] sm:$0xff]  ;;  %v10218_v63 = vld [vmem:[%s18653_s4 + $0x198] sm:$0xff] }
 0x351   : > { %v10220_v1 = vld [vmem:[%s18653_s4 + $0x1a8] sm:$0xff] }
 0x352   : > { %12293 = vmatmul.mubr.f32.gmra.mrb[44].mxu1 %v10154_v9  ;;  %v12549_v6 = vpop.f32.mrb[68].mxu0  ;;  %v10222_v9 = vld [vmem:[%s18653_s4 + $0x1b8] sm:$0xff] }
 0x353   : > { %14204 = vmatpush3.bf16.msra.mxu1 %v16240_v22  ;;  %v3120_v7 = vpop.f32.mrb[69].mxu0  ;;  %12295 = vmatprep.mubr.f32.mxu1 %v10155_v5  ;;  %v10158_v22 = vld [vmem:[%s18653_s4 + $0xd8] sm:$0xff]  ;;  %v10224_v5 = vld [vmem:[%s18653_s4 + $0x1c8] sm:$0xff] }
 0x354   : > { %v16319_v11 = vpack.c.bf16 %v12549_v6, %v3120_v7  ;;  %14206 = vmatprep.subr.bf16.mxu1 %v16244_v27  ;;  %v10226_v6 = vld [vmem:[%s18653_s4 + $0x1d8] sm:$0xff]  ;;  %v10228_v7 = vld [vmem:[%s18653_s4 + $0x1e8] sm:$0xff] }
 0x356   : > { %12296 = vmatmul.mubr.f32.gmra.mrb[46].mxu1 %v10156_v15  ;;  %v12552_v13 = vpop.f32.mrb[70].mxu0  ;;  %v10229_v15 = vld [vmem:[%s18653_s4 + $0x1f0] sm:$0xff] }
 0x357   : > { %14208 = vmatpush3.bf16.msra.mxu1 %v16244_v27  ;;  %v3130_v14 = vpop.f32.mrb[71].mxu0  ;;  %12298 = vmatprep.mubr.f32.mxu1 %v10157_v12  ;;  %v10160_v27 = vld [vmem:[%s18653_s4 + $0xe8] sm:$0xff]  ;;  %v10249_v12 = vld [vmem:[%s18653_s4 + $0x200] sm:$0xff] }
 0x358   : > { %v16329_v17 = vpack.c.bf16 %v12552_v13, %v3130_v14  ;;  %14210 = vmatprep.subr.bf16.mxu1 %v16248_v33  ;;  %v10250_v13 = vld [vmem:[%s18653_s4 + $0x208] sm:$0xff]  ;;  %v10251_v14 = vld [vmem:[%s18653_s4 + $0x210] sm:$0xff] }
 0x35a   : > { %12299 = vmatmul.mubr.f32.gmra.mrb[48].mxu1 %v10158_v22  ;;  %v12555_v21 = vpop.f32.mrb[72].mxu0  ;;  %v10252_v22 = vld [vmem:[%s18653_s4 + $0x218] sm:$0xff] }
 0x35b   : > { %14212 = vmatpush3.bf16.msra.mxu1 %v16248_v33  ;;  %v3140_v19 = vpop.f32.mrb[73].mxu0  ;;  %12301 = vmatprep.mubr.f32.mxu1 %v10159_v20  ;;  %v10162_v33 = vld [vmem:[%s18653_s4 + $0xf8] sm:$0xff]  ;;  %v10254_v20 = vld [vmem:[%s18653_s4 + $0x228] sm:$0xff] }
 0x35c   : > { %v16339_v24 = vpack.c.bf16 %v12555_v21, %v3140_v19  ;;  %14214 = vmatprep.subr.bf16.mxu1 %v16252_v39  ;;  %v10255_v21 = vld [vmem:[%s18653_s4 + $0x230] sm:$0xff]  ;;  %v10256_v19 = vld [vmem:[%s18653_s4 + $0x238] sm:$0xff] }
 0x35e   : > { %12302 = vmatmul.mubr.f32.gmra.mrb[50].mxu1 %v10160_v27  ;;  %v12558_v29 = vpop.f32.mrb[74].mxu0  ;;  %v10257_v27 = vld [vmem:[%s18653_s4 + $0x240] sm:$0xff] }
 0x35f   : > { %14216 = vmatpush3.bf16.msra.mxu1 %v16252_v39  ;;  %v3150_v30 = vpop.f32.mrb[75].mxu0  ;;  %12304 = vmatprep.mubr.f32.mxu1 %v10161_v25  ;;  %v1889_v39 = vld [vmem:[%s18653_s4 + $0x8] sm:$0xff]  ;;  %v10259_v25 = vld [vmem:[%s18653_s4 + $0x250] sm:$0xff] }
 0x360   : > { %v16349_v31 = vpack.c.bf16 %v12558_v29, %v3150_v30  ;;  %14218 = vmatprep.subr.bf16.mxu1 %v16256_v45  ;;  %v10260_v29 = vld [vmem:[%s18653_s4 + $0x258] sm:$0xff]  ;;  %v10261_v30 = vld [vmem:[%s18653_s4 + $0x260] sm:$0xff] }
 0x362   : > { %12305 = vmatmul.mubr.f32.gmra.mrb[52].mxu1 %v10162_v33  ;;  %v10262_v33 = vld [vmem:[%s18653_s4 + $0x268] sm:$0xff] }
 0x363   : > { %14220 = vmatpush3.bf16.msra.mxu1 %v16256_v45  ;;  %12339 = vmatprep.mubr.f32.mxu1 %v1888_v32  ;;  %v1891_v45 = vld [vmem:[%s18653_s4 + $0x18] sm:$0xff] }
 0x364   : > { %14226 = vmatprep.subr.bf16.mxu1 %v16230_v4  ;;  %v10264_v32 = vld [vmem:[%s18653_s4 + $0x278] sm:$0xff] }
 0x366   : > { %12340 = vmatmul.mubr.f32.vlgmr.msra.gmra.mrb[38].mxu1 %v1889_v39  ;;  %v3361_v39 = vpop.permute.xlu1 %3360 }
 0x367   : > { %14228 = vmatpush3.bf16.msra.mxu1 %v16230_v4  ;;  %12342 = vmatprep.mubr.f32.mxu1 %v1890_v37  ;;  %v1894_v4 = vld [vmem:[%s18653_s4 + $0x30] sm:$0xff]  ;;  %v3356_v37 = vpop.permute.xlu0 %3355 }
 0x368   : > { %14230 = vmatprep.subr.bf16.mxu1 %v16234_v10 }
 0x36a   : > { %12343 = vmatmul.mubr.f32.gmra.mrb[40].mxu1 %v1891_v45  ;;  %v3371_v45 = vpop.permute.xlu1 %3370 }
 0x36b   : > { %14232 = vmatpush3.bf16.msra.mxu1 %v16234_v10  ;;  %12345 = vmatprep.mubr.f32.mxu1 %v1892_v38  ;;  %v1896_v10 = vld [vmem:[%s18653_s4 + $0x40] sm:$0xff]  ;;  %v3366_v38 = vpop.permute.xlu0 %3365 }
 0x36c   : > { %14234 = vmatprep.subr.bf16.mxu1 %v16238_v16 }
 0x36e   : > { %12346 = vmatmul.mubr.f32.gmra.mrb[42].mxu1 %v1893_v41  ;;  %v3381_v41 = vpop.permute.xlu1 %3380 }
 0x36f   : > { %14236 = vmatpush3.bf16.msra.mxu1 %v16238_v16  ;;  %12348 = vmatprep.mubr.f32.mxu1 %v1894_v4  ;;  %v1898_v16 = vld [vmem:[%s18653_s4 + $0x50] sm:$0xff]  ;;  %v3376_v4 = vpop.permute.xlu0 %3375 }
 0x370   : > { %14238 = vmatprep.subr.bf16.mxu1 %v16242_v23 }
 0x372   : > { %12349 = vmatmul.mubr.f32.gmra.mrb[44].mxu1 %v1895_v42 }
 0x373   : > { %14240 = vmatpush3.bf16.msra.mxu1 %v16242_v23  ;;  %12351 = vmatprep.mubr.f32.mxu1 %v1896_v10  ;;  %v1900_v23 = vld [vmem:[%s18653_s4 + $0x60] sm:$0xff] }
 0x374   : > { %14242 = vmatprep.subr.bf16.mxu1 %v16246_v28 }
 0x376   : > { %12352 = vmatmul.mubr.f32.gmra.mrb[46].mxu1 %v1897_v43 }
 0x377   : > { %14244 = vmatpush3.bf16.msra.mxu1 %v16246_v28  ;;  %12354 = vmatprep.mubr.f32.mxu1 %v1898_v16  ;;  %v1902_v28 = vld [vmem:[%s18653_s4 + $0x70] sm:$0xff] }
 0x378   : > { %14246 = vmatprep.subr.bf16.mxu1 %v16250_v34 }
 0x37a   : > { %12355 = vmatmul.mubr.f32.gmra.mrb[48].mxu1 %v1899_v47  ;;  %v3391_v47 = vpop.permute.xlu1 %3390 }
 0x37b   : > { %14248 = vmatpush3.bf16.msra.mxu1 %v16250_v34  ;;  %12357 = vmatprep.mubr.f32.mxu1 %v1900_v23  ;;  %v10181_v34 = vld [vmem:[%s18653_s4 + $0x100] sm:$0xff] }
 0x37c   : > { %14250 = vmatprep.subr.bf16.mxu1 %v16254_v40 }
 0x37e   : > { %12358 = vmatmul.mubr.f32.gmra.mrb[50].mxu1 %v1901_v48 }
 0x37f   : > { %14252 = vmatpush3.bf16.msra.mxu1 %v16254_v40  ;;  %12360 = vmatprep.mubr.f32.mxu1 %v1902_v28  ;;  %v10183_v40 = vld [vmem:[%s18653_s4 + $0x110] sm:$0xff]  ;;  %v3386_v28 = vpop.permute.xlu0 %3385 }
 0x380   : > { %14254 = vmatprep.subr.bf16.mxu1 %v16258_v46 }
 0x382   : > { %12361 = vmatmul.mubr.f32.gmra.mrb[52].mxu1 %v1903_v49 }
 0x383   : > { %14256 = vmatpush3.bf16.msra.mxu1 %v16258_v46  ;;  %12423 = vmatprep.mubr.f32.mxu1 %v10181_v34  ;;  %v10185_v46 = vld [vmem:[%s18653_s4 + $0x120] sm:$0xff] }
 0x384   : > { %14262 = vmatprep.subr.bf16.mxu1 %v16260_v52 }
 0x386   : > { %12424 = vmatmul.mubr.f32.vlgmr.msra.gmra.mrb[38].mxu1 %v10182_v51 }
 0x387   : > { %14264 = vmatpush3.bf16.msra.mxu1 %v16260_v52  ;;  %12426 = vmatprep.mubr.f32.mxu1 %v10183_v40  ;;  %v10187_v52 = vld [vmem:[%s18653_s4 + $0x130] sm:$0xff] }
 0x388   : > { %14266 = vmatprep.subr.bf16.mxu1 %v16262_v58 }
 0x38a   : > { %12427 = vmatmul.mubr.f32.gmra.mrb[40].mxu1 %v10184_v53  ;;  %v16608_v53 = vld [vmem:[%s18613_s8 + $0x10] sm:$0xff] }
 0x38b   : > { %14268 = vmatpush3.bf16.msra.mxu1 %v16262_v58  ;;  %12429 = vmatprep.mubr.f32.mxu1 %v10185_v46  ;;  %v10189_v58 = vld [vmem:[%s18653_s4 + $0x140] sm:$0xff] }
 0x38c   : > { %14270 = vmatprep.subr.bf16.mxu1 %v16264_v0 }
 0x38e   : > { %12430 = vmatmul.mubr.f32.gmra.mrb[42].mxu1 %v10186_v54 }
 0x38f   : > { %14272 = vmatpush3.bf16.msra.mxu1 %v16264_v0  ;;  %12432 = vmatprep.mubr.f32.mxu1 %v10187_v52  ;;  %v10191_v0 = vld [vmem:[%s18653_s4 + $0x150] sm:$0xff] }
 0x390   : > { %14274 = vmatprep.subr.bf16.mxu1 %v16266_v8 }
 0x392   : > { %12433 = vmatmul.mubr.f32.gmra.mrb[44].mxu1 %v10188_v55 }
 0x393   : > { %14276 = vmatpush3.bf16.msra.mxu1 %v16266_v8  ;;  %12435 = vmatprep.mubr.f32.mxu1 %v10189_v58  ;;  %v10193_v8 = vld [vmem:[%s18653_s4 + $0x160] sm:$0xff] }
 0x394   : > { %14278 = vmatprep.subr.bf16.mxu1 %v16268_v18 }
 0x396   : > { %12436 = vmatmul.mubr.f32.gmra.mrb[46].mxu1 %v10190_v57  ;;  %v3401_v57 = vpop.permute.xlu1 %3400 }
 0x397   : > { %14280 = vmatpush3.bf16.msra.mxu1 %v16268_v18  ;;  %12438 = vmatprep.mubr.f32.mxu1 %v10191_v0  ;;  %v10195_v18 = vld [vmem:[%s18653_s4 + $0x170] sm:$0xff] }
 0x398   : > { %14282 = vmatprep.subr.bf16.mxu1 %v16270_v26 }
 0x39a   : > { %12439 = vmatmul.mubr.f32.gmra.mrb[48].mxu1 %v10192_v59  ;;  %v3396_v59 = vpop.permute.xlu0 %3395 }
 0x39b   : > { %14284 = vmatpush3.bf16.msra.mxu1 %v16270_v26  ;;  %12441 = vmatprep.mubr.f32.mxu1 %v10193_v8  ;;  %v10215_v26 = vld [vmem:[%s18653_s4 + $0x180] sm:$0xff] }
 0x39c   : > { %14286 = vmatprep.subr.bf16.mxu1 %v16272_v36 }
 0x39e   : > { %12442 = vmatmul.mubr.f32.gmra.mrb[50].mxu1 %v10194_v60 }
 0x39f   : > { %14288 = vmatpush3.bf16.msra.mxu1 %v16272_v36  ;;  %12444 = vmatprep.mubr.f32.mxu1 %v10195_v18  ;;  %v10217_v36 = vld [vmem:[%s18653_s4 + $0x190] sm:$0xff] }
 0x3a0   : > { %14290 = vmatprep.subr.bf16.mxu1 %v16274_v44 }
 0x3a2   : > { %12445 = vmatmul.mubr.f32.gmra.mrb[52].mxu1 %v10196_v3 }
 0x3a3   : > { %14292 = vmatpush3.bf16.msra.mxu1 %v16274_v44  ;;  %12507 = vmatprep.mubr.f32.mxu1 %v10215_v26  ;;  %v10219_v44 = vld [vmem:[%s18653_s4 + $0x1a0] sm:$0xff] }
 0x3a4   : > { %14298 = vmatprep.subr.bf16.mxu1 %v16279_v50 }
 0x3a6   : > { %12508 = vmatmul.mubr.f32.vlgmr.msra.gmra.mrb[38].mxu1 %v10216_v62 }
 0x3a7   : > { %14300 = vmatpush3.bf16.msra.mxu1 %v16279_v50  ;;  %12510 = vmatprep.mubr.f32.mxu1 %v10217_v36  ;;  %v10221_v50 = vld [vmem:[%s18653_s4 + $0x1b0] sm:$0xff]  ;;  %v3411_v36 = vpop.permute.xlu1 %3410 }
 0x3a8   : > { %14302 = vmatprep.subr.bf16.mxu1 %v16289_v56 }
 0x3aa   : > { %12511 = vmatmul.mubr.f32.gmra.mrb[40].mxu1 %v10218_v63 }
 0x3ab   : > { %14304 = vmatpush3.bf16.msra.mxu1 %v16289_v56  ;;  %12513 = vmatprep.mubr.f32.mxu1 %v10219_v44  ;;  %v10223_v56 = vld [vmem:[%s18653_s4 + $0x1c0] sm:$0xff] }
 0x3ac   : > { %14306 = vmatprep.subr.bf16.mxu1 %v16299_v61 }
 0x3ae   : > { %12514 = vmatmul.mubr.f32.gmra.mrb[42].mxu1 %v10220_v1  ;;  %v3406_v1 = vpop.permute.xlu0 %3405 }
 0x3af   : > { %14308 = vmatpush3.bf16.msra.mxu1 %v16299_v61  ;;  %12516 = vmatprep.mubr.f32.mxu1 %v10221_v50  ;;  %v10225_v61 = vld [vmem:[%s18653_s4 + $0x1d0] sm:$0xff] }
 0x3b0   : > { %14310 = vmatprep.subr.bf16.mxu1 %v16309_v2 }
 0x3b2   : > { %12517 = vmatmul.mubr.f32.gmra.mrb[44].mxu1 %v10222_v9 }
 0x3b3   : > { %14312 = vmatpush3.bf16.msra.mxu1 %v16309_v2  ;;  %12519 = vmatprep.mubr.f32.mxu1 %v10223_v56  ;;  %v10227_v2 = vld [vmem:[%s18653_s4 + $0x1e0] sm:$0xff] }
 0x3b4   : > { %14314 = vmatprep.subr.bf16.mxu1 %v16319_v11 }
 0x3b6   : > { %12520 = vmatmul.mubr.f32.gmra.mrb[46].mxu1 %v10224_v5 }
 0x3b7   : > { %14316 = vmatpush3.bf16.msra.mxu1 %v16319_v11  ;;  %12522 = vmatprep.mubr.f32.mxu1 %v10225_v61  ;;  %v10230_v11 = vld [vmem:[%s18653_s4 + $0x1f8] sm:$0xff] }
 0x3b8   : > { %14318 = vmatprep.subr.bf16.mxu1 %v16329_v17 }
 0x3ba   : > { %12523 = vmatmul.mubr.f32.gmra.mrb[48].mxu1 %v10226_v6 }
 0x3bb   : > { %14320 = vmatpush3.bf16.msra.mxu1 %v16329_v17  ;;  %12525 = vmatprep.mubr.f32.mxu1 %v10227_v2  ;;  %v10253_v17 = vld [vmem:[%s18653_s4 + $0x220] sm:$0xff] }
 0x3bc   : > { %14322 = vmatprep.subr.bf16.mxu1 %v16339_v24 }
 0x3be   : > { %12526 = vmatmul.mubr.f32.gmra.mrb[50].mxu1 %v10228_v7 }
 0x3bf   : > { %14324 = vmatpush3.bf16.msra.mxu1 %v16339_v24  ;;  %12528 = vmatprep.mubr.f32.mxu1 %v10229_v15  ;;  %v10258_v24 = vld [vmem:[%s18653_s4 + $0x248] sm:$0xff] }
 0x3c0   : > { %14326 = vmatprep.subr.bf16.mxu1 %v16349_v31 }
 0x3c2   : > { %12529 = vmatmul.mubr.f32.gmra.mrb[52].mxu1 %v10230_v11  ;;  %v3421_v11 = vpop.permute.xlu1 %3420 }
 0x3c3   : > { %14328 = vmatpush3.bf16.msra.mxu1 %v16349_v31  ;;  %12591 = vmatprep.mubr.f32.mxu1 %v10249_v12  ;;  %v10263_v31 = vld [vmem:[%s18653_s4 + $0x270] sm:$0xff] }
 0x3c6   : > { %12592 = vmatmul.mubr.f32.vlgmr.msra.gmra.mrb[38].mxu1 %v10250_v13  ;;  %v3416_v13 = vpop.permute.xlu0 %3415 }
 0x3c7   : > { %12594 = vmatprep.mubr.f32.mxu1 %v10251_v14 }
 0x3ca   : > { %12595 = vmatmul.mubr.f32.gmra.mrb[40].mxu1 %v10252_v22 }
 0x3cb   : > { %12597 = vmatprep.mubr.f32.mxu1 %v10253_v17 }
 0x3ce   : > { %12598 = vmatmul.mubr.f32.gmra.mrb[42].mxu1 %v10254_v20 }
 0x3cf   : > { %12600 = vmatprep.mubr.f32.mxu1 %v10255_v21 }
 0x3d2   : > { %12601 = vmatmul.mubr.f32.gmra.mrb[44].mxu1 %v10256_v19 }
 0x3d3   : > { %12603 = vmatprep.mubr.f32.mxu1 %v10257_v27  ;;  %v3431_v27 = vpop.permute.xlu1 %3430 }
 0x3d6   : > { %12604 = vmatmul.mubr.f32.gmra.mrb[46].mxu1 %v10258_v24 }
 0x3d7   : > { %12606 = vmatprep.mubr.f32.mxu1 %v10259_v25 }
 0x3da   : > { %12607 = vmatmul.mubr.f32.gmra.mrb[48].mxu1 %v10260_v29  ;;  %v3426_v29 = vpop.permute.xlu0 %3425 }
 0x3db   : > { %12609 = vmatprep.mubr.f32.mxu1 %v10261_v30 }
 0x3de   : > { %12610 = vmatmul.mubr.f32.gmra.mrb[50].mxu1 %v10262_v33 }
 0x3df   : > { %12612 = vmatprep.mubr.f32.mxu1 %v10263_v31 }
 0x3e2   : > { %12613 = vmatmul.mubr.f32.gmra.mrb[52].mxu1 %v10264_v32 }
 0x499   : > { %v12593_v42 = vpop.f32.mrb[38].mxu1 }
 0x49a   : > { %v3434_v10 = vadd.f32 %v12593_v42, %v3361_v39  ;;  %v3242_v43 = vpop.f32.mrb[39].mxu1 }
 0x49b   : > { %v3433_v16 = vadd.f32 %v3356_v37, %v3242_v43  ;;  %v10347_v37 = vld [vmem:[%s18613_s8 + $0x18] sm:$0xff] }
 0x49c   : > { %v16601_v49 = vmax.f32 %v3434_v10, 0.0 }
 0x49d   : > { %v16599_v23 = vmax.f32 %v3433_v16, 0.0  ;;  %v12596_v48 = vpop.f32.mrb[40].mxu1 }
 0x49e   : > { %v3436_v34 = vadd.f32 %v12596_v48, %v3371_v45  ;;  %v3252_v51 = vpop.f32.mrb[41].mxu1  ;;  %v10380_v45 = vld [vmem:[%s18613_s8 + $0x20] sm:$0xff] }
 0x49f   : > { %v3435_v40 = vadd.f32 %v3366_v38, %v3252_v51  ;;  %12617 = vmatprep.mubr.msk.f32.mxu0 %vm3466_vm2, %v16599_v23  ;;  %v10413_v38 = vld [vmem:[%s18613_s8 + $0x28] sm:$0xff] }
 0x4a0   : > { %12618 = vmatmul.mubr.msk.f32.vlgmr.msra.gmra.mrb[76].mxu0 %vm3466_vm2, %v16601_v49  ;;  %v16614_v52 = vmax.f32 %v3436_v34, 0.0 }
 0x4a1   : > { %v16612_v46 = vmax.f32 %v3435_v40, 0.0  ;;  %v12599_v54 = vpop.f32.mrb[42].mxu1  ;;  %12642 = vmatpush3.msra.mxu0 %v10281_v35 }
 0x4a2   : > { %v3438_v55 = vadd.f32 %v12599_v54, %v3381_v41  ;;  %v3262_v58 = vpop.f32.mrb[43].mxu1  ;;  %12779 = vmatprep.subr.mxu0 %v16608_v53  ;;  %v10298_v41 = vld [vmem:[%s18612_s7 + $0x80] sm:$0xff] }
 0x4a3   : > { %v3437_v0 = vadd.f32 %v3376_v4, %v3262_v58  ;;  %12620 = vmatprep.mubr.msk.f32.mxu0 %vm3466_vm2, %v16612_v46  ;;  %12699 = vmatprep.mubr.f32.mxu1 %v10298_v41 }
 0x4a4   : > { %12621 = vmatmul.mubr.msk.f32.gmra.mrb[78].mxu0 %vm3466_vm2, %v16614_v52  ;;  %v16623_v18 = vmax.f32 %v3438_v55, 0.0 }
 0x4a5   : > { %v16621_v8 = vmax.f32 %v3437_v0, 0.0  ;;  %v12602_v60 = vpop.f32.mrb[44].mxu1 }
 0x4a6   : > { %v3440_v3 = vadd.f32 %v12602_v60, %v3391_v47  ;;  %v3272_v26 = vpop.f32.mrb[45].mxu1 }
 0x4a7   : > { %v3439_v62 = vadd.f32 %v3386_v28, %v3272_v26  ;;  %12623 = vmatprep.mubr.msk.f32.mxu0 %vm3466_vm2, %v16621_v8 }
 0x4a8   : > { %12624 = vmatmul.mubr.msk.f32.gmra.mrb[80].mxu0 %vm3466_vm2, %v16623_v18  ;;  %v16631_v50 = vmax.f32 %v3440_v3, 0.0 }
 0x4a9   : > { %v16629_v63 = vmax.f32 %v3439_v62, 0.0  ;;  %v12605_v44 = vpop.f32.mrb[46].mxu1 }
 0x4aa   : > { %v3442_v9 = vadd.f32 %v12605_v44, %v3401_v57  ;;  %v3282_v56 = vpop.f32.mrb[47].mxu1 }
 0x4ab   : > { %v3441_v5 = vadd.f32 %v3396_v59, %v3282_v56  ;;  %12626 = vmatprep.mubr.msk.f32.mxu0 %vm3466_vm2, %v16629_v63 }
 0x4ac   : > { %12627 = vmatmul.mubr.msk.f32.gmra.mrb[82].mxu0 %vm3466_vm2, %v16631_v50  ;;  %v16639_v2 = vmax.f32 %v3442_v9, 0.0 }
 0x4ad   : > { %v16637_v61 = vmax.f32 %v3441_v5, 0.0  ;;  %v12608_v6 = vpop.f32.mrb[48].mxu1 }
 0x4ae   : > { %v3444_v7 = vadd.f32 %v12608_v6, %v3411_v36  ;;  %v3292_v15 = vpop.f32.mrb[49].mxu1 }
 0x4af   : > { %v3443_v12 = vadd.f32 %v3406_v1, %v3292_v15  ;;  %12629 = vmatprep.mubr.msk.f32.mxu0 %vm3466_vm2, %v16637_v61 }
 0x4b0   : > { %12630 = vmatmul.mubr.msk.f32.gmra.mrb[84].mxu0 %vm3466_vm2, %v16639_v2  ;;  %v16647_v17 = vmax.f32 %v3444_v7, 0.0 }
 0x4b1   : > { %v16645_v14 = vmax.f32 %v3443_v12, 0.0  ;;  %v12611_v22 = vpop.f32.mrb[50].mxu1 }
 0x4b2   : > { %v3446_v20 = vadd.f32 %v12611_v22, %v3421_v11  ;;  %v3302_v21 = vpop.f32.mrb[51].mxu1 }
 0x4b3   : > { %v3445_v19 = vadd.f32 %v3416_v13, %v3302_v21  ;;  %12632 = vmatprep.mubr.msk.f32.mxu0 %vm3466_vm2, %v16645_v14 }
 0x4b4   : > { %12633 = vmatmul.mubr.msk.f32.gmra.mrb[86].mxu0 %vm3466_vm2, %v16647_v17  ;;  %v16655_v30 = vmax.f32 %v3446_v20, 0.0 }
 0x4b5   : > { %v16653_v24 = vmax.f32 %v3445_v19, 0.0  ;;  %v12614_v25 = vpop.f32.mrb[52].mxu1 }
 0x4b6   : > { %v3448_v33 = vadd.f32 %v12614_v25, %v3431_v27  ;;  %v3312_v31 = vpop.f32.mrb[53].mxu1  ;;  %v10299_v27 = vld [vmem:[%s18612_s7 + $0x88] sm:$0xff]  ;;  %v10300_v25 = vld [vmem:[%s18612_s7 + $0x90] sm:$0xff] }
 0x4b7   : > { %v3447_v32 = vadd.f32 %v3426_v29, %v3312_v31  ;;  %12635 = vmatprep.mubr.msk.f32.mxu0 %vm3466_vm2, %v16653_v24 }
 0x4b8   : > { %12636 = vmatmul.mubr.msk.f32.gmra.mrb[88].mxu0 %vm3466_vm2, %v16655_v30  ;;  %v16663_v39 = vmax.f32 %v3448_v33, 0.0  ;;  %v10301_v33 = vld [vmem:[%s18612_s7 + $0x98] sm:$0xff] }
 0x4b9   : > { %v16661_v35 = vmax.f32 %v3447_v32, 0.0  ;;  %v10302_v32 = vld [vmem:[%s18612_s7 + $0xa0] sm:$0xff] }
 0x4bb   : > { %12638 = vmatprep.mubr.msk.f32.mxu0 %vm3466_vm2, %v16661_v35 }
 0x4bc   : > { %12639 = vmatmul.mubr.msk.f32.gmra.mrb[90].mxu0 %vm3466_vm2, %v16663_v39 }
 0x4bd   : > { %12643 = vmatprep.mubr.msk.f32.mxu0 %vm3466_vm2, %v16599_v23 }
 0x4c0   : > { %12644 = vmatmul.mubr.msk.f32.vlgmr.msra.gmra.mrb[92].mxu0 %vm3466_vm2, %v16601_v49 }
 0x4c1   : > { %12646 = vmatprep.mubr.msk.f32.mxu0 %vm3466_vm2, %v16612_v46  ;;  %12780 = vmatpush3.msra.mxu0 %v16608_v53 }
 0x4c2   : > { %12861 = vmatprep.subr.mxu0 %v10347_v37 }
 0x4c4   : > { %12647 = vmatmul.mubr.msk.f32.gmra.mrb[94].mxu0 %vm3466_vm2, %v16614_v52 }
 0x4c5   : > { %12649 = vmatprep.mubr.msk.f32.mxu0 %vm3466_vm2, %v16621_v8 }
 0x4c8   : > { %12650 = vmatmul.mubr.msk.f32.gmra.mrb[96].mxu0 %vm3466_vm2, %v16623_v18 }
 0x4c9   : > { %12652 = vmatprep.mubr.msk.f32.mxu0 %vm3466_vm2, %v16629_v63 }
 0x4cc   : > { %12653 = vmatmul.mubr.msk.f32.gmra.mrb[98].mxu0 %vm3466_vm2, %v16631_v50 }
 0x4cd   : > { %12655 = vmatprep.mubr.msk.f32.mxu0 %vm3466_vm2, %v16637_v61 }
 0x4d0   : > { %12656 = vmatmul.mubr.msk.f32.gmra.mrb[100].mxu0 %vm3466_vm2, %v16639_v2 }
 0x4d1   : > { %12658 = vmatprep.mubr.msk.f32.mxu0 %vm3466_vm2, %v16645_v14 }
 0x4d4   : > { %12659 = vmatmul.mubr.msk.f32.gmra.mrb[102].mxu0 %vm3466_vm2, %v16647_v17 }
 0x4d5   : > { %12661 = vmatprep.mubr.msk.f32.mxu0 %vm3466_vm2, %v16653_v24 }
 0x4d8   : > { %12662 = vmatmul.mubr.msk.f32.gmra.mrb[104].mxu0 %vm3466_vm2, %v16655_v30 }
 0x4d9   : > { %12664 = vmatprep.mubr.msk.f32.mxu0 %vm3466_vm2, %v16661_v35 }
 0x4dc   : > { %12665 = vmatmul.mubr.msk.f32.gmra.mrb[106].mxu0 %vm3466_vm2, %v16663_v39 }
 0x4dd   : > { %12781 = vmatprep.mubr.msk.f32.mxu0 %vm3466_vm2, %v16599_v23 }
 0x4e0   : > { %12782 = vmatmul.mubr.msk.f32.vlgmr.msra.gmra.mrb[108].mxu0 %vm3466_vm2, %v16601_v49 }
 0x4e1   : > { %12784 = vmatprep.mubr.msk.f32.mxu0 %vm3466_vm2, %v16612_v46  ;;  %12862 = vmatpush3.msra.mxu0 %v10347_v37  ;;  %v10303_v37 = vld [vmem:[%s18612_s7 + $0xa8] sm:$0xff] }
 0x4e2   : > { %12943 = vmatprep.subr.mxu0 %v10380_v45 }
 0x4e4   : > { %12785 = vmatmul.mubr.msk.f32.gmra.mrb[110].mxu0 %vm3466_vm2, %v16614_v52 }
 0x4e5   : > { %12787 = vmatprep.mubr.msk.f32.mxu0 %vm3466_vm2, %v16621_v8 }
 0x4e8   : > { %12788 = vmatmul.mubr.msk.f32.gmra.mrb[112].mxu0 %vm3466_vm2, %v16623_v18 }
 0x4e9   : > { %12790 = vmatprep.mubr.msk.f32.mxu0 %vm3466_vm2, %v16629_v63 }
 0x4ec   : > { %12791 = vmatmul.mubr.msk.f32.gmra.mrb[114].mxu0 %vm3466_vm2, %v16631_v50 }
 0x4ed   : > { %12793 = vmatprep.mubr.msk.f32.mxu0 %vm3466_vm2, %v16637_v61 }
 0x4f0   : > { %12794 = vmatmul.mubr.msk.f32.gmra.mrb[116].mxu0 %vm3466_vm2, %v16639_v2 }
 0x4f1   : > { %12796 = vmatprep.mubr.msk.f32.mxu0 %vm3466_vm2, %v16645_v14 }
 0x4f4   : > { %12797 = vmatmul.mubr.msk.f32.gmra.mrb[118].mxu0 %vm3466_vm2, %v16647_v17 }
 0x4f5   : > { %12799 = vmatprep.mubr.msk.f32.mxu0 %vm3466_vm2, %v16653_v24 }
 0x4f8   : > { %12800 = vmatmul.mubr.msk.f32.gmra.mrb[120].mxu0 %vm3466_vm2, %v16655_v30 }
 0x4f9   : > { %12802 = vmatprep.mubr.msk.f32.mxu0 %vm3466_vm2, %v16661_v35 }
 0x4fc   : > { %12803 = vmatmul.mubr.msk.f32.gmra.mrb[122].mxu0 %vm3466_vm2, %v16663_v39 }
 0x4fd   : > { %12863 = vmatprep.mubr.msk.f32.mxu0 %vm3466_vm2, %v16599_v23 }
 0x500   : > { %12864 = vmatmul.mubr.msk.f32.vlgmr.msra.gmra.mrb[124].mxu0 %vm3466_vm2, %v16601_v49 }
 0x501   : > { %12866 = vmatprep.mubr.msk.f32.mxu0 %vm3466_vm2, %v16612_v46  ;;  %12944 = vmatpush3.msra.mxu0 %v10380_v45 }
 0x502   : > { %13025 = vmatprep.subr.mxu0 %v10413_v38 }
 0x504   : > { %12867 = vmatmul.mubr.msk.f32.gmra.mrb[126].mxu0 %vm3466_vm2, %v16614_v52 }
 0x505   : > { %12869 = vmatprep.mubr.msk.f32.mxu0 %vm3466_vm2, %v16621_v8 }
 0x508   : > { %12870 = vmatmul.mubr.msk.f32.gmra.mrb[128].mxu0 %vm3466_vm2, %v16623_v18 }
 0x509   : > { %12872 = vmatprep.mubr.msk.f32.mxu0 %vm3466_vm2, %v16629_v63 }
 0x50c   : > { %12873 = vmatmul.mubr.msk.f32.gmra.mrb[130].mxu0 %vm3466_vm2, %v16631_v50 }
 0x50d   : > { %12875 = vmatprep.mubr.msk.f32.mxu0 %vm3466_vm2, %v16637_v61 }
 0x510   : > { %12876 = vmatmul.mubr.msk.f32.gmra.mrb[132].mxu0 %vm3466_vm2, %v16639_v2 }
 0x511   : > { %12878 = vmatprep.mubr.msk.f32.mxu0 %vm3466_vm2, %v16645_v14 }
 0x514   : > { %12879 = vmatmul.mubr.msk.f32.gmra.mrb[134].mxu0 %vm3466_vm2, %v16647_v17 }
 0x515   : > { %12881 = vmatprep.mubr.msk.f32.mxu0 %vm3466_vm2, %v16653_v24 }
 0x518   : > { %12882 = vmatmul.mubr.msk.f32.gmra.mrb[136].mxu0 %vm3466_vm2, %v16655_v30 }
 0x519   : > { %12884 = vmatprep.mubr.msk.f32.mxu0 %vm3466_vm2, %v16661_v35 }
 0x51c   : > { %12885 = vmatmul.mubr.msk.f32.gmra.mrb[138].mxu0 %vm3466_vm2, %v16663_v39 }
 0x51d   : > { %12945 = vmatprep.mubr.msk.f32.mxu0 %vm3466_vm2, %v16599_v23 }
 0x520   : > { %12946 = vmatmul.mubr.msk.f32.vlgmr.msra.gmra.mrb[140].mxu0 %vm3466_vm2, %v16601_v49 }
 0x521   : > { %12948 = vmatprep.mubr.msk.f32.mxu0 %vm3466_vm2, %v16612_v46  ;;  %13026 = vmatpush3.msra.mxu0 %v10413_v38  ;;  %v10304_v38 = vld [vmem:[%s18612_s7 + $0xb0] sm:$0xff] }
 0x524   : > { %12949 = vmatmul.mubr.msk.f32.gmra.mrb[142].mxu0 %vm3466_vm2, %v16614_v52 }
 0x525   : > { %12951 = vmatprep.mubr.msk.f32.mxu0 %vm3466_vm2, %v16621_v8 }
 0x528   : > { %12952 = vmatmul.mubr.msk.f32.gmra.mrb[144].mxu0 %vm3466_vm2, %v16623_v18 }
 0x529   : > { %12954 = vmatprep.mubr.msk.f32.mxu0 %vm3466_vm2, %v16629_v63 }
 0x52c   : > { %12955 = vmatmul.mubr.msk.f32.gmra.mrb[146].mxu0 %vm3466_vm2, %v16631_v50 }
 0x52d   : > { %12957 = vmatprep.mubr.msk.f32.mxu0 %vm3466_vm2, %v16637_v61 }
 0x530   : > { %12958 = vmatmul.mubr.msk.f32.gmra.mrb[148].mxu0 %vm3466_vm2, %v16639_v2 }
 0x531   : > { %12960 = vmatprep.mubr.msk.f32.mxu0 %vm3466_vm2, %v16645_v14 }
 0x534   : > { %12961 = vmatmul.mubr.msk.f32.gmra.mrb[150].mxu0 %vm3466_vm2, %v16647_v17 }
 0x535   : > { %12963 = vmatprep.mubr.msk.f32.mxu0 %vm3466_vm2, %v16653_v24 }
 0x538   : > { %12964 = vmatmul.mubr.msk.f32.gmra.mrb[152].mxu0 %vm3466_vm2, %v16655_v30 }
 0x539   : > { %12966 = vmatprep.mubr.msk.f32.mxu0 %vm3466_vm2, %v16661_v35 }
 0x53c   : > { %12967 = vmatmul.mubr.msk.f32.gmra.mrb[154].mxu0 %vm3466_vm2, %v16663_v39 }
 0x53d   : > { %13027 = vmatprep.mubr.msk.f32.mxu0 %vm3466_vm2, %v16599_v23 }
 0x540   : > { %13028 = vmatmul.mubr.msk.f32.vlgmr.msra.gmra.mrb[156].mxu0 %vm3466_vm2, %v16601_v49 }
 0x541   : > { %13030 = vmatprep.mubr.msk.f32.mxu0 %vm3466_vm2, %v16612_v46 }
 0x544   : > { %13031 = vmatmul.mubr.msk.f32.gmra.mrb[158].mxu0 %vm3466_vm2, %v16614_v52 }
 0x545   : > { %13033 = vmatprep.mubr.msk.f32.mxu0 %vm3466_vm2, %v16621_v8 }
 0x548   : > { %13034 = vmatmul.mubr.msk.f32.gmra.mrb[160].mxu0 %vm3466_vm2, %v16623_v18 }
 0x549   : > { %13036 = vmatprep.mubr.msk.f32.mxu0 %vm3466_vm2, %v16629_v63 }
 0x54c   : > { %13037 = vmatmul.mubr.msk.f32.gmra.mrb[162].mxu0 %vm3466_vm2, %v16631_v50 }
 0x54d   : > { %13039 = vmatprep.mubr.msk.f32.mxu0 %vm3466_vm2, %v16637_v61 }
 0x550   : > { %13040 = vmatmul.mubr.msk.f32.gmra.mrb[164].mxu0 %vm3466_vm2, %v16639_v2 }
 0x551   : > { %13042 = vmatprep.mubr.msk.f32.mxu0 %vm3466_vm2, %v16645_v14 }
 0x554   : > { %13043 = vmatmul.mubr.msk.f32.gmra.mrb[166].mxu0 %vm3466_vm2, %v16647_v17 }
 0x555   : > { %13045 = vmatprep.mubr.msk.f32.mxu0 %vm3466_vm2, %v16653_v24 }
 0x558   : > { %13046 = vmatmul.mubr.msk.f32.gmra.mrb[168].mxu0 %vm3466_vm2, %v16655_v30 }
 0x559   : > { %13048 = vmatprep.mubr.msk.f32.mxu0 %vm3466_vm2, %v16661_v35 }
 0x55c   : > { %13049 = vmatmul.mubr.msk.f32.gmra.mrb[170].mxu0 %vm3466_vm2, %v16663_v39 }
 0x573   : > { %v12619_v4 = vpop.f32.mrb[76].mxu0 }
 0x574   : > { %v3581_v42 = vpop.f32.mrb[77].mxu0 }
 0x575   : > { %v16842_v10 = vpack.c.bf16 %v12619_v4, %v3581_v42  ;;  %v10305_v42 = vld [vmem:[%s18612_s7 + $0xb8] sm:$0xff] }
 0x577   : > { %v12622_v43 = vpop.f32.mrb[78].mxu0 }
 0x578   : > { %v3591_v16 = vpop.f32.mrb[79].mxu0 }
 0x579   : > { %v16844_v47 = vpack.c.bf16 %v12622_v43, %v3591_v16  ;;  %v10306_v43 = vld [vmem:[%s18612_s7 + $0xc0] sm:$0xff] }
 0x57b   : > { %v12625_v23 = vpop.f32.mrb[80].mxu0 }
 0x57c   : > { %v3601_v48 = vpop.f32.mrb[81].mxu0 }
 0x57d   : > { %v16846_v28 = vpack.c.bf16 %v12625_v23, %v3601_v48  ;;  %v10307_v23 = vld [vmem:[%s18612_s7 + $0xc8] sm:$0xff] }
 0x57f   : > { %v12628_v49 = vpop.f32.mrb[82].mxu0 }
 0x580   : > { %v3611_v34 = vpop.f32.mrb[83].mxu0 }
 0x581   : > { %v16848_v51 = vpack.c.bf16 %v12628_v49, %v3611_v34 }
 0x583   : > { %v12631_v40 = vpop.f32.mrb[84].mxu0 }
 0x584   : > { %v3621_v53 = vpop.f32.mrb[85].mxu0 }
 0x585   : > { %v16850_v46 = vpack.c.bf16 %v12631_v40, %v3621_v53  ;;  %v10310_v53 = vld [vmem:[%s18612_s7 + $0xe0] sm:$0xff] }
 0x587   : > { %v12634_v54 = vpop.f32.mrb[86].mxu0 }
 0x588   : > { %v3631_v52 = vpop.f32.mrb[87].mxu0 }
 0x589   : > { %v16852_v55 = vpack.c.bf16 %v12634_v54, %v3631_v52 }
 0x58b   : > { %v12637_v58 = vpop.f32.mrb[88].mxu0 }
 0x58c   : > { %v3641_v57 = vpop.f32.mrb[89].mxu0 }
 0x58d   : > { %v16854_v0 = vpack.c.bf16 %v12637_v58, %v3641_v57  ;;  %v10312_v57 = vld [vmem:[%s18612_s7 + $0xf0] sm:$0xff] }
 0x58f   : > { %v12640_v59 = vpop.f32.mrb[90].mxu0 }
 0x590   : > { %v3651_v8 = vpop.f32.mrb[91].mxu0 }
 0x591   : > { %v16856_v60 = vpack.c.bf16 %v12640_v59, %v3651_v8 }
 0x593   : > { %v12645_v18 = vpop.f32.mrb[92].mxu0 }
 0x594   : > { %v3744_v3 = vpop.f32.mrb[93].mxu0 }
 0x595   : > { %v14329_v26 = vpack.c.bf16 %v12645_v18, %v3744_v3  ;;  %v3660_v3 = vld [vmem:[%s18612_s7] sm:$0xff] }
 0x597   : > { %v12648_v62 = vpop.f32.mrb[94].mxu0  ;;  %14330 = vmatprep.subr.bf16.mxu1 %v14329_v26 }
 0x598   : > { %v3754_v36 = vpop.f32.mrb[95].mxu0  ;;  %14332 = vmatpush3.bf16.msra.mxu1 %v14329_v26 }
 0x599   : > { %v14333_v63 = vpack.c.bf16 %v12648_v62, %v3754_v36 }
 0x59b   : > { %v12651_v44 = vpop.f32.mrb[96].mxu0  ;;  %14334 = vmatprep.subr.bf16.mxu1 %v14333_v63 }
 0x59c   : > { %v3764_v1 = vpop.f32.mrb[97].mxu0  ;;  %14336 = vmatpush3.bf16.msra.mxu1 %v14333_v63  ;;  %v3662_v63 = vld [vmem:[%s18612_s7 + $0x10] sm:$0xff] }
 0x59d   : > { %v14337_v50 = vpack.c.bf16 %v12651_v44, %v3764_v1 }
 0x59f   : > { %v12654_v9 = vpop.f32.mrb[98].mxu0  ;;  %14338 = vmatprep.subr.bf16.mxu1 %v14337_v50 }
 0x5a0   : > { %v3774_v56 = vpop.f32.mrb[99].mxu0  ;;  %14340 = vmatpush3.bf16.msra.mxu1 %v14337_v50 }
 0x5a1   : > { %v14341_v5 = vpack.c.bf16 %v12654_v9, %v3774_v56  ;;  %v3664_v9 = vld [vmem:[%s18612_s7 + $0x20] sm:$0xff] }
 0x5a3   : > { %v12657_v61 = vpop.f32.mrb[100].mxu0  ;;  %14342 = vmatprep.subr.bf16.mxu1 %v14341_v5 }
 0x5a4   : > { %v3784_v6 = vpop.f32.mrb[101].mxu0  ;;  %14344 = vmatpush3.bf16.msra.mxu1 %v14341_v5 }
 0x5a5   : > { %v14345_v2 = vpack.c.bf16 %v12657_v61, %v3784_v6  ;;  %v3665_v61 = vld [vmem:[%s18612_s7 + $0x28] sm:$0xff] }
 0x5a7   : > { %v12660_v7 = vpop.f32.mrb[102].mxu0  ;;  %14346 = vmatprep.subr.bf16.mxu1 %v14345_v2 }
 0x5a8   : > { %v3794_v15 = vpop.f32.mrb[103].mxu0  ;;  %14348 = vmatpush3.bf16.msra.mxu1 %v14345_v2  ;;  %v3666_v2 = vld [vmem:[%s18612_s7 + $0x30] sm:$0xff] }
 0x5a9   : > { %v14349_v11 = vpack.c.bf16 %v12660_v7, %v3794_v15 }
 0x5ab   : > { %v12663_v12 = vpop.f32.mrb[104].mxu0  ;;  %14350 = vmatprep.subr.bf16.mxu1 %v14349_v11 }
 0x5ac   : > { %v3804_v13 = vpop.f32.mrb[105].mxu0  ;;  %14352 = vmatpush3.bf16.msra.mxu1 %v14349_v11  ;;  %v3667_v11 = vld [vmem:[%s18612_s7 + $0x38] sm:$0xff] }
 0x5ad   : > { %v14353_v14 = vpack.c.bf16 %v12663_v12, %v3804_v13  ;;  %v3668_v13 = vld [vmem:[%s18612_s7 + $0x40] sm:$0xff] }
 0x5af   : > { %v12666_v22 = vpop.f32.mrb[106].mxu0  ;;  %14354 = vmatprep.subr.bf16.mxu1 %v14353_v14 }
 0x5b0   : > { %v3814_v17 = vpop.f32.mrb[107].mxu0  ;;  %14356 = vmatpush3.bf16.msra.mxu1 %v14353_v14 }
 0x5b1   : > { %v14357_v20 = vpack.c.bf16 %v12666_v22, %v3814_v17  ;;  %v3669_v17 = vld [vmem:[%s18612_s7 + $0x48] sm:$0xff] }
 0x5b3   : > { %14358 = vmatprep.subr.bf16.mxu1 %v14357_v20  ;;  %v12783_v21 = vpop.f32.mrb[108].mxu0 }
 0x5b4   : > { %14360 = vmatpush3.bf16.msra.mxu1 %v14357_v20  ;;  %v4198_v19 = vpop.f32.mrb[109].mxu0 }
 0x5b5   : > { %v16861_v24 = vpack.c.bf16 %v12783_v21, %v4198_v19  ;;  %14362 = vmatprep.subr.bf16.mxu1 %v16842_v10  ;;  %v3670_v21 = vld [vmem:[%s18612_s7 + $0x50] sm:$0xff] }
 0x5b7   : > { %12700 = vmatmul.mubr.f32.vlgmr.msra.gmra.mrb[54].mxu1 %v10299_v27  ;;  %v12786_v29 = vpop.f32.mrb[110].mxu0 }
 0x5b8   : > { %14364 = vmatpush3.bf16.msra.mxu1 %v16842_v10  ;;  %v4208_v30 = vpop.f32.mrb[111].mxu0  ;;  %12702 = vmatprep.mubr.f32.mxu1 %v10300_v25 }
 0x5b9   : > { %v16871_v31 = vpack.c.bf16 %v12786_v29, %v4208_v30  ;;  %14366 = vmatprep.subr.bf16.mxu1 %v16844_v47  ;;  %v3672_v29 = vld [vmem:[%s18612_s7 + $0x60] sm:$0xff] }
 0x5bb   : > { %12703 = vmatmul.mubr.f32.gmra.mrb[56].mxu1 %v10301_v33  ;;  %v12789_v35 = vpop.f32.mrb[112].mxu0 }
 0x5bc   : > { %14368 = vmatpush3.bf16.msra.mxu1 %v16844_v47  ;;  %v4218_v39 = vpop.f32.mrb[113].mxu0  ;;  %12705 = vmatprep.mubr.f32.mxu1 %v10302_v32 }
 0x5bd   : > { %v16881_v45 = vpack.c.bf16 %v12789_v35, %v4218_v39  ;;  %14370 = vmatprep.subr.bf16.mxu1 %v16846_v28  ;;  %v3674_v35 = vld [vmem:[%s18612_s7 + $0x70] sm:$0xff] }
 0x5bf   : > { %12706 = vmatmul.mubr.f32.gmra.mrb[58].mxu1 %v10303_v37  ;;  %v12792_v41 = vpop.f32.mrb[114].mxu0 }
 0x5c0   : > { %14372 = vmatpush3.bf16.msra.mxu1 %v16846_v28  ;;  %v4228_v4 = vpop.f32.mrb[115].mxu0  ;;  %12708 = vmatprep.mubr.f32.mxu1 %v10304_v38  ;;  %v10308_v28 = vld [vmem:[%s18612_s7 + $0xd0] sm:$0xff] }
 0x5c1   : > { %v16891_v10 = vpack.c.bf16 %v12792_v41, %v4228_v4  ;;  %14374 = vmatprep.subr.bf16.mxu1 %v16848_v51  ;;  %v10331_v41 = vld [vmem:[%s18612_s7 + $0x100] sm:$0xff] }
 0x5c3   : > { %12709 = vmatmul.mubr.f32.gmra.mrb[60].mxu1 %v10305_v42  ;;  %v12795_v16 = vpop.f32.mrb[116].mxu0  ;;  %v5558_v42 = vld [vmem:[%s18616_s11] sm:$0xf] }
 0x5c4   : > { %14376 = vmatpush3.bf16.msra.mxu1 %v16848_v51  ;;  %v4238_v47 = vpop.f32.mrb[117].mxu0  ;;  %12711 = vmatprep.mubr.f32.mxu1 %v10306_v43  ;;  %v10309_v51 = vld [vmem:[%s18612_s7 + $0xd8] sm:$0xff]  ;;  %v10332_v43 = vld [vmem:[%s18612_s7 + $0x108] sm:$0xff] }
 0x5c5   : > { %v16901_v48 = vpack.c.bf16 %v12795_v16, %v4238_v47  ;;  %14378 = vmatprep.subr.bf16.mxu1 %v16850_v46  ;;  %v10333_v47 = vld [vmem:[%s18612_s7 + $0x110] sm:$0xff]  ;;  %13107 = vmatprep.subr.msk.mxu0 %vm5608_vm3, %v5558_v42 }
 0x5c6   : > { %13108 = vmatpush3.msk.msra.mxu0 %vm5608_vm3, %v5558_v42  ;;  %v10374_v42 = vld [vmem:[%s18612_s7 + $0x1d0] sm:$0xff] }
 0x5c7   : > { %12712 = vmatmul.mubr.f32.gmra.mrb[62].mxu1 %v10307_v23  ;;  %v12798_v49 = vpop.f32.mrb[118].mxu0 }
 0x5c8   : > { %14380 = vmatpush3.bf16.msra.mxu1 %v16850_v46  ;;  %v4248_v34 = vpop.f32.mrb[119].mxu0  ;;  %12714 = vmatprep.mubr.f32.mxu1 %v10308_v28  ;;  %v10311_v46 = vld [vmem:[%s18612_s7 + $0xe8] sm:$0xff]  ;;  %v10334_v28 = vld [vmem:[%s18612_s7 + $0x118] sm:$0xff] }
 0x5c9   : > { %v16911_v40 = vpack.c.bf16 %v12798_v49, %v4248_v34  ;;  %14382 = vmatprep.subr.bf16.mxu1 %v16852_v55  ;;  %v10335_v34 = vld [vmem:[%s18612_s7 + $0x120] sm:$0xff] }
 0x5cb   : > { %12715 = vmatmul.mubr.f32.gmra.mrb[64].mxu1 %v10309_v51  ;;  %v12801_v54 = vpop.f32.mrb[120].mxu0 }
 0x5cc   : > { %14384 = vmatpush3.bf16.msra.mxu1 %v16852_v55  ;;  %v4258_v52 = vpop.f32.mrb[121].mxu0  ;;  %12717 = vmatprep.mubr.f32.mxu1 %v10310_v53  ;;  %v10313_v55 = vld [vmem:[%s18612_s7 + $0xf8] sm:$0xff]  ;;  %v10336_v53 = vld [vmem:[%s18612_s7 + $0x128] sm:$0xff] }
 0x5cd   : > { %v16921_v58 = vpack.c.bf16 %v12801_v54, %v4258_v52  ;;  %14386 = vmatprep.subr.bf16.mxu1 %v16854_v0  ;;  %v10337_v52 = vld [vmem:[%s18612_s7 + $0x130] sm:$0xff] }
 0x5cf   : > { %12718 = vmatmul.mubr.f32.gmra.mrb[66].mxu1 %v10311_v46  ;;  %v12804_v59 = vpop.f32.mrb[122].mxu0 }
 0x5d0   : > { %14388 = vmatpush3.bf16.msra.mxu1 %v16854_v0  ;;  %v4268_v8 = vpop.f32.mrb[123].mxu0  ;;  %12720 = vmatprep.mubr.f32.mxu1 %v10312_v57  ;;  %v3661_v0 = vld [vmem:[%s18612_s7 + $0x8] sm:$0xff]  ;;  %v10338_v57 = vld [vmem:[%s18612_s7 + $0x138] sm:$0xff] }
 0x5d1   : > { %v16931_v18 = vpack.c.bf16 %v12804_v59, %v4268_v8  ;;  %14390 = vmatprep.subr.bf16.mxu1 %v16856_v60  ;;  %v10339_v8 = vld [vmem:[%s18612_s7 + $0x140] sm:$0xff] }
 0x5d3   : > { %12721 = vmatmul.mubr.f32.gmra.mrb[68].mxu1 %v10313_v55  ;;  %v12865_v26 = vpop.f32.mrb[124].mxu0 }
 0x5d4   : > { %14392 = vmatpush3.bf16.msra.mxu1 %v16856_v60  ;;  %v4523_v62 = vpop.f32.mrb[125].mxu0  ;;  %12755 = vmatprep.mubr.f32.mxu1 %v3660_v3  ;;  %v3663_v60 = vld [vmem:[%s18612_s7 + $0x18] sm:$0xff]  ;;  %v10340_v3 = vld [vmem:[%s18612_s7 + $0x148] sm:$0xff] }
 0x5d5   : > { %v16941_v36 = vpack.c.bf16 %v12865_v26, %v4523_v62  ;;  %14394 = vmatprep.subr.bf16.mxu1 %v16861_v24  ;;  %v10341_v62 = vld [vmem:[%s18612_s7 + $0x150] sm:$0xff] }
 0x5d7   : > { %12756 = vmatmul.mubr.f32.vlgmr.msra.gmra.mrb[54].mxu1 %v3661_v0  ;;  %v12868_v44 = vpop.f32.mrb[126].mxu0 }
 0x5d8   : > { %14396 = vmatpush3.bf16.msra.mxu1 %v16861_v24  ;;  %v4533_v1 = vpop.f32.mrb[127].mxu0  ;;  %12758 = vmatprep.mubr.f32.mxu1 %v3662_v63  ;;  %v3671_v24 = vld [vmem:[%s18612_s7 + $0x58] sm:$0xff] }
 0x5d9   : > { %v16951_v50 = vpack.c.bf16 %v12868_v44, %v4533_v1  ;;  %14398 = vmatprep.subr.bf16.mxu1 %v16871_v31  ;;  %v10342_v63 = vld [vmem:[%s18612_s7 + $0x158] sm:$0xff]  ;;  %v10343_v1 = vld [vmem:[%s18612_s7 + $0x160] sm:$0xff] }
 0x5db   : > { %12759 = vmatmul.mubr.f32.gmra.mrb[56].mxu1 %v3663_v60  ;;  %v12871_v56 = vpop.f32.mrb[128].mxu0 }
 0x5dc   : > { %14400 = vmatpush3.bf16.msra.mxu1 %v16871_v31  ;;  %v4543_v5 = vpop.f32.mrb[129].mxu0  ;;  %12761 = vmatprep.mubr.f32.mxu1 %v3664_v9  ;;  %v3673_v31 = vld [vmem:[%s18612_s7 + $0x68] sm:$0xff] }
 0x5dd   : > { %v16961_v6 = vpack.c.bf16 %v12871_v56, %v4543_v5  ;;  %14402 = vmatprep.subr.bf16.mxu1 %v16881_v45  ;;  %v10344_v9 = vld [vmem:[%s18612_s7 + $0x168] sm:$0xff]  ;;  %v10345_v5 = vld [vmem:[%s18612_s7 + $0x170] sm:$0xff] }
 0x5df   : > { %12762 = vmatmul.mubr.f32.gmra.mrb[58].mxu1 %v3665_v61  ;;  %v12874_v7 = vpop.f32.mrb[130].mxu0 }
 0x5e0   : > { %14404 = vmatpush3.bf16.msra.mxu1 %v16881_v45  ;;  %v4553_v15 = vpop.f32.mrb[131].mxu0  ;;  %12764 = vmatprep.mubr.f32.mxu1 %v3666_v2  ;;  %v3675_v45 = vld [vmem:[%s18612_s7 + $0x78] sm:$0xff] }
 0x5e1   : > { %v16971_v12 = vpack.c.bf16 %v12874_v7, %v4553_v15  ;;  %14406 = vmatprep.subr.bf16.mxu1 %v16891_v10  ;;  %v10346_v2 = vld [vmem:[%s18612_s7 + $0x178] sm:$0xff]  ;;  %v10364_v15 = vld [vmem:[%s18612_s7 + $0x180] sm:$0xff] }
 0x5e3   : > { %12765 = vmatmul.mubr.f32.gmra.mrb[60].mxu1 %v3667_v11  ;;  %v12877_v14 = vpop.f32.mrb[132].mxu0 }
 0x5e4   : > { %14408 = vmatpush3.bf16.msra.mxu1 %v16891_v10  ;;  %v4563_v22 = vpop.f32.mrb[133].mxu0  ;;  %12767 = vmatprep.mubr.f32.mxu1 %v3668_v13  ;;  %v10365_v13 = vld [vmem:[%s18612_s7 + $0x188] sm:$0xff] }
 0x5e5   : > { %v16981_v20 = vpack.c.bf16 %v12877_v14, %v4563_v22  ;;  %14410 = vmatprep.subr.bf16.mxu1 %v16901_v48  ;;  %v10366_v22 = vld [vmem:[%s18612_s7 + $0x190] sm:$0xff] }
 0x5e7   : > { %12768 = vmatmul.mubr.f32.gmra.mrb[62].mxu1 %v3669_v17  ;;  %v12880_v19 = vpop.f32.mrb[134].mxu0 }
 0x5e8   : > { %14412 = vmatpush3.bf16.msra.mxu1 %v16901_v48  ;;  %v4573_v27 = vpop.f32.mrb[135].mxu0  ;;  %12770 = vmatprep.mubr.f32.mxu1 %v3670_v21  ;;  %v10367_v21 = vld [vmem:[%s18612_s7 + $0x198] sm:$0xff] }
 0x5e9   : > { %v16991_v25 = vpack.c.bf16 %v12880_v19, %v4573_v27  ;;  %14414 = vmatprep.subr.bf16.mxu1 %v16911_v40  ;;  %v10368_v27 = vld [vmem:[%s18612_s7 + $0x1a0] sm:$0xff] }
 0x5eb   : > { %12771 = vmatmul.mubr.f32.gmra.mrb[64].mxu1 %v3671_v24  ;;  %v12883_v30 = vpop.f32.mrb[136].mxu0 }
 0x5ec   : > { %14416 = vmatpush3.bf16.msra.mxu1 %v16911_v40  ;;  %v4583_v33 = vpop.f32.mrb[137].mxu0  ;;  %12773 = vmatprep.mubr.f32.mxu1 %v3672_v29  ;;  %v10369_v29 = vld [vmem:[%s18612_s7 + $0x1a8] sm:$0xff] }
 0x5ed   : > { %v17001_v32 = vpack.c.bf16 %v12883_v30, %v4583_v33  ;;  %14418 = vmatprep.subr.bf16.mxu1 %v16921_v58  ;;  %v10370_v33 = vld [vmem:[%s18612_s7 + $0x1b0] sm:$0xff] }
 0x5ef   : > { %12774 = vmatmul.mubr.f32.gmra.mrb[66].mxu1 %v3673_v31  ;;  %v12886_v39 = vpop.f32.mrb[138].mxu0 }
 0x5f0   : > { %14420 = vmatpush3.bf16.msra.mxu1 %v16921_v58  ;;  %v4593_v37 = vpop.f32.mrb[139].mxu0  ;;  %12776 = vmatprep.mubr.f32.mxu1 %v3674_v35  ;;  %v10371_v35 = vld [vmem:[%s18612_s7 + $0x1b8] sm:$0xff] }
 0x5f1   : > { %v17011_v38 = vpack.c.bf16 %v12886_v39, %v4593_v37  ;;  %14422 = vmatprep.subr.bf16.mxu1 %v16931_v18  ;;  %v10372_v37 = vld [vmem:[%s18612_s7 + $0x1c0] sm:$0xff] }
 0x5f3   : > { %12777 = vmatmul.mubr.f32.gmra.mrb[68].mxu1 %v3675_v45  ;;  %v12947_v4 = vpop.f32.mrb[140].mxu0 }
 0x5f4   : > { %14424 = vmatpush3.bf16.msra.mxu1 %v16931_v18  ;;  %v4848_v10 = vpop.f32.mrb[141].mxu0  ;;  %12837 = vmatprep.mubr.f32.mxu1 %v10331_v41  ;;  %v10373_v41 = vld [vmem:[%s18612_s7 + $0x1c8] sm:$0xff] }
 0x5f5   : > { %v17024_v16 = vpack.c.bf16 %v12947_v4, %v4848_v10  ;;  %14426 = vmatprep.subr.bf16.mxu1 %v16941_v36 }
 0x5f7   : > { %12838 = vmatmul.mubr.f32.vlgmr.msra.gmra.mrb[54].mxu1 %v10332_v43  ;;  %v12950_v23 = vpop.f32.mrb[142].mxu0 }
 0x5f8   : > { %14428 = vmatpush3.bf16.msra.mxu1 %v16941_v36  ;;  %v4858_v48 = vpop.f32.mrb[143].mxu0  ;;  %12840 = vmatprep.mubr.f32.mxu1 %v10333_v47 }
 0x5f9   : > { %v17036_v49 = vpack.c.bf16 %v12950_v23, %v4858_v48  ;;  %14430 = vmatprep.subr.bf16.mxu1 %v16951_v50  ;;  %v10376_v23 = vld [vmem:[%s18612_s7 + $0x1e0] sm:$0xff] }
 0x5fb   : > { %12841 = vmatmul.mubr.f32.gmra.mrb[56].mxu1 %v10334_v28  ;;  %v12953_v51 = vpop.f32.mrb[144].mxu0 }
 0x5fc   : > { %14432 = vmatpush3.bf16.msra.mxu1 %v16951_v50  ;;  %v4868_v40 = vpop.f32.mrb[145].mxu0  ;;  %12843 = vmatprep.mubr.f32.mxu1 %v10335_v34 }
 0x5fd   : > { %v17046_v54 = vpack.c.bf16 %v12953_v51, %v4868_v40  ;;  %14434 = vmatprep.subr.bf16.mxu1 %v16961_v6  ;;  %v10378_v51 = vld [vmem:[%s18612_s7 + $0x1f0] sm:$0xff] }
 0x5ff   : > { %12844 = vmatmul.mubr.f32.gmra.mrb[58].mxu1 %v10336_v53  ;;  %v12956_v46 = vpop.f32.mrb[146].mxu0 }
 0x600   : > { %14436 = vmatpush3.bf16.msra.mxu1 %v16961_v6  ;;  %v4878_v58 = vpop.f32.mrb[147].mxu0  ;;  %12846 = vmatprep.mubr.f32.mxu1 %v10337_v52 }
 0x601   : > { %v17056_v59 = vpack.c.bf16 %v12956_v46, %v4878_v58  ;;  %14438 = vmatprep.subr.bf16.mxu1 %v16971_v12  ;;  %v10397_v46 = vld [vmem:[%s18612_s7 + $0x200] sm:$0xff]  ;;  %v10398_v58 = vld [vmem:[%s18612_s7 + $0x208] sm:$0xff] }
 0x603   : > { %12847 = vmatmul.mubr.f32.gmra.mrb[60].mxu1 %v10338_v57  ;;  %v12959_v55 = vpop.f32.mrb[148].mxu0  ;;  %v10399_v57 = vld [vmem:[%s18612_s7 + $0x210] sm:$0xff] }
 0x604   : > { %14440 = vmatpush3.bf16.msra.mxu1 %v16971_v12  ;;  %v4888_v18 = vpop.f32.mrb[149].mxu0  ;;  %12849 = vmatprep.mubr.f32.mxu1 %v10339_v8  ;;  %v10401_v8 = vld [vmem:[%s18612_s7 + $0x220] sm:$0xff] }
 0x605   : > { %v17066_v26 = vpack.c.bf16 %v12959_v55, %v4888_v18  ;;  %14442 = vmatprep.subr.bf16.mxu1 %v16981_v20  ;;  %v10402_v55 = vld [vmem:[%s18612_s7 + $0x228] sm:$0xff]  ;;  %v10403_v18 = vld [vmem:[%s18612_s7 + $0x230] sm:$0xff] }
 0x607   : > { %12850 = vmatmul.mubr.f32.gmra.mrb[62].mxu1 %v10340_v3  ;;  %v12962_v0 = vpop.f32.mrb[150].mxu0  ;;  %v10404_v3 = vld [vmem:[%s18612_s7 + $0x238] sm:$0xff] }
 0x608   : > { %14444 = vmatpush3.bf16.msra.mxu1 %v16981_v20  ;;  %v4898_v36 = vpop.f32.mrb[151].mxu0  ;;  %12852 = vmatprep.mubr.f32.mxu1 %v10341_v62  ;;  %v10406_v62 = vld [vmem:[%s18612_s7 + $0x248] sm:$0xff] }
 0x609   : > { %v17076_v44 = vpack.c.bf16 %v12962_v0, %v4898_v36  ;;  %14446 = vmatprep.subr.bf16.mxu1 %v16991_v25  ;;  %v10407_v0 = vld [vmem:[%s18612_s7 + $0x250] sm:$0xff]  ;;  %v10408_v36 = vld [vmem:[%s18612_s7 + $0x258] sm:$0xff] }
 0x60b   : > { %12853 = vmatmul.mubr.f32.gmra.mrb[64].mxu1 %v10342_v63  ;;  %v12965_v60 = vpop.f32.mrb[152].mxu0  ;;  %v10409_v63 = vld [vmem:[%s18612_s7 + $0x260] sm:$0xff] }
 0x60c   : > { %14448 = vmatpush3.bf16.msra.mxu1 %v16991_v25  ;;  %v4908_v50 = vpop.f32.mrb[153].mxu0  ;;  %12855 = vmatprep.mubr.f32.mxu1 %v10343_v1  ;;  %v10411_v1 = vld [vmem:[%s18612_s7 + $0x270] sm:$0xff] }
 0x60d   : > { %v17086_v56 = vpack.c.bf16 %v12965_v60, %v4908_v50  ;;  %14450 = vmatprep.subr.bf16.mxu1 %v17001_v32  ;;  %v10412_v60 = vld [vmem:[%s18612_s7 + $0x278] sm:$0xff]  ;;  %v10430_v50 = vld [vmem:[%s18612_s7 + $0x280] sm:$0xff] }
 0x60f   : > { %12856 = vmatmul.mubr.f32.gmra.mrb[66].mxu1 %v10344_v9  ;;  %v12968_v61 = vpop.f32.mrb[154].mxu0  ;;  %v10431_v9 = vld [vmem:[%s18612_s7 + $0x288] sm:$0xff] }
 0x610   : > { %14452 = vmatpush3.bf16.msra.mxu1 %v17001_v32  ;;  %v4918_v6 = vpop.f32.mrb[155].mxu0  ;;  %12858 = vmatprep.mubr.f32.mxu1 %v10345_v5  ;;  %v10433_v5 = vld [vmem:[%s18612_s7 + $0x298] sm:$0xff] }
 0x611   : > { %v17096_v7 = vpack.c.bf16 %v12968_v61, %v4918_v6  ;;  %14454 = vmatprep.subr.bf16.mxu1 %v17011_v38  ;;  %v10434_v61 = vld [vmem:[%s18612_s7 + $0x2a0] sm:$0xff]  ;;  %v10435_v6 = vld [vmem:[%s18612_s7 + $0x2a8] sm:$0xff] }
 0x613   : > { %12859 = vmatmul.mubr.f32.gmra.mrb[68].mxu1 %v10346_v2  ;;  %v13029_v11 = vpop.f32.mrb[156].mxu0  ;;  %v10436_v2 = vld [vmem:[%s18612_s7 + $0x2b0] sm:$0xff] }
 0x614   : > { %14456 = vmatpush3.bf16.msra.mxu1 %v17011_v38  ;;  %v5173_v12 = vpop.f32.mrb[157].mxu0  ;;  %12919 = vmatprep.mubr.f32.mxu1 %v10364_v15  ;;  %v10438_v15 = vld [vmem:[%s18612_s7 + $0x2c0] sm:$0xff] }
 0x615   : > { %v17106_v14 = vpack.c.bf16 %v13029_v11, %v5173_v12  ;;  %14458 = vmatprep.subr.bf16.mxu1 %v17024_v16  ;;  %v10439_v11 = vld [vmem:[%s18612_s7 + $0x2c8] sm:$0xff]  ;;  %v10440_v12 = vld [vmem:[%s18612_s7 + $0x2d0] sm:$0xff] }
 0x617   : > { %12920 = vmatmul.mubr.f32.vlgmr.msra.gmra.mrb[54].mxu1 %v10365_v13  ;;  %v13032_v17 = vpop.f32.mrb[158].mxu0  ;;  %v10441_v13 = vld [vmem:[%s18612_s7 + $0x2d8] sm:$0xff] }
 0x618   : > { %14460 = vmatpush3.bf16.msra.mxu1 %v17024_v16  ;;  %v5183_v20 = vpop.f32.mrb[159].mxu0  ;;  %12922 = vmatprep.mubr.f32.mxu1 %v10366_v22  ;;  %v10375_v16 = vld [vmem:[%s18612_s7 + $0x1d8] sm:$0xff]  ;;  %v10443_v22 = vld [vmem:[%s18612_s7 + $0x2e8] sm:$0xff] }
 0x619   : > { %v17116_v19 = vpack.c.bf16 %v13032_v17, %v5183_v20  ;;  %14462 = vmatprep.subr.bf16.mxu1 %v17036_v49  ;;  %v10444_v17 = vld [vmem:[%s18612_s7 + $0x2f0] sm:$0xff]  ;;  %v10445_v20 = vld [vmem:[%s18612_s7 + $0x2f8] sm:$0xff] }
 0x61b   : > { %12923 = vmatmul.mubr.f32.gmra.mrb[56].mxu1 %v10367_v21  ;;  %v13035_v24 = vpop.f32.mrb[160].mxu0  ;;  %v10463_v21 = vld [vmem:[%s18616_s11 + $0x4] sm:$0xf] }
 0x61c   : > { %14464 = vmatpush3.bf16.msra.mxu1 %v17036_v49  ;;  %v5193_v25 = vpop.f32.mrb[161].mxu0  ;;  %12925 = vmatprep.mubr.f32.mxu1 %v10368_v27  ;;  %v10377_v49 = vld [vmem:[%s18612_s7 + $0x1e8] sm:$0xff]  ;;  %v5449_v27 = vpop.permute.xlu0 %5448 }
 0x61d   : > { %v17126_v30 = vpack.c.bf16 %v13035_v24, %v5193_v25  ;;  %14466 = vmatprep.subr.bf16.mxu1 %v17046_v54  ;;  %13133 = vmatprep.subr.msk.mxu0 %vm5608_vm3, %v10463_v21 }
 0x61f   : > { %12926 = vmatmul.mubr.f32.gmra.mrb[58].mxu1 %v10369_v29  ;;  %v13038_v31 = vpop.f32.mrb[162].mxu0 }
 0x620   : > { %14468 = vmatpush3.bf16.msra.mxu1 %v17046_v54  ;;  %v5203_v32 = vpop.f32.mrb[163].mxu0  ;;  %12928 = vmatprep.mubr.f32.mxu1 %v10370_v33  ;;  %v10379_v54 = vld [vmem:[%s18612_s7 + $0x1f8] sm:$0xff]  ;;  %v5459_v25 = vpop.permute.xlu0 %5458 }
 0x621   : > { %v17136_v39 = vpack.c.bf16 %v13038_v31, %v5203_v32  ;;  %14470 = vmatprep.subr.bf16.mxu1 %v17056_v59 }
 0x623   : > { %12929 = vmatmul.mubr.f32.gmra.mrb[60].mxu1 %v10371_v35  ;;  %v13041_v45 = vpop.f32.mrb[164].mxu0 }
 0x624   : > { %14472 = vmatpush3.bf16.msra.mxu1 %v17056_v59  ;;  %v5213_v38 = vpop.f32.mrb[165].mxu0  ;;  %12931 = vmatprep.mubr.f32.mxu1 %v10372_v37  ;;  %v10400_v59 = vld [vmem:[%s18612_s7 + $0x218] sm:$0xff] }
 0x625   : > { %v14505_v4 = vpack.c.bf16 %v13041_v45, %v5213_v38  ;;  %14474 = vmatprep.subr.bf16.mxu1 %v17066_v26 }
 0x627   : > { %12932 = vmatmul.mubr.f32.gmra.mrb[62].mxu1 %v10373_v41  ;;  %v13044_v10 = vpop.f32.mrb[166].mxu0 }
 0x628   : > { %14476 = vmatpush3.bf16.msra.mxu1 %v17066_v26  ;;  %v5223_v43 = vpop.f32.mrb[167].mxu0  ;;  %12934 = vmatprep.mubr.f32.mxu1 %v10374_v42  ;;  %v10405_v26 = vld [vmem:[%s18612_s7 + $0x240] sm:$0xff] }
 0x629   : > { %v14509_v47 = vpack.c.bf16 %v13044_v10, %v5223_v43  ;;  %14478 = vmatprep.subr.bf16.mxu1 %v17076_v44  ;;  %v17289_v43 = vld [vmem:[%s18616_s11 + $0x8] sm:$0xf] }
 0x62b   : > { %12935 = vmatmul.mubr.f32.gmra.mrb[64].mxu1 %v10375_v16  ;;  %v13047_v48 = vpop.f32.mrb[168].mxu0 }
 0x62c   : > { %14480 = vmatpush3.bf16.msra.mxu1 %v17076_v44  ;;  %v5233_v28 = vpop.f32.mrb[169].mxu0  ;;  %12937 = vmatprep.mubr.f32.mxu1 %v10376_v23  ;;  %v10410_v44 = vld [vmem:[%s18612_s7 + $0x268] sm:$0xff] }
 0x62d   : > { %v14513_v34 = vpack.c.bf16 %v13047_v48, %v5233_v28  ;;  %14482 = vmatprep.subr.bf16.mxu1 %v17086_v56 }
 0x62f   : > { %12938 = vmatmul.mubr.f32.gmra.mrb[66].mxu1 %v10377_v49  ;;  %v13050_v40 = vpop.f32.mrb[170].mxu0 }
 0x630   : > { %14484 = vmatpush3.bf16.msra.mxu1 %v17086_v56  ;;  %v5243_v53 = vpop.f32.mrb[171].mxu0  ;;  %12940 = vmatprep.mubr.f32.mxu1 %v10378_v51  ;;  %v10432_v56 = vld [vmem:[%s18612_s7 + $0x290] sm:$0xff] }
 0x631   : > { %v14517_v52 = vpack.c.bf16 %v13050_v40, %v5243_v53  ;;  %14486 = vmatprep.subr.bf16.mxu1 %v17096_v7 }
 0x633   : > { %12941 = vmatmul.mubr.f32.gmra.mrb[68].mxu1 %v10379_v54 }
 0x634   : > { %14488 = vmatpush3.bf16.msra.mxu1 %v17096_v7  ;;  %13001 = vmatprep.mubr.f32.mxu1 %v10397_v46  ;;  %v10437_v7 = vld [vmem:[%s18612_s7 + $0x2b8] sm:$0xff] }
 0x635   : > { %14490 = vmatprep.subr.bf16.mxu1 %v17106_v14 }
 0x637   : > { %13002 = vmatmul.mubr.f32.vlgmr.msra.gmra.mrb[54].mxu1 %v10398_v58 }
 0x638   : > { %14492 = vmatpush3.bf16.msra.mxu1 %v17106_v14  ;;  %13004 = vmatprep.mubr.f32.mxu1 %v10399_v57  ;;  %v10442_v14 = vld [vmem:[%s18612_s7 + $0x2e0] sm:$0xff] }
 0x639   : > { %14494 = vmatprep.subr.bf16.mxu1 %v17116_v19 }
 0x63b   : > { %13005 = vmatmul.mubr.f32.gmra.mrb[56].mxu1 %v10400_v59 }
 0x63c   : > { %14496 = vmatpush3.bf16.msra.mxu1 %v17116_v19  ;;  %13007 = vmatprep.mubr.f32.mxu1 %v10401_v8  ;;  %v5454_v19 = vpop.permute.xlu1 %5453 }
 0x63d   : > { %14498 = vmatprep.subr.bf16.mxu1 %v17126_v30 }
 0x63f   : > { %13008 = vmatmul.mubr.f32.gmra.mrb[58].mxu1 %v10402_v55 }
 0x640   : > { %14500 = vmatpush3.bf16.msra.mxu1 %v17126_v30  ;;  %13010 = vmatprep.mubr.f32.mxu1 %v10403_v18  ;;  %v5464_v24 = vpop.permute.xlu1 %5463  ;;  %v5469_v30 = vpop.permute.xlu0 %5468 }
 0x641   : > { %14502 = vmatprep.subr.bf16.mxu1 %v17136_v39 }
 0x643   : > { %13011 = vmatmul.mubr.f32.gmra.mrb[60].mxu1 %v10404_v3 }
 0x644   : > { %14504 = vmatpush3.bf16.msra.mxu1 %v17136_v39  ;;  %13013 = vmatprep.mubr.f32.mxu1 %v10405_v26  ;;  %v5474_v29 = vpop.permute.xlu1 %5473  ;;  %v5479_v38 = vpop.permute.xlu0 %5478 }
 0x645   : > { %14506 = vmatprep.subr.bf16.mxu1 %v14505_v4 }
 0x647   : > { %13014 = vmatmul.mubr.f32.gmra.mrb[62].mxu1 %v10406_v62 }
 0x648   : > { %14508 = vmatpush3.bf16.msra.mxu1 %v14505_v4  ;;  %13016 = vmatprep.mubr.f32.mxu1 %v10407_v0  ;;  %v5484_v39 = vpop.permute.xlu1 %5483  ;;  %v5489_v51 = vpop.permute.xlu0 %5488 }
 0x649   : > { %14510 = vmatprep.subr.bf16.mxu1 %v14509_v47 }
 0x64b   : > { %13017 = vmatmul.mubr.f32.gmra.mrb[64].mxu1 %v10408_v36 }
 0x64c   : > { %14512 = vmatpush3.bf16.msra.mxu1 %v14509_v47  ;;  %13019 = vmatprep.mubr.f32.mxu1 %v10409_v63  ;;  %v5494_v49 = vpop.permute.xlu1 %5493  ;;  %v5499_v55 = vpop.permute.xlu0 %5498 }
 0x64d   : > { %14514 = vmatprep.subr.bf16.mxu1 %v14513_v34 }
 0x64f   : > { %13020 = vmatmul.mubr.f32.gmra.mrb[66].mxu1 %v10410_v44 }
 0x650   : > { %14516 = vmatpush3.bf16.msra.mxu1 %v14513_v34  ;;  %13022 = vmatprep.mubr.f32.mxu1 %v10411_v1  ;;  %v5504_v57 = vpop.permute.xlu1 %5503 }
 0x651   : > { %14518 = vmatprep.subr.bf16.mxu1 %v14517_v52 }
 0x653   : > { %13023 = vmatmul.mubr.f32.gmra.mrb[68].mxu1 %v10412_v60 }
 0x654   : > { %14520 = vmatpush3.bf16.msra.mxu1 %v14517_v52  ;;  %13083 = vmatprep.mubr.f32.mxu1 %v10430_v50  ;;  %v5514_v60 = vpop.permute.xlu1 %5513 }
 0x657   : > { %13084 = vmatmul.mubr.f32.vlgmr.msra.gmra.mrb[54].mxu1 %v10431_v9  ;;  %v5509_v9 = vpop.permute.xlu0 %5508 }
 0x658   : > { %13086 = vmatprep.mubr.f32.mxu1 %v10432_v56 }
 0x65b   : > { %13087 = vmatmul.mubr.f32.gmra.mrb[56].mxu1 %v10433_v5 }
 0x65c   : > { %13089 = vmatprep.mubr.f32.mxu1 %v10434_v61 }
 0x65f   : > { %13090 = vmatmul.mubr.f32.gmra.mrb[58].mxu1 %v10435_v6 }
 0x660   : > { %13092 = vmatprep.mubr.f32.mxu1 %v10436_v2 }
 0x663   : > { %13093 = vmatmul.mubr.f32.gmra.mrb[60].mxu1 %v10437_v7 }
 0x664   : > { %13095 = vmatprep.mubr.f32.mxu1 %v10438_v15  ;;  %v5524_v15 = vpop.permute.xlu1 %5523 }
 0x667   : > { %13096 = vmatmul.mubr.f32.gmra.mrb[62].mxu1 %v10439_v11 }
 0x668   : > { %13098 = vmatprep.mubr.f32.mxu1 %v10440_v12 }
 0x66b   : > { %13099 = vmatmul.mubr.f32.gmra.mrb[64].mxu1 %v10441_v13  ;;  %v5519_v13 = vpop.permute.xlu0 %5518 }
 0x66c   : > { %13101 = vmatprep.mubr.f32.mxu1 %v10442_v14 }
 0x66f   : > { %13102 = vmatmul.mubr.f32.gmra.mrb[66].mxu1 %v10443_v22 }
 0x670   : > { %13104 = vmatprep.mubr.f32.mxu1 %v10444_v17 }
 0x673   : > { %13105 = vmatmul.mubr.f32.gmra.mrb[68].mxu1 %v10445_v20 }
 0x72a   : > { %v13085_v33 = vpop.f32.mrb[54].mxu1 }
 0x72b   : > { %v5527_v31 = vadd.f32 %v13085_v33, %v5454_v19  ;;  %v5335_v32 = vpop.f32.mrb[55].mxu1 }
 0x72c   : > { %v5526_v35 = vadd.f32 %v5449_v27, %v5335_v32  ;;  %v10531_v27 = vld [vmem:[%s18616_s11 + $0xc] sm:$0xf] }
 0x72d   : > { %v17282_v41 = vmax.f32 %v5527_v31, 0.0 }
 0x72e   : > { %v17280_v37 = vmax.f32 %v5526_v35, 0.0  ;;  %v13088_v45 = vpop.f32.mrb[56].mxu1 }
 0x72f   : > { %v5529_v4 = vadd.f32 %v13088_v45, %v5464_v24  ;;  %v5345_v42 = vpop.f32.mrb[57].mxu1  ;;  %v10565_v24 = vld [vmem:[%s18616_s11 + $0x10] sm:$0xf] }
 0x730   : > { %v5528_v10 = vadd.f32 %v5459_v25, %v5345_v42  ;;  %13109 = vmatprep.mubr.msk.f32.mxu0 %vm5559_vm4, %v17280_v37  ;;  %v10599_v25 = vld [vmem:[%s18616_s11 + $0x14] sm:$0xf] }
 0x731   : > { %13110 = vmatmul.mubr.msk.f32.vlgmr.msra.gmra.mrb[172].mxu0 %vm5559_vm4, %v17282_v41  ;;  %v17296_v23 = vmax.f32 %v5529_v4, 0.0 }
 0x732   : > { %v17293_v16 = vmax.f32 %v5528_v10, 0.0  ;;  %v13091_v47 = vpop.f32.mrb[58].mxu1  ;;  %13134 = vmatpush3.msk.msra.mxu0 %vm5608_vm3, %v10463_v21 }
 0x733   : > { %v5531_v48 = vadd.f32 %v13091_v47, %v5474_v29  ;;  %v5355_v28 = vpop.f32.mrb[59].mxu1  ;;  %13271 = vmatprep.subr.msk.mxu0 %vm5608_vm3, %v17289_v43  ;;  %v10481_v29 = vld [vmem:[%s18615_s10 + $0x80] sm:$0xff] }
 0x734   : > { %v5530_v34 = vadd.f32 %v5469_v30, %v5355_v28  ;;  %13112 = vmatprep.mubr.msk.f32.mxu0 %vm5559_vm4, %v17293_v16  ;;  %13191 = vmatprep.mubr.f32.mxu1 %v10481_v29 }
 0x735   : > { %13113 = vmatmul.mubr.msk.f32.gmra.mrb[174].mxu0 %vm5559_vm4, %v17296_v23  ;;  %v17306_v54 = vmax.f32 %v5531_v48, 0.0 }
 0x736   : > { %v17304_v40 = vmax.f32 %v5530_v34, 0.0  ;;  %v13094_v53 = vpop.f32.mrb[60].mxu1 }
 0x737   : > { %v5533_v52 = vadd.f32 %v13094_v53, %v5484_v39  ;;  %v5365_v46 = vpop.f32.mrb[61].mxu1 }
 0x738   : > { %v5532_v58 = vadd.f32 %v5479_v38, %v5365_v46  ;;  %13115 = vmatprep.mubr.msk.f32.mxu0 %vm5559_vm4, %v17304_v40 }
 0x739   : > { %13116 = vmatmul.mubr.msk.f32.gmra.mrb[176].mxu0 %vm5559_vm4, %v17306_v54  ;;  %v17314_v18 = vmax.f32 %v5533_v52, 0.0 }
 0x73a   : > { %v17312_v59 = vmax.f32 %v5532_v58, 0.0  ;;  %v13097_v8 = vpop.f32.mrb[62].mxu1 }
 0x73b   : > { %v5535_v3 = vadd.f32 %v13097_v8, %v5494_v49  ;;  %v5375_v26 = vpop.f32.mrb[63].mxu1 }
 0x73c   : > { %v5534_v62 = vadd.f32 %v5489_v51, %v5375_v26  ;;  %13118 = vmatprep.mubr.msk.f32.mxu0 %vm5559_vm4, %v17312_v59 }
 0x73d   : > { %13119 = vmatmul.mubr.msk.f32.gmra.mrb[178].mxu0 %vm5559_vm4, %v17314_v18  ;;  %v17322_v63 = vmax.f32 %v5535_v3, 0.0 }
 0x73e   : > { %v17320_v0 = vmax.f32 %v5534_v62, 0.0  ;;  %v13100_v36 = vpop.f32.mrb[64].mxu1 }
 0x73f   : > { %v5537_v44 = vadd.f32 %v13100_v36, %v5504_v57  ;;  %v5385_v1 = vpop.f32.mrb[65].mxu1 }
 0x740   : > { %v5536_v50 = vadd.f32 %v5499_v55, %v5385_v1  ;;  %13121 = vmatprep.mubr.msk.f32.mxu0 %vm5559_vm4, %v17320_v0 }
 0x741   : > { %13122 = vmatmul.mubr.msk.f32.gmra.mrb[180].mxu0 %vm5559_vm4, %v17322_v63  ;;  %v17330_v61 = vmax.f32 %v5537_v44, 0.0 }
 0x742   : > { %v17328_v56 = vmax.f32 %v5536_v50, 0.0  ;;  %v13103_v5 = vpop.f32.mrb[66].mxu1 }
 0x743   : > { %v5539_v6 = vadd.f32 %v13103_v5, %v5514_v60  ;;  %v5395_v2 = vpop.f32.mrb[67].mxu1 }
 0x744   : > { %v5538_v7 = vadd.f32 %v5509_v9, %v5395_v2  ;;  %13124 = vmatprep.mubr.msk.f32.mxu0 %vm5559_vm4, %v17328_v56 }
 0x745   : > { %13125 = vmatmul.mubr.msk.f32.gmra.mrb[182].mxu0 %vm5559_vm4, %v17330_v61  ;;  %v17338_v14 = vmax.f32 %v5539_v6, 0.0 }
 0x746   : > { %v17336_v11 = vmax.f32 %v5538_v7, 0.0  ;;  %v13106_v12 = vpop.f32.mrb[68].mxu1 }
 0x747   : > { %v5541_v22 = vadd.f32 %v13106_v12, %v5524_v15  ;;  %v5405_v17 = vpop.f32.mrb[69].mxu1  ;;  %v10482_v15 = vld [vmem:[%s18615_s10 + $0x88] sm:$0xff]  ;;  %v10483_v12 = vld [vmem:[%s18615_s10 + $0x90] sm:$0xff] }
 0x748   : > { %v5540_v20 = vadd.f32 %v5519_v13, %v5405_v17  ;;  %13127 = vmatprep.mubr.msk.f32.mxu0 %vm5559_vm4, %v17336_v11 }
 0x749   : > { %13128 = vmatmul.mubr.msk.f32.gmra.mrb[184].mxu0 %vm5559_vm4, %v17338_v14  ;;  %v17346_v19 = vmax.f32 %v5541_v22, 0.0  ;;  %v10484_v22 = vld [vmem:[%s18615_s10 + $0x98] sm:$0xff] }
 0x74a   : > { %v17344_v21 = vmax.f32 %v5540_v20, 0.0  ;;  %v10485_v20 = vld [vmem:[%s18615_s10 + $0xa0] sm:$0xff] }
 0x74c   : > { %13130 = vmatprep.mubr.msk.f32.mxu0 %vm5559_vm4, %v17344_v21 }
 0x74d   : > { %13131 = vmatmul.mubr.msk.f32.gmra.mrb[186].mxu0 %vm5559_vm4, %v17346_v19 }
 0x74e   : > { %13135 = vmatprep.mubr.msk.f32.mxu0 %vm5559_vm4, %v17280_v37 }
 0x751   : > { %13136 = vmatmul.mubr.msk.f32.vlgmr.msra.gmra.mrb[188].mxu0 %vm5559_vm4, %v17282_v41 }
 0x752   : > { %13138 = vmatprep.mubr.msk.f32.mxu0 %vm5559_vm4, %v17293_v16  ;;  %13272 = vmatpush3.msk.msra.mxu0 %vm5608_vm3, %v17289_v43 }
 0x753   : > { %13353 = vmatprep.subr.msk.mxu0 %vm5608_vm3, %v10531_v27 }
 0x755   : > { %13139 = vmatmul.mubr.msk.f32.gmra.mrb[190].mxu0 %vm5559_vm4, %v17296_v23 }
 0x756   : > { %13141 = vmatprep.mubr.msk.f32.mxu0 %vm5559_vm4, %v17304_v40 }
 0x759   : > { %13142 = vmatmul.mubr.msk.f32.gmra.mrb[192].mxu0 %vm5559_vm4, %v17306_v54 }
 0x75a   : > { %13144 = vmatprep.mubr.msk.f32.mxu0 %vm5559_vm4, %v17312_v59 }
 0x75d   : > { %13145 = vmatmul.mubr.msk.f32.gmra.mrb[194].mxu0 %vm5559_vm4, %v17314_v18 }
 0x75e   : > { %13147 = vmatprep.mubr.msk.f32.mxu0 %vm5559_vm4, %v17320_v0 }
 0x761   : > { %13148 = vmatmul.mubr.msk.f32.gmra.mrb[196].mxu0 %vm5559_vm4, %v17322_v63 }
 0x762   : > { %13150 = vmatprep.mubr.msk.f32.mxu0 %vm5559_vm4, %v17328_v56 }
 0x765   : > { %13151 = vmatmul.mubr.msk.f32.gmra.mrb[198].mxu0 %vm5559_vm4, %v17330_v61 }
 0x766   : > { %13153 = vmatprep.mubr.msk.f32.mxu0 %vm5559_vm4, %v17336_v11 }
 0x769   : > { %13154 = vmatmul.mubr.msk.f32.gmra.mrb[200].mxu0 %vm5559_vm4, %v17338_v14 }
 0x76a   : > { %13156 = vmatprep.mubr.msk.f32.mxu0 %vm5559_vm4, %v17344_v21 }
 0x76d   : > { %13157 = vmatmul.mubr.msk.f32.gmra.mrb[202].mxu0 %vm5559_vm4, %v17346_v19 }
 0x76e   : > { %13273 = vmatprep.mubr.msk.f32.mxu0 %vm5559_vm4, %v17280_v37 }
 0x771   : > { %13274 = vmatmul.mubr.msk.f32.vlgmr.msra.gmra.mrb[204].mxu0 %vm5559_vm4, %v17282_v41 }
 0x772   : > { %13276 = vmatprep.mubr.msk.f32.mxu0 %vm5559_vm4, %v17293_v16  ;;  %13354 = vmatpush3.msk.msra.mxu0 %vm5608_vm3, %v10531_v27  ;;  %v10486_v27 = vld [vmem:[%s18615_s10 + $0xa8] sm:$0xff] }
 0x773   : > { %13435 = vmatprep.subr.msk.mxu0 %vm5608_vm3, %v10565_v24 }
 0x775   : > { %13277 = vmatmul.mubr.msk.f32.gmra.mrb[206].mxu0 %vm5559_vm4, %v17296_v23 }
 0x776   : > { %13279 = vmatprep.mubr.msk.f32.mxu0 %vm5559_vm4, %v17304_v40 }
 0x779   : > { %13280 = vmatmul.mubr.msk.f32.gmra.mrb[208].mxu0 %vm5559_vm4, %v17306_v54 }
 0x77a   : > { %13282 = vmatprep.mubr.msk.f32.mxu0 %vm5559_vm4, %v17312_v59 }
 0x77d   : > { %13283 = vmatmul.mubr.msk.f32.gmra.mrb[210].mxu0 %vm5559_vm4, %v17314_v18 }
 0x77e   : > { %13285 = vmatprep.mubr.msk.f32.mxu0 %vm5559_vm4, %v17320_v0 }
 0x781   : > { %13286 = vmatmul.mubr.msk.f32.gmra.mrb[212].mxu0 %vm5559_vm4, %v17322_v63 }
 0x782   : > { %13288 = vmatprep.mubr.msk.f32.mxu0 %vm5559_vm4, %v17328_v56 }
 0x785   : > { %13289 = vmatmul.mubr.msk.f32.gmra.mrb[214].mxu0 %vm5559_vm4, %v17330_v61 }
 0x786   : > { %13291 = vmatprep.mubr.msk.f32.mxu0 %vm5559_vm4, %v17336_v11 }
 0x789   : > { %13292 = vmatmul.mubr.msk.f32.gmra.mrb[216].mxu0 %vm5559_vm4, %v17338_v14 }
 0x78a   : > { %13294 = vmatprep.mubr.msk.f32.mxu0 %vm5559_vm4, %v17344_v21 }
 0x78d   : > { %13295 = vmatmul.mubr.msk.f32.gmra.mrb[218].mxu0 %vm5559_vm4, %v17346_v19 }
 0x78e   : > { %13355 = vmatprep.mubr.msk.f32.mxu0 %vm5559_vm4, %v17280_v37 }
 0x791   : > { %13356 = vmatmul.mubr.msk.f32.vlgmr.msra.gmra.mrb[220].mxu0 %vm5559_vm4, %v17282_v41 }
 0x792   : > { %13358 = vmatprep.mubr.msk.f32.mxu0 %vm5559_vm4, %v17293_v16  ;;  %13436 = vmatpush3.msk.msra.mxu0 %vm5608_vm3, %v10565_v24 }
 0x793   : > { %13517 = vmatprep.subr.msk.mxu0 %vm5608_vm3, %v10599_v25 }
 0x795   : > { %13359 = vmatmul.mubr.msk.f32.gmra.mrb[222].mxu0 %vm5559_vm4, %v17296_v23 }
 0x796   : > { %13361 = vmatprep.mubr.msk.f32.mxu0 %vm5559_vm4, %v17304_v40 }
 0x799   : > { %13362 = vmatmul.mubr.msk.f32.gmra.mrb[224].mxu0 %vm5559_vm4, %v17306_v54 }
 0x79a   : > { %13364 = vmatprep.mubr.msk.f32.mxu0 %vm5559_vm4, %v17312_v59 }
 0x79d   : > { %13365 = vmatmul.mubr.msk.f32.gmra.mrb[226].mxu0 %vm5559_vm4, %v17314_v18 }
 0x79e   : > { %13367 = vmatprep.mubr.msk.f32.mxu0 %vm5559_vm4, %v17320_v0 }
 0x7a1   : > { %13368 = vmatmul.mubr.msk.f32.gmra.mrb[228].mxu0 %vm5559_vm4, %v17322_v63 }
 0x7a2   : > { %13370 = vmatprep.mubr.msk.f32.mxu0 %vm5559_vm4, %v17328_v56 }
 0x7a5   : > { %13371 = vmatmul.mubr.msk.f32.gmra.mrb[230].mxu0 %vm5559_vm4, %v17330_v61 }
 0x7a6   : > { %13373 = vmatprep.mubr.msk.f32.mxu0 %vm5559_vm4, %v17336_v11 }
 0x7a9   : > { %13374 = vmatmul.mubr.msk.f32.gmra.mrb[232].mxu0 %vm5559_vm4, %v17338_v14 }
 0x7aa   : > { %13376 = vmatprep.mubr.msk.f32.mxu0 %vm5559_vm4, %v17344_v21 }
 0x7ad   : > { %13377 = vmatmul.mubr.msk.f32.gmra.mrb[234].mxu0 %vm5559_vm4, %v17346_v19 }
 0x7ae   : > { %13437 = vmatprep.mubr.msk.f32.mxu0 %vm5559_vm4, %v17280_v37 }
 0x7b1   : > { %13438 = vmatmul.mubr.msk.f32.vlgmr.msra.gmra.mrb[236].mxu0 %vm5559_vm4, %v17282_v41 }
 0x7b2   : > { %13440 = vmatprep.mubr.msk.f32.mxu0 %vm5559_vm4, %v17293_v16  ;;  %13518 = vmatpush3.msk.msra.mxu0 %vm5608_vm3, %v10599_v25  ;;  %v10487_v25 = vld [vmem:[%s18615_s10 + $0xb0] sm:$0xff] }
 0x7b5   : > { %13441 = vmatmul.mubr.msk.f32.gmra.mrb[238].mxu0 %vm5559_vm4, %v17296_v23 }
 0x7b6   : > { %13443 = vmatprep.mubr.msk.f32.mxu0 %vm5559_vm4, %v17304_v40 }
 0x7b9   : > { %13444 = vmatmul.mubr.msk.f32.gmra.mrb[240].mxu0 %vm5559_vm4, %v17306_v54 }
 0x7ba   : > { %13446 = vmatprep.mubr.msk.f32.mxu0 %vm5559_vm4, %v17312_v59 }
 0x7bd   : > { %13447 = vmatmul.mubr.msk.f32.gmra.mrb[242].mxu0 %vm5559_vm4, %v17314_v18 }
 0x7be   : > { %13449 = vmatprep.mubr.msk.f32.mxu0 %vm5559_vm4, %v17320_v0 }
 0x7c1   : > { %13450 = vmatmul.mubr.msk.f32.gmra.mrb[244].mxu0 %vm5559_vm4, %v17322_v63 }
 0x7c2   : > { %13452 = vmatprep.mubr.msk.f32.mxu0 %vm5559_vm4, %v17328_v56 }
 0x7c5   : > { %13453 = vmatmul.mubr.msk.f32.gmra.mrb[246].mxu0 %vm5559_vm4, %v17330_v61 }
 0x7c6   : > { %13455 = vmatprep.mubr.msk.f32.mxu0 %vm5559_vm4, %v17336_v11 }
 0x7c9   : > { %13456 = vmatmul.mubr.msk.f32.gmra.mrb[248].mxu0 %vm5559_vm4, %v17338_v14 }
 0x7ca   : > { %13458 = vmatprep.mubr.msk.f32.mxu0 %vm5559_vm4, %v17344_v21 }
 0x7cd   : > { %13459 = vmatmul.mubr.msk.f32.gmra.mrb[250].mxu0 %vm5559_vm4, %v17346_v19 }
 0x7ce   : > { %13519 = vmatprep.mubr.msk.f32.mxu0 %vm5559_vm4, %v17280_v37 }
 0x7d1   : > { %13520 = vmatmul.mubr.msk.f32.vlgmr.msra.gmra.mrb[252].mxu0 %vm5559_vm4, %v17282_v41 }
 0x7d2   : > { %13522 = vmatprep.mubr.msk.f32.mxu0 %vm5559_vm4, %v17293_v16 }
 0x7d5   : > { %13523 = vmatmul.mubr.msk.f32.gmra.mrb[254].mxu0 %vm5559_vm4, %v17296_v23 }
 0x7d6   : > { %13525 = vmatprep.mubr.msk.f32.mxu0 %vm5559_vm4, %v17304_v40 }
 0x7d9   : > { %13526 = vmatmul.mubr.msk.f32.gmra.mrb[0].mxu0 %vm5559_vm4, %v17306_v54 }
 0x7da   : > { %13528 = vmatprep.mubr.msk.f32.mxu0 %vm5559_vm4, %v17312_v59 }
 0x7dd   : > { %13529 = vmatmul.mubr.msk.f32.gmra.mrb[2].mxu0 %vm5559_vm4, %v17314_v18 }
 0x7de   : > { %13531 = vmatprep.mubr.msk.f32.mxu0 %vm5559_vm4, %v17320_v0 }
 0x7e1   : > { %13532 = vmatmul.mubr.msk.f32.gmra.mrb[4].mxu0 %vm5559_vm4, %v17322_v63 }
 0x7e2   : > { %13534 = vmatprep.mubr.msk.f32.mxu0 %vm5559_vm4, %v17328_v56 }
 0x7e5   : > { %13535 = vmatmul.mubr.msk.f32.gmra.mrb[6].mxu0 %vm5559_vm4, %v17330_v61 }
 0x7e6   : > { %13537 = vmatprep.mubr.msk.f32.mxu0 %vm5559_vm4, %v17336_v11 }
 0x7e9   : > { %13538 = vmatmul.mubr.msk.f32.gmra.mrb[8].mxu0 %vm5559_vm4, %v17338_v14 }
 0x7ea   : > { %13540 = vmatprep.mubr.msk.f32.mxu0 %vm5559_vm4, %v17344_v21 }
 0x7ed   : > { %13541 = vmatmul.mubr.msk.f32.gmra.mrb[10].mxu0 %vm5559_vm4, %v17346_v19 }
 0x804   : > { %v13111_v30 = vpop.f32.mrb[172].mxu0 }
 0x805   : > { %v5678_v33 = vpop.f32.mrb[173].mxu0 }
 0x806   : > { %v17532_v31 = vpack.c.bf16 %v13111_v30, %v5678_v33  ;;  %v10488_v33 = vld [vmem:[%s18615_s10 + $0xb8] sm:$0xff] }
 0x808   : > { %v13114_v32 = vpop.f32.mrb[174].mxu0 }
 0x809   : > { %v5688_v35 = vpop.f32.mrb[175].mxu0 }
 0x80a   : > { %v17534_v39 = vpack.c.bf16 %v13114_v32, %v5688_v35  ;;  %v10489_v32 = vld [vmem:[%s18615_s10 + $0xc0] sm:$0xff] }
 0x80c   : > { %v13117_v37 = vpop.f32.mrb[176].mxu0 }
 0x80d   : > { %v5698_v45 = vpop.f32.mrb[177].mxu0 }
 0x80e   : > { %v17536_v38 = vpack.c.bf16 %v13117_v37, %v5698_v45  ;;  %v10490_v37 = vld [vmem:[%s18615_s10 + $0xc8] sm:$0xff] }
 0x810   : > { %v13120_v41 = vpop.f32.mrb[178].mxu0 }
 0x811   : > { %v5708_v4 = vpop.f32.mrb[179].mxu0 }
 0x812   : > { %v17538_v42 = vpack.c.bf16 %v13120_v41, %v5708_v4 }
 0x814   : > { %v13123_v10 = vpop.f32.mrb[180].mxu0 }
 0x815   : > { %v5718_v43 = vpop.f32.mrb[181].mxu0 }
 0x816   : > { %v17540_v16 = vpack.c.bf16 %v13123_v10, %v5718_v43  ;;  %v10493_v43 = vld [vmem:[%s18615_s10 + $0xe0] sm:$0xff] }
 0x818   : > { %v13126_v47 = vpop.f32.mrb[182].mxu0 }
 0x819   : > { %v5728_v23 = vpop.f32.mrb[183].mxu0 }
 0x81a   : > { %v17542_v48 = vpack.c.bf16 %v13126_v47, %v5728_v23 }
 0x81c   : > { %v13129_v28 = vpop.f32.mrb[184].mxu0 }
 0x81d   : > { %v5738_v49 = vpop.f32.mrb[185].mxu0 }
 0x81e   : > { %v17544_v34 = vpack.c.bf16 %v13129_v28, %v5738_v49  ;;  %v10495_v49 = vld [vmem:[%s18615_s10 + $0xf0] sm:$0xff] }
 0x820   : > { %v13132_v51 = vpop.f32.mrb[186].mxu0 }
 0x821   : > { %v5748_v40 = vpop.f32.mrb[187].mxu0 }
 0x822   : > { %v17546_v53 = vpack.c.bf16 %v13132_v51, %v5748_v40 }
 0x824   : > { %v13137_v54 = vpop.f32.mrb[188].mxu0 }
 0x825   : > { %v5844_v52 = vpop.f32.mrb[189].mxu0 }
 0x826   : > { %v14521_v46 = vpack.c.bf16 %v13137_v54, %v5844_v52  ;;  %v5757_v52 = vld [vmem:[%s18615_s10] sm:$0xff] }
 0x828   : > { %v13140_v58 = vpop.f32.mrb[190].mxu0  ;;  %14522 = vmatprep.subr.bf16.mxu1 %v14521_v46 }
 0x829   : > { %v5854_v57 = vpop.f32.mrb[191].mxu0  ;;  %14524 = vmatpush3.bf16.msra.mxu1 %v14521_v46 }
 0x82a   : > { %v14525_v59 = vpack.c.bf16 %v13140_v58, %v5854_v57 }
 0x82c   : > { %v13143_v8 = vpop.f32.mrb[192].mxu0  ;;  %14526 = vmatprep.subr.bf16.mxu1 %v14525_v59 }
 0x82d   : > { %v5864_v55 = vpop.f32.mrb[193].mxu0  ;;  %14528 = vmatpush3.bf16.msra.mxu1 %v14525_v59  ;;  %v5759_v59 = vld [vmem:[%s18615_s10 + $0x10] sm:$0xff] }
 0x82e   : > { %v14529_v18 = vpack.c.bf16 %v13143_v8, %v5864_v55 }
 0x830   : > { %v13146_v3 = vpop.f32.mrb[194].mxu0  ;;  %14530 = vmatprep.subr.bf16.mxu1 %v14529_v18 }
 0x831   : > { %v5874_v26 = vpop.f32.mrb[195].mxu0  ;;  %14532 = vmatpush3.bf16.msra.mxu1 %v14529_v18 }
 0x832   : > { %v14533_v62 = vpack.c.bf16 %v13146_v3, %v5874_v26  ;;  %v5761_v3 = vld [vmem:[%s18615_s10 + $0x20] sm:$0xff] }
 0x834   : > { %v13149_v0 = vpop.f32.mrb[196].mxu0  ;;  %14534 = vmatprep.subr.bf16.mxu1 %v14533_v62 }
 0x835   : > { %v5884_v36 = vpop.f32.mrb[197].mxu0  ;;  %14536 = vmatpush3.bf16.msra.mxu1 %v14533_v62 }
 0x836   : > { %v14537_v63 = vpack.c.bf16 %v13149_v0, %v5884_v36  ;;  %v5762_v0 = vld [vmem:[%s18615_s10 + $0x28] sm:$0xff] }
 0x838   : > { %v13152_v44 = vpop.f32.mrb[198].mxu0  ;;  %14538 = vmatprep.subr.bf16.mxu1 %v14537_v63 }
 0x839   : > { %v5894_v1 = vpop.f32.mrb[199].mxu0  ;;  %14540 = vmatpush3.bf16.msra.mxu1 %v14537_v63  ;;  %v5763_v63 = vld [vmem:[%s18615_s10 + $0x30] sm:$0xff] }
 0x83a   : > { %v14541_v60 = vpack.c.bf16 %v13152_v44, %v5894_v1 }
 0x83c   : > { %v13155_v50 = vpop.f32.mrb[200].mxu0  ;;  %14542 = vmatprep.subr.bf16.mxu1 %v14541_v60 }
 0x83d   : > { %v5904_v9 = vpop.f32.mrb[201].mxu0  ;;  %14544 = vmatpush3.bf16.msra.mxu1 %v14541_v60  ;;  %v5764_v60 = vld [vmem:[%s18615_s10 + $0x38] sm:$0xff] }
 0x83e   : > { %v14545_v56 = vpack.c.bf16 %v13155_v50, %v5904_v9  ;;  %v5765_v9 = vld [vmem:[%s18615_s10 + $0x40] sm:$0xff] }
 0x840   : > { %v13158_v5 = vpop.f32.mrb[202].mxu0  ;;  %14546 = vmatprep.subr.bf16.mxu1 %v14545_v56 }
 0x841   : > { %v5914_v61 = vpop.f32.mrb[203].mxu0  ;;  %14548 = vmatpush3.bf16.msra.mxu1 %v14545_v56 }
 0x842   : > { %v14549_v6 = vpack.c.bf16 %v13158_v5, %v5914_v61  ;;  %v5766_v61 = vld [vmem:[%s18615_s10 + $0x48] sm:$0xff] }
 0x844   : > { %14550 = vmatprep.subr.bf16.mxu1 %v14549_v6  ;;  %v13275_v2 = vpop.f32.mrb[204].mxu0 }
 0x845   : > { %14552 = vmatpush3.bf16.msra.mxu1 %v14549_v6  ;;  %v6301_v7 = vpop.f32.mrb[205].mxu0 }
 0x846   : > { %v17551_v11 = vpack.c.bf16 %v13275_v2, %v6301_v7  ;;  %14554 = vmatprep.subr.bf16.mxu1 %v17532_v31  ;;  %v5767_v2 = vld [vmem:[%s18615_s10 + $0x50] sm:$0xff] }
 0x848   : > { %13192 = vmatmul.mubr.f32.vlgmr.msra.gmra.mrb[70].mxu1 %v10482_v15  ;;  %v13278_v13 = vpop.f32.mrb[206].mxu0 }
 0x849   : > { %14556 = vmatpush3.bf16.msra.mxu1 %v17532_v31  ;;  %v6311_v14 = vpop.f32.mrb[207].mxu0  ;;  %13194 = vmatprep.mubr.f32.mxu1 %v10483_v12 }
 0x84a   : > { %v17561_v17 = vpack.c.bf16 %v13278_v13, %v6311_v14  ;;  %14558 = vmatprep.subr.bf16.mxu1 %v17534_v39  ;;  %v5769_v13 = vld [vmem:[%s18615_s10 + $0x60] sm:$0xff] }
 0x84c   : > { %13195 = vmatmul.mubr.f32.gmra.mrb[72].mxu1 %v10484_v22  ;;  %v13281_v21 = vpop.f32.mrb[208].mxu0 }
 0x84d   : > { %14560 = vmatpush3.bf16.msra.mxu1 %v17534_v39  ;;  %v6321_v19 = vpop.f32.mrb[209].mxu0  ;;  %13197 = vmatprep.mubr.f32.mxu1 %v10485_v20 }
 0x84e   : > { %v17571_v24 = vpack.c.bf16 %v13281_v21, %v6321_v19  ;;  %14562 = vmatprep.subr.bf16.mxu1 %v17536_v38  ;;  %v5771_v21 = vld [vmem:[%s18615_s10 + $0x70] sm:$0xff] }
 0x850   : > { %13198 = vmatmul.mubr.f32.gmra.mrb[74].mxu1 %v10486_v27  ;;  %v13284_v29 = vpop.f32.mrb[210].mxu0 }
 0x851   : > { %14564 = vmatpush3.bf16.msra.mxu1 %v17536_v38  ;;  %v6331_v30 = vpop.f32.mrb[211].mxu0  ;;  %13200 = vmatprep.mubr.f32.mxu1 %v10487_v25  ;;  %v10491_v38 = vld [vmem:[%s18615_s10 + $0xd0] sm:$0xff] }
 0x852   : > { %v17581_v31 = vpack.c.bf16 %v13284_v29, %v6331_v30  ;;  %14566 = vmatprep.subr.bf16.mxu1 %v17538_v42  ;;  %v10515_v29 = vld [vmem:[%s18615_s10 + $0x100] sm:$0xff] }
 0x854   : > { %13201 = vmatmul.mubr.f32.gmra.mrb[76].mxu1 %v10488_v33  ;;  %v13287_v35 = vpop.f32.mrb[212].mxu0  ;;  %v7670_v33 = vld [vmem:[%s18619_s14] sm:$0xff] }
 0x855   : > { %14568 = vmatpush3.bf16.msra.mxu1 %v17538_v42  ;;  %v6341_v39 = vpop.f32.mrb[213].mxu0  ;;  %13203 = vmatprep.mubr.f32.mxu1 %v10489_v32  ;;  %v10492_v42 = vld [vmem:[%s18615_s10 + $0xd8] sm:$0xff]  ;;  %v10516_v32 = vld [vmem:[%s18615_s10 + $0x108] sm:$0xff] }
 0x856   : > { %v17591_v45 = vpack.c.bf16 %v13287_v35, %v6341_v39  ;;  %14570 = vmatprep.subr.bf16.mxu1 %v17540_v16  ;;  %v10517_v39 = vld [vmem:[%s18615_s10 + $0x110] sm:$0xff]  ;;  %13599 = vmatprep.subr.mxu0 %v7670_v33 }
 0x857   : > { %13600 = vmatpush3.msra.mxu0 %v7670_v33  ;;  %v10559_v33 = vld [vmem:[%s18615_s10 + $0x1d0] sm:$0xff] }
 0x858   : > { %13204 = vmatmul.mubr.f32.gmra.mrb[78].mxu1 %v10490_v37  ;;  %v13290_v41 = vpop.f32.mrb[214].mxu0 }
 0x859   : > { %14572 = vmatpush3.bf16.msra.mxu1 %v17540_v16  ;;  %v6351_v4 = vpop.f32.mrb[215].mxu0  ;;  %13206 = vmatprep.mubr.f32.mxu1 %v10491_v38  ;;  %v10494_v16 = vld [vmem:[%s18615_s10 + $0xe8] sm:$0xff]  ;;  %v10518_v38 = vld [vmem:[%s18615_s10 + $0x118] sm:$0xff] }
 0x85a   : > { %v17601_v10 = vpack.c.bf16 %v13290_v41, %v6351_v4  ;;  %14574 = vmatprep.subr.bf16.mxu1 %v17542_v48  ;;  %v10519_v4 = vld [vmem:[%s18615_s10 + $0x120] sm:$0xff] }
 0x85c   : > { %13207 = vmatmul.mubr.f32.gmra.mrb[80].mxu1 %v10492_v42  ;;  %v13293_v47 = vpop.f32.mrb[216].mxu0 }
 0x85d   : > { %14576 = vmatpush3.bf16.msra.mxu1 %v17542_v48  ;;  %v6361_v23 = vpop.f32.mrb[217].mxu0  ;;  %13209 = vmatprep.mubr.f32.mxu1 %v10493_v43  ;;  %v10496_v48 = vld [vmem:[%s18615_s10 + $0xf8] sm:$0xff]  ;;  %v10520_v43 = vld [vmem:[%s18615_s10 + $0x128] sm:$0xff] }
 0x85e   : > { %v17611_v28 = vpack.c.bf16 %v13293_v47, %v6361_v23  ;;  %14578 = vmatprep.subr.bf16.mxu1 %v17544_v34  ;;  %v10521_v23 = vld [vmem:[%s18615_s10 + $0x130] sm:$0xff] }
 0x860   : > { %13210 = vmatmul.mubr.f32.gmra.mrb[82].mxu1 %v10494_v16  ;;  %v13296_v51 = vpop.f32.mrb[218].mxu0 }
 0x861   : > { %14580 = vmatpush3.bf16.msra.mxu1 %v17544_v34  ;;  %v6371_v40 = vpop.f32.mrb[219].mxu0  ;;  %13212 = vmatprep.mubr.f32.mxu1 %v10495_v49  ;;  %v5758_v34 = vld [vmem:[%s18615_s10 + $0x8] sm:$0xff]  ;;  %v10522_v49 = vld [vmem:[%s18615_s10 + $0x138] sm:$0xff] }
 0x862   : > { %v17621_v54 = vpack.c.bf16 %v13296_v51, %v6371_v40  ;;  %14582 = vmatprep.subr.bf16.mxu1 %v17546_v53  ;;  %v10523_v40 = vld [vmem:[%s18615_s10 + $0x140] sm:$0xff] }
 0x864   : > { %13213 = vmatmul.mubr.f32.gmra.mrb[84].mxu1 %v10496_v48  ;;  %v13357_v46 = vpop.f32.mrb[220].mxu0 }
 0x865   : > { %14584 = vmatpush3.bf16.msra.mxu1 %v17546_v53  ;;  %v6629_v58 = vpop.f32.mrb[221].mxu0  ;;  %13247 = vmatprep.mubr.f32.mxu1 %v5757_v52  ;;  %v5760_v53 = vld [vmem:[%s18615_s10 + $0x18] sm:$0xff]  ;;  %v10524_v52 = vld [vmem:[%s18615_s10 + $0x148] sm:$0xff] }
 0x866   : > { %v17631_v57 = vpack.c.bf16 %v13357_v46, %v6629_v58  ;;  %14586 = vmatprep.subr.bf16.mxu1 %v17551_v11  ;;  %v10525_v58 = vld [vmem:[%s18615_s10 + $0x150] sm:$0xff] }
 0x868   : > { %13248 = vmatmul.mubr.f32.vlgmr.msra.gmra.mrb[70].mxu1 %v5758_v34  ;;  %v13360_v8 = vpop.f32.mrb[222].mxu0 }
 0x869   : > { %14588 = vmatpush3.bf16.msra.mxu1 %v17551_v11  ;;  %v6639_v55 = vpop.f32.mrb[223].mxu0  ;;  %13250 = vmatprep.mubr.f32.mxu1 %v5759_v59  ;;  %v5768_v11 = vld [vmem:[%s18615_s10 + $0x58] sm:$0xff] }
 0x86a   : > { %v17641_v18 = vpack.c.bf16 %v13360_v8, %v6639_v55  ;;  %14590 = vmatprep.subr.bf16.mxu1 %v17561_v17  ;;  %v10526_v59 = vld [vmem:[%s18615_s10 + $0x158] sm:$0xff]  ;;  %v10527_v55 = vld [vmem:[%s18615_s10 + $0x160] sm:$0xff] }
 0x86c   : > { %13251 = vmatmul.mubr.f32.gmra.mrb[72].mxu1 %v5760_v53  ;;  %v13363_v26 = vpop.f32.mrb[224].mxu0 }
 0x86d   : > { %14592 = vmatpush3.bf16.msra.mxu1 %v17561_v17  ;;  %v6649_v62 = vpop.f32.mrb[225].mxu0  ;;  %13253 = vmatprep.mubr.f32.mxu1 %v5761_v3  ;;  %v5770_v17 = vld [vmem:[%s18615_s10 + $0x68] sm:$0xff] }
 0x86e   : > { %v17651_v36 = vpack.c.bf16 %v13363_v26, %v6649_v62  ;;  %14594 = vmatprep.subr.bf16.mxu1 %v17571_v24  ;;  %v10528_v3 = vld [vmem:[%s18615_s10 + $0x168] sm:$0xff]  ;;  %v10529_v62 = vld [vmem:[%s18615_s10 + $0x170] sm:$0xff] }
 0x870   : > { %13254 = vmatmul.mubr.f32.gmra.mrb[74].mxu1 %v5762_v0  ;;  %v13366_v44 = vpop.f32.mrb[226].mxu0 }
 0x871   : > { %14596 = vmatpush3.bf16.msra.mxu1 %v17571_v24  ;;  %v6659_v1 = vpop.f32.mrb[227].mxu0  ;;  %13256 = vmatprep.mubr.f32.mxu1 %v5763_v63  ;;  %v5772_v24 = vld [vmem:[%s18615_s10 + $0x78] sm:$0xff] }
 0x872   : > { %v17661_v50 = vpack.c.bf16 %v13366_v44, %v6659_v1  ;;  %14598 = vmatprep.subr.bf16.mxu1 %v17581_v31  ;;  %v10530_v63 = vld [vmem:[%s18615_s10 + $0x178] sm:$0xff]  ;;  %v10549_v1 = vld [vmem:[%s18615_s10 + $0x180] sm:$0xff] }
 0x874   : > { %13257 = vmatmul.mubr.f32.gmra.mrb[76].mxu1 %v5764_v60  ;;  %v13369_v56 = vpop.f32.mrb[228].mxu0 }
 0x875   : > { %14600 = vmatpush3.bf16.msra.mxu1 %v17581_v31  ;;  %v6669_v5 = vpop.f32.mrb[229].mxu0  ;;  %13259 = vmatprep.mubr.f32.mxu1 %v5765_v9  ;;  %v10550_v9 = vld [vmem:[%s18615_s10 + $0x188] sm:$0xff] }
 0x876   : > { %v17671_v6 = vpack.c.bf16 %v13369_v56, %v6669_v5  ;;  %14602 = vmatprep.subr.bf16.mxu1 %v17591_v45  ;;  %v10551_v5 = vld [vmem:[%s18615_s10 + $0x190] sm:$0xff] }
 0x878   : > { %13260 = vmatmul.mubr.f32.gmra.mrb[78].mxu1 %v5766_v61  ;;  %v13372_v7 = vpop.f32.mrb[230].mxu0 }
 0x879   : > { %14604 = vmatpush3.bf16.msra.mxu1 %v17591_v45  ;;  %v6679_v15 = vpop.f32.mrb[231].mxu0  ;;  %13262 = vmatprep.mubr.f32.mxu1 %v5767_v2  ;;  %v10552_v2 = vld [vmem:[%s18615_s10 + $0x198] sm:$0xff] }
 0x87a   : > { %v17681_v12 = vpack.c.bf16 %v13372_v7, %v6679_v15  ;;  %14606 = vmatprep.subr.bf16.mxu1 %v17601_v10  ;;  %v10553_v15 = vld [vmem:[%s18615_s10 + $0x1a0] sm:$0xff] }
 0x87c   : > { %13263 = vmatmul.mubr.f32.gmra.mrb[80].mxu1 %v5768_v11  ;;  %v13375_v14 = vpop.f32.mrb[232].mxu0 }
 0x87d   : > { %14608 = vmatpush3.bf16.msra.mxu1 %v17601_v10  ;;  %v6689_v22 = vpop.f32.mrb[233].mxu0  ;;  %13265 = vmatprep.mubr.f32.mxu1 %v5769_v13  ;;  %v10554_v13 = vld [vmem:[%s18615_s10 + $0x1a8] sm:$0xff] }
 0x87e   : > { %v17691_v20 = vpack.c.bf16 %v13375_v14, %v6689_v22  ;;  %14610 = vmatprep.subr.bf16.mxu1 %v17611_v28  ;;  %v10555_v22 = vld [vmem:[%s18615_s10 + $0x1b0] sm:$0xff] }
 0x880   : > { %13266 = vmatmul.mubr.f32.gmra.mrb[82].mxu1 %v5770_v17  ;;  %v13378_v19 = vpop.f32.mrb[234].mxu0 }
 0x881   : > { %14612 = vmatpush3.bf16.msra.mxu1 %v17611_v28  ;;  %v6699_v27 = vpop.f32.mrb[235].mxu0  ;;  %13268 = vmatprep.mubr.f32.mxu1 %v5771_v21  ;;  %v10556_v21 = vld [vmem:[%s18615_s10 + $0x1b8] sm:$0xff] }
 0x882   : > { %v17701_v25 = vpack.c.bf16 %v13378_v19, %v6699_v27  ;;  %14614 = vmatprep.subr.bf16.mxu1 %v17621_v54  ;;  %v10557_v27 = vld [vmem:[%s18615_s10 + $0x1c0] sm:$0xff] }
 0x884   : > { %13269 = vmatmul.mubr.f32.gmra.mrb[84].mxu1 %v5772_v24  ;;  %v13439_v30 = vpop.f32.mrb[236].mxu0 }
 0x885   : > { %14616 = vmatpush3.bf16.msra.mxu1 %v17621_v54  ;;  %v6957_v31 = vpop.f32.mrb[237].mxu0  ;;  %13329 = vmatprep.mubr.f32.mxu1 %v10515_v29  ;;  %v10558_v29 = vld [vmem:[%s18615_s10 + $0x1c8] sm:$0xff] }
 0x886   : > { %v17714_v35 = vpack.c.bf16 %v13439_v30, %v6957_v31  ;;  %14618 = vmatprep.subr.bf16.mxu1 %v17631_v57 }
 0x888   : > { %13330 = vmatmul.mubr.f32.vlgmr.msra.gmra.mrb[70].mxu1 %v10516_v32  ;;  %v13442_v37 = vpop.f32.mrb[238].mxu0 }
 0x889   : > { %14620 = vmatpush3.bf16.msra.mxu1 %v17631_v57  ;;  %v6967_v45 = vpop.f32.mrb[239].mxu0  ;;  %13332 = vmatprep.mubr.f32.mxu1 %v10517_v39 }
 0x88a   : > { %v17724_v41 = vpack.c.bf16 %v13442_v37, %v6967_v45  ;;  %14622 = vmatprep.subr.bf16.mxu1 %v17641_v18  ;;  %v10561_v37 = vld [vmem:[%s18615_s10 + $0x1e0] sm:$0xff] }
 0x88c   : > { %13333 = vmatmul.mubr.f32.gmra.mrb[72].mxu1 %v10518_v38  ;;  %v13445_v42 = vpop.f32.mrb[240].mxu0 }
 0x88d   : > { %14624 = vmatpush3.bf16.msra.mxu1 %v17641_v18  ;;  %v6977_v10 = vpop.f32.mrb[241].mxu0  ;;  %13335 = vmatprep.mubr.f32.mxu1 %v10519_v4 }
 0x88e   : > { %v17734_v47 = vpack.c.bf16 %v13445_v42, %v6977_v10  ;;  %14626 = vmatprep.subr.bf16.mxu1 %v17651_v36  ;;  %v10563_v42 = vld [vmem:[%s18615_s10 + $0x1f0] sm:$0xff] }
 0x890   : > { %13336 = vmatmul.mubr.f32.gmra.mrb[74].mxu1 %v10520_v43  ;;  %v13448_v16 = vpop.f32.mrb[242].mxu0 }
 0x891   : > { %14628 = vmatpush3.bf16.msra.mxu1 %v17651_v36  ;;  %v6987_v28 = vpop.f32.mrb[243].mxu0  ;;  %13338 = vmatprep.mubr.f32.mxu1 %v10521_v23 }
 0x892   : > { %v17744_v51 = vpack.c.bf16 %v13448_v16, %v6987_v28  ;;  %14630 = vmatprep.subr.bf16.mxu1 %v17661_v50  ;;  %v10583_v16 = vld [vmem:[%s18615_s10 + $0x200] sm:$0xff]  ;;  %v10584_v28 = vld [vmem:[%s18615_s10 + $0x208] sm:$0xff] }
 0x894   : > { %13339 = vmatmul.mubr.f32.gmra.mrb[76].mxu1 %v10522_v49  ;;  %v13451_v48 = vpop.f32.mrb[244].mxu0  ;;  %v10585_v49 = vld [vmem:[%s18615_s10 + $0x210] sm:$0xff] }
 0x895   : > { %14632 = vmatpush3.bf16.msra.mxu1 %v17661_v50  ;;  %v6997_v54 = vpop.f32.mrb[245].mxu0  ;;  %13341 = vmatprep.mubr.f32.mxu1 %v10523_v40  ;;  %v10587_v40 = vld [vmem:[%s18615_s10 + $0x220] sm:$0xff] }
 0x896   : > { %v17754_v46 = vpack.c.bf16 %v13451_v48, %v6997_v54  ;;  %14634 = vmatprep.subr.bf16.mxu1 %v17671_v6  ;;  %v10588_v48 = vld [vmem:[%s18615_s10 + $0x228] sm:$0xff]  ;;  %v10589_v54 = vld [vmem:[%s18615_s10 + $0x230] sm:$0xff] }
 0x898   : > { %13342 = vmatmul.mubr.f32.gmra.mrb[78].mxu1 %v10524_v52  ;;  %v13454_v34 = vpop.f32.mrb[246].mxu0  ;;  %v10590_v52 = vld [vmem:[%s18615_s10 + $0x238] sm:$0xff] }
 0x899   : > { %14636 = vmatpush3.bf16.msra.mxu1 %v17671_v6  ;;  %v7007_v57 = vpop.f32.mrb[247].mxu0  ;;  %13344 = vmatprep.mubr.f32.mxu1 %v10525_v58  ;;  %v10592_v58 = vld [vmem:[%s18615_s10 + $0x248] sm:$0xff] }
 0x89a   : > { %v17764_v8 = vpack.c.bf16 %v13454_v34, %v7007_v57  ;;  %14638 = vmatprep.subr.bf16.mxu1 %v17681_v12  ;;  %v10593_v34 = vld [vmem:[%s18615_s10 + $0x250] sm:$0xff]  ;;  %v10594_v57 = vld [vmem:[%s18615_s10 + $0x258] sm:$0xff] }
 0x89c   : > { %13345 = vmatmul.mubr.f32.gmra.mrb[80].mxu1 %v10526_v59  ;;  %v13457_v53 = vpop.f32.mrb[248].mxu0  ;;  %v10595_v59 = vld [vmem:[%s18615_s10 + $0x260] sm:$0xff] }
 0x89d   : > { %14640 = vmatpush3.bf16.msra.mxu1 %v17681_v12  ;;  %v7017_v18 = vpop.f32.mrb[249].mxu0  ;;  %13347 = vmatprep.mubr.f32.mxu1 %v10527_v55  ;;  %v10597_v55 = vld [vmem:[%s18615_s10 + $0x270] sm:$0xff] }
 0x89e   : > { %v17774_v26 = vpack.c.bf16 %v13457_v53, %v7017_v18  ;;  %14642 = vmatprep.subr.bf16.mxu1 %v17691_v20  ;;  %v10598_v53 = vld [vmem:[%s18615_s10 + $0x278] sm:$0xff]  ;;  %v10617_v18 = vld [vmem:[%s18615_s10 + $0x280] sm:$0xff] }
 0x8a0   : > { %13348 = vmatmul.mubr.f32.gmra.mrb[82].mxu1 %v10528_v3  ;;  %v13460_v0 = vpop.f32.mrb[250].mxu0  ;;  %v10618_v3 = vld [vmem:[%s18615_s10 + $0x288] sm:$0xff] }
 0x8a1   : > { %14644 = vmatpush3.bf16.msra.mxu1 %v17691_v20  ;;  %v7027_v36 = vpop.f32.mrb[251].mxu0  ;;  %13350 = vmatprep.mubr.f32.mxu1 %v10529_v62  ;;  %v10620_v62 = vld [vmem:[%s18615_s10 + $0x298] sm:$0xff] }
 0x8a2   : > { %v17784_v44 = vpack.c.bf16 %v13460_v0, %v7027_v36  ;;  %14646 = vmatprep.subr.bf16.mxu1 %v17701_v25  ;;  %v10621_v0 = vld [vmem:[%s18615_s10 + $0x2a0] sm:$0xff]  ;;  %v10622_v36 = vld [vmem:[%s18615_s10 + $0x2a8] sm:$0xff] }
 0x8a4   : > { %13351 = vmatmul.mubr.f32.gmra.mrb[84].mxu1 %v10530_v63  ;;  %v13521_v60 = vpop.f32.mrb[252].mxu0  ;;  %v10623_v63 = vld [vmem:[%s18615_s10 + $0x2b0] sm:$0xff] }
 0x8a5   : > { %14648 = vmatpush3.bf16.msra.mxu1 %v17701_v25  ;;  %v7285_v50 = vpop.f32.mrb[253].mxu0  ;;  %13411 = vmatprep.mubr.f32.mxu1 %v10549_v1  ;;  %v10625_v1 = vld [vmem:[%s18615_s10 + $0x2c0] sm:$0xff] }
 0x8a6   : > { %v17794_v56 = vpack.c.bf16 %v13521_v60, %v7285_v50  ;;  %14650 = vmatprep.subr.bf16.mxu1 %v17714_v35  ;;  %v10626_v60 = vld [vmem:[%s18615_s10 + $0x2c8] sm:$0xff]  ;;  %v10627_v50 = vld [vmem:[%s18615_s10 + $0x2d0] sm:$0xff] }
 0x8a8   : > { %13412 = vmatmul.mubr.f32.vlgmr.msra.gmra.mrb[70].mxu1 %v10550_v9  ;;  %v13524_v61 = vpop.f32.mrb[254].mxu0  ;;  %v10628_v9 = vld [vmem:[%s18615_s10 + $0x2d8] sm:$0xff] }
 0x8a9   : > { %14652 = vmatpush3.bf16.msra.mxu1 %v17714_v35  ;;  %v7295_v6 = vpop.f32.mrb[255].mxu0  ;;  %13414 = vmatprep.mubr.f32.mxu1 %v10551_v5  ;;  %v10560_v35 = vld [vmem:[%s18615_s10 + $0x1d8] sm:$0xff]  ;;  %v10630_v5 = vld [vmem:[%s18615_s10 + $0x2e8] sm:$0xff] }
 0x8aa   : > { %v17804_v7 = vpack.c.bf16 %v13524_v61, %v7295_v6  ;;  %14654 = vmatprep.subr.bf16.mxu1 %v17724_v41  ;;  %v10631_v61 = vld [vmem:[%s18615_s10 + $0x2f0] sm:$0xff]  ;;  %v10632_v6 = vld [vmem:[%s18615_s10 + $0x2f8] sm:$0xff] }
 0x8ac   : > { %13415 = vmatmul.mubr.f32.gmra.mrb[72].mxu1 %v10552_v2  ;;  %v13527_v11 = vpop.f32.mrb[0].mxu0  ;;  %v10649_v2 = vld [vmem:[%s18619_s14 + $0x8] sm:$0xff] }
 0x8ad   : > { %14656 = vmatpush3.bf16.msra.mxu1 %v17724_v41  ;;  %v7305_v12 = vpop.f32.mrb[1].mxu0  ;;  %13417 = vmatprep.mubr.f32.mxu1 %v10553_v15  ;;  %v10562_v41 = vld [vmem:[%s18615_s10 + $0x1e8] sm:$0xff]  ;;  %v7561_v15 = vpop.permute.xlu0 %7560 }
 0x8ae   : > { %v17814_v14 = vpack.c.bf16 %v13527_v11, %v7305_v12  ;;  %14658 = vmatprep.subr.bf16.mxu1 %v17734_v47  ;;  %13625 = vmatprep.subr.mxu0 %v10649_v2 }
 0x8b0   : > { %13418 = vmatmul.mubr.f32.gmra.mrb[74].mxu1 %v10554_v13  ;;  %v13530_v17 = vpop.f32.mrb[2].mxu0 }
 0x8b1   : > { %14660 = vmatpush3.bf16.msra.mxu1 %v17734_v47  ;;  %v7315_v20 = vpop.f32.mrb[3].mxu0  ;;  %13420 = vmatprep.mubr.f32.mxu1 %v10555_v22  ;;  %v10564_v47 = vld [vmem:[%s18615_s10 + $0x1f8] sm:$0xff]  ;;  %v7571_v12 = vpop.permute.xlu0 %7570 }
 0x8b2   : > { %v17824_v19 = vpack.c.bf16 %v13530_v17, %v7315_v20  ;;  %14662 = vmatprep.subr.bf16.mxu1 %v17744_v51 }
 0x8b4   : > { %13421 = vmatmul.mubr.f32.gmra.mrb[76].mxu1 %v10556_v21  ;;  %v13533_v24 = vpop.f32.mrb[4].mxu0 }
 0x8b5   : > { %14664 = vmatpush3.bf16.msra.mxu1 %v17744_v51  ;;  %v7325_v25 = vpop.f32.mrb[5].mxu0  ;;  %13423 = vmatprep.mubr.f32.mxu1 %v10557_v27  ;;  %v10586_v51 = vld [vmem:[%s18615_s10 + $0x218] sm:$0xff] }
 0x8b6   : > { %v14697_v30 = vpack.c.bf16 %v13533_v24, %v7325_v25  ;;  %14666 = vmatprep.subr.bf16.mxu1 %v17754_v46 }
 0x8b8   : > { %13424 = vmatmul.mubr.f32.gmra.mrb[78].mxu1 %v10558_v29  ;;  %v13536_v31 = vpop.f32.mrb[6].mxu0 }
 0x8b9   : > { %14668 = vmatpush3.bf16.msra.mxu1 %v17754_v46  ;;  %v7335_v32 = vpop.f32.mrb[7].mxu0  ;;  %13426 = vmatprep.mubr.f32.mxu1 %v10559_v33  ;;  %v10591_v46 = vld [vmem:[%s18615_s10 + $0x240] sm:$0xff] }
 0x8ba   : > { %v14701_v39 = vpack.c.bf16 %v13536_v31, %v7335_v32  ;;  %14670 = vmatprep.subr.bf16.mxu1 %v17764_v8  ;;  %v17976_v32 = vld [vmem:[%s18619_s14 + $0x10] sm:$0xff] }
 0x8bc   : > { %13427 = vmatmul.mubr.f32.gmra.mrb[80].mxu1 %v10560_v35  ;;  %v13539_v45 = vpop.f32.mrb[8].mxu0 }
 0x8bd   : > { %14672 = vmatpush3.bf16.msra.mxu1 %v17764_v8  ;;  %v7345_v38 = vpop.f32.mrb[9].mxu0  ;;  %13429 = vmatprep.mubr.f32.mxu1 %v10561_v37  ;;  %v10596_v8 = vld [vmem:[%s18615_s10 + $0x268] sm:$0xff] }
 0x8be   : > { %v14705_v4 = vpack.c.bf16 %v13539_v45, %v7345_v38  ;;  %14674 = vmatprep.subr.bf16.mxu1 %v17774_v26 }
 0x8c0   : > { %13430 = vmatmul.mubr.f32.gmra.mrb[82].mxu1 %v10562_v41  ;;  %v13542_v10 = vpop.f32.mrb[10].mxu0 }
 0x8c1   : > { %14676 = vmatpush3.bf16.msra.mxu1 %v17774_v26  ;;  %v7355_v43 = vpop.f32.mrb[11].mxu0  ;;  %13432 = vmatprep.mubr.f32.mxu1 %v10563_v42  ;;  %v10619_v26 = vld [vmem:[%s18615_s10 + $0x290] sm:$0xff] }
 0x8c2   : > { %v14709_v23 = vpack.c.bf16 %v13542_v10, %v7355_v43  ;;  %14678 = vmatprep.subr.bf16.mxu1 %v17784_v44 }
 0x8c4   : > { %13433 = vmatmul.mubr.f32.gmra.mrb[84].mxu1 %v10564_v47 }
 0x8c5   : > { %14680 = vmatpush3.bf16.msra.mxu1 %v17784_v44  ;;  %13493 = vmatprep.mubr.f32.mxu1 %v10583_v16  ;;  %v10624_v44 = vld [vmem:[%s18615_s10 + $0x2b8] sm:$0xff] }
 0x8c6   : > { %14682 = vmatprep.subr.bf16.mxu1 %v17794_v56 }
 0x8c8   : > { %13494 = vmatmul.mubr.f32.vlgmr.msra.gmra.mrb[70].mxu1 %v10584_v28 }
 0x8c9   : > { %14684 = vmatpush3.bf16.msra.mxu1 %v17794_v56  ;;  %13496 = vmatprep.mubr.f32.mxu1 %v10585_v49  ;;  %v10629_v56 = vld [vmem:[%s18615_s10 + $0x2e0] sm:$0xff] }
 0x8ca   : > { %14686 = vmatprep.subr.bf16.mxu1 %v17804_v7 }
 0x8cc   : > { %13497 = vmatmul.mubr.f32.gmra.mrb[72].mxu1 %v10586_v51 }
 0x8cd   : > { %14688 = vmatpush3.bf16.msra.mxu1 %v17804_v7  ;;  %13499 = vmatprep.mubr.f32.mxu1 %v10587_v40  ;;  %v7566_v7 = vpop.permute.xlu1 %7565 }
 0x8ce   : > { %14690 = vmatprep.subr.bf16.mxu1 %v17814_v14 }
 0x8d0   : > { %13500 = vmatmul.mubr.f32.gmra.mrb[74].mxu1 %v10588_v48 }
 0x8d1   : > { %14692 = vmatpush3.bf16.msra.mxu1 %v17814_v14  ;;  %13502 = vmatprep.mubr.f32.mxu1 %v10589_v54  ;;  %v7576_v11 = vpop.permute.xlu1 %7575  ;;  %v7581_v14 = vpop.permute.xlu0 %7580 }
 0x8d2   : > { %14694 = vmatprep.subr.bf16.mxu1 %v17824_v19 }
 0x8d4   : > { %13503 = vmatmul.mubr.f32.gmra.mrb[76].mxu1 %v10590_v52 }
 0x8d5   : > { %14696 = vmatpush3.bf16.msra.mxu1 %v17824_v19  ;;  %13505 = vmatprep.mubr.f32.mxu1 %v10591_v46  ;;  %v7586_v13 = vpop.permute.xlu1 %7585  ;;  %v7591_v25 = vpop.permute.xlu0 %7590 }
 0x8d6   : > { %14698 = vmatprep.subr.bf16.mxu1 %v14697_v30 }
 0x8d8   : > { %13506 = vmatmul.mubr.f32.gmra.mrb[78].mxu1 %v10592_v58 }
 0x8d9   : > { %14700 = vmatpush3.bf16.msra.mxu1 %v14697_v30  ;;  %13508 = vmatprep.mubr.f32.mxu1 %v10593_v34  ;;  %v7596_v19 = vpop.permute.xlu1 %7595  ;;  %v7601_v42 = vpop.permute.xlu0 %7600 }
 0x8da   : > { %14702 = vmatprep.subr.bf16.mxu1 %v14701_v39 }
 0x8dc   : > { %13509 = vmatmul.mubr.f32.gmra.mrb[80].mxu1 %v10594_v57 }
 0x8dd   : > { %14704 = vmatpush3.bf16.msra.mxu1 %v14701_v39  ;;  %13511 = vmatprep.mubr.f32.mxu1 %v10595_v59  ;;  %v7606_v41 = vpop.permute.xlu1 %7605  ;;  %v7611_v48 = vpop.permute.xlu0 %7610 }
 0x8de   : > { %14706 = vmatprep.subr.bf16.mxu1 %v14705_v4 }
 0x8e0   : > { %13512 = vmatmul.mubr.f32.gmra.mrb[82].mxu1 %v10596_v8 }
 0x8e1   : > { %14708 = vmatpush3.bf16.msra.mxu1 %v14705_v4  ;;  %13514 = vmatprep.mubr.f32.mxu1 %v10597_v55  ;;  %v7616_v49 = vpop.permute.xlu1 %7615 }
 0x8e2   : > { %14710 = vmatprep.subr.bf16.mxu1 %v14709_v23 }
 0x8e4   : > { %13515 = vmatmul.mubr.f32.gmra.mrb[84].mxu1 %v10598_v53 }
 0x8e5   : > { %14712 = vmatpush3.bf16.msra.mxu1 %v14709_v23  ;;  %13575 = vmatprep.mubr.f32.mxu1 %v10617_v18  ;;  %v7626_v53 = vpop.permute.xlu1 %7625 }
 0x8e8   : > { %13576 = vmatmul.mubr.f32.vlgmr.msra.gmra.mrb[70].mxu1 %v10618_v3  ;;  %v7621_v3 = vpop.permute.xlu0 %7620 }
 0x8e9   : > { %13578 = vmatprep.mubr.f32.mxu1 %v10619_v26 }
 0x8ec   : > { %13579 = vmatmul.mubr.f32.gmra.mrb[72].mxu1 %v10620_v62 }
 0x8ed   : > { %13581 = vmatprep.mubr.f32.mxu1 %v10621_v0 }
 0x8f0   : > { %13582 = vmatmul.mubr.f32.gmra.mrb[74].mxu1 %v10622_v36 }
 0x8f1   : > { %13584 = vmatprep.mubr.f32.mxu1 %v10623_v63 }
 0x8f4   : > { %13585 = vmatmul.mubr.f32.gmra.mrb[76].mxu1 %v10624_v44 }
 0x8f5   : > { %13587 = vmatprep.mubr.f32.mxu1 %v10625_v1  ;;  %v7636_v1 = vpop.permute.xlu1 %7635 }
 0x8f8   : > { %13588 = vmatmul.mubr.f32.gmra.mrb[78].mxu1 %v10626_v60 }
 0x8f9   : > { %13590 = vmatprep.mubr.f32.mxu1 %v10627_v50 }
 0x8fc   : > { %13591 = vmatmul.mubr.f32.gmra.mrb[80].mxu1 %v10628_v9  ;;  %v7631_v9 = vpop.permute.xlu0 %7630 }
 0x8fd   : > { %13593 = vmatprep.mubr.f32.mxu1 %v10629_v56 }
 0x900   : > { %13594 = vmatmul.mubr.f32.gmra.mrb[82].mxu1 %v10630_v5 }
 0x901   : > { %13596 = vmatprep.mubr.f32.mxu1 %v10631_v61 }
 0x904   : > { %13597 = vmatmul.mubr.f32.gmra.mrb[84].mxu1 %v10632_v6 }
 0x9bb   : > { %v13577_v22 = vpop.f32.mrb[70].mxu1 }
 0x9bc   : > { %v7639_v17 = vadd.f32 %v13577_v22, %v7566_v7  ;;  %v7447_v20 = vpop.f32.mrb[71].mxu1 }
 0x9bd   : > { %v7638_v21 = vadd.f32 %v7561_v15, %v7447_v20  ;;  %v10711_v15 = vld [vmem:[%s18619_s14 + $0x18] sm:$0xff] }
 0x9be   : > { %v17969_v29 = vmax.f32 %v7639_v17, 0.0 }
 0x9bf   : > { %v17967_v27 = vmax.f32 %v7638_v21, 0.0  ;;  %v13580_v24 = vpop.f32.mrb[72].mxu1 }
 0x9c0   : > { %v7641_v30 = vadd.f32 %v13580_v24, %v7576_v11  ;;  %v7457_v33 = vpop.f32.mrb[73].mxu1  ;;  %v10666_v11 = vld [vmem:[%s18618_s13 + $0x70] sm:$0xff] }
 0x9c1   : > { %v7640_v31 = vadd.f32 %v7571_v12, %v7457_v33  ;;  %13601 = vmatprep.mubr.msk.f32.mxu0 %vm3466_vm2, %v17967_v27  ;;  %13683 = vmatprep.mubr.f32.mxu1 %v10666_v11 }
 0x9c2   : > { %13602 = vmatmul.mubr.msk.f32.vlgmr.msra.gmra.mrb[12].mxu0 %vm3466_vm2, %v17969_v29  ;;  %v17982_v37 = vmax.f32 %v7641_v30, 0.0 }
 0x9c3   : > { %v17980_v35 = vmax.f32 %v7640_v31, 0.0  ;;  %v13583_v39 = vpop.f32.mrb[74].mxu1  ;;  %13626 = vmatpush3.msra.mxu0 %v10649_v2 }
 0x9c4   : > { %v7643_v45 = vadd.f32 %v13583_v39, %v7586_v13  ;;  %v7467_v38 = vpop.f32.mrb[75].mxu1  ;;  %13757 = vmatprep.subr.mxu0 %v17976_v32 }
 0x9c5   : > { %v7642_v4 = vadd.f32 %v7581_v14, %v7467_v38  ;;  %13604 = vmatprep.mubr.msk.f32.mxu0 %vm3466_vm2, %v17980_v35 }
 0x9c6   : > { %13605 = vmatmul.mubr.msk.f32.gmra.mrb[14].mxu0 %vm3466_vm2, %v17982_v37  ;;  %v17991_v47 = vmax.f32 %v7643_v45, 0.0 }
 0x9c7   : > { %v17989_v10 = vmax.f32 %v7642_v4, 0.0  ;;  %v13586_v43 = vpop.f32.mrb[76].mxu1 }
 0x9c8   : > { %v7645_v23 = vadd.f32 %v13586_v43, %v7596_v19  ;;  %v7477_v16 = vpop.f32.mrb[77].mxu1 }
 0x9c9   : > { %v7644_v28 = vadd.f32 %v7591_v25, %v7477_v16  ;;  %13607 = vmatprep.mubr.msk.f32.mxu0 %vm3466_vm2, %v17989_v10 }
 0x9ca   : > { %13608 = vmatmul.mubr.msk.f32.gmra.mrb[16].mxu0 %vm3466_vm2, %v17991_v47  ;;  %v17999_v54 = vmax.f32 %v7645_v23, 0.0 }
 0x9cb   : > { %v17997_v51 = vmax.f32 %v7644_v28, 0.0  ;;  %v13589_v40 = vpop.f32.mrb[78].mxu1 }
 0x9cc   : > { %v7647_v52 = vadd.f32 %v13589_v40, %v7606_v41  ;;  %v7487_v46 = vpop.f32.mrb[79].mxu1 }
 0x9cd   : > { %v7646_v58 = vadd.f32 %v7601_v42, %v7487_v46  ;;  %13610 = vmatprep.mubr.msk.f32.mxu0 %vm3466_vm2, %v17997_v51 }
 0x9ce   : > { %13611 = vmatmul.mubr.msk.f32.gmra.mrb[18].mxu0 %vm3466_vm2, %v17999_v54  ;;  %v18007_v59 = vmax.f32 %v7647_v52, 0.0 }
 0x9cf   : > { %v18005_v34 = vmax.f32 %v7646_v58, 0.0  ;;  %v13592_v57 = vpop.f32.mrb[80].mxu1 }
 0x9d0   : > { %v7649_v8 = vadd.f32 %v13592_v57, %v7616_v49  ;;  %v7497_v55 = vpop.f32.mrb[81].mxu1 }
 0x9d1   : > { %v7648_v18 = vadd.f32 %v7611_v48, %v7497_v55  ;;  %13613 = vmatprep.mubr.msk.f32.mxu0 %vm3466_vm2, %v18005_v34 }
 0x9d2   : > { %13614 = vmatmul.mubr.msk.f32.gmra.mrb[20].mxu0 %vm3466_vm2, %v18007_v59  ;;  %v18015_v0 = vmax.f32 %v7649_v8, 0.0 }
 0x9d3   : > { %v18013_v26 = vmax.f32 %v7648_v18, 0.0  ;;  %v13595_v62 = vpop.f32.mrb[82].mxu1 }
 0x9d4   : > { %v7651_v36 = vadd.f32 %v13595_v62, %v7626_v53  ;;  %v7507_v63 = vpop.f32.mrb[83].mxu1  ;;  %v9045_v62 = vld [vmem:[%s18622_s17 + $0x8] sm:$0x3f] }
 0x9d5   : > { %v7650_v44 = vadd.f32 %v7621_v3, %v7507_v63  ;;  %13616 = vmatprep.mubr.msk.f32.mxu0 %vm3466_vm2, %v18013_v26  ;;  %v10774_v63 = vld [vmem:[%s18621_s16 + $0x30] sm:$0xff] }
 0x9d6   : > { %13617 = vmatmul.mubr.msk.f32.gmra.mrb[22].mxu0 %vm3466_vm2, %v18015_v0  ;;  %v7667_v56 = vmax.f32 %v7651_v36, 0.0 }
 0x9d7   : > { %v7666_v60 = vmax.f32 %v7650_v44, 0.0  ;;  %v13598_v50 = vpop.f32.mrb[84].mxu1 }
 0x9d8   : > { %v7653_v5 = vadd.f32 %v13598_v50, %v7636_v1  ;;  %v7517_v61 = vpop.f32.mrb[85].mxu1  ;;  %v10667_v50 = vld [vmem:[%s18618_s13 + $0x78] sm:$0xff] }
 0x9d9   : > { %v7652_v6 = vadd.f32 %v7631_v9, %v7517_v61  ;;  %13619 = vmatprep.mubr.msk.f32.mxu0 %vm3466_vm2, %v7666_v60 }
 0x9da   : > { %13620 = vmatmul.mubr.msk.f32.gmra.mrb[24].mxu0 %vm3466_vm2, %v7667_v56  ;;  %v7669_v7 = vmax.f32 %v7653_v5, 0.0 }
 0x9db   : > { %v7668_v2 = vmax.f32 %v7652_v6, 0.0  ;;  %v10669_v6 = vld [vmem:[%s18618_s13 + $0x88] sm:$0xff] }
 0x9dd   : > { %13622 = vmatprep.mubr.msk.f32.mxu0 %vm3466_vm2, %v7668_v2 }
 0x9de   : > { %13623 = vmatmul.mubr.msk.f32.gmra.mrb[26].mxu0 %vm3466_vm2, %v7669_v7 }
 0x9df   : > { %13627 = vmatprep.mubr.msk.f32.mxu0 %vm3466_vm2, %v17967_v27 }
 0x9e2   : > { %13628 = vmatmul.mubr.msk.f32.vlgmr.msra.gmra.mrb[28].mxu0 %vm3466_vm2, %v17969_v29 }
 0x9e3   : > { %13630 = vmatprep.mubr.msk.f32.mxu0 %vm3466_vm2, %v17980_v35  ;;  %13758 = vmatpush3.msra.mxu0 %v17976_v32 }
 0x9e4   : > { %13836 = vmatprep.subr.mxu0 %v10711_v15 }
 0x9e6   : > { %13631 = vmatmul.mubr.msk.f32.gmra.mrb[30].mxu0 %vm3466_vm2, %v17982_v37 }
 0x9e7   : > { %13633 = vmatprep.mubr.msk.f32.mxu0 %vm3466_vm2, %v17989_v10 }
 0x9ea   : > { %13634 = vmatmul.mubr.msk.f32.gmra.mrb[32].mxu0 %vm3466_vm2, %v17991_v47 }
 0x9eb   : > { %13636 = vmatprep.mubr.msk.f32.mxu0 %vm3466_vm2, %v17997_v51 }
 0x9ee   : > { %13637 = vmatmul.mubr.msk.f32.gmra.mrb[34].mxu0 %vm3466_vm2, %v17999_v54 }
 0x9ef   : > { %13639 = vmatprep.mubr.msk.f32.mxu0 %vm3466_vm2, %v18005_v34 }
 0x9f2   : > { %13640 = vmatmul.mubr.msk.f32.gmra.mrb[36].mxu0 %vm3466_vm2, %v18007_v59 }
 0x9f3   : > { %13642 = vmatprep.mubr.msk.f32.mxu0 %vm3466_vm2, %v18013_v26 }
 0x9f6   : > { %13643 = vmatmul.mubr.msk.f32.gmra.mrb[38].mxu0 %vm3466_vm2, %v18015_v0 }
 0x9f7   : > { %13645 = vmatprep.mubr.msk.f32.mxu0 %vm3466_vm2, %v7666_v60 }
 0x9fa   : > { %13646 = vmatmul.mubr.msk.f32.gmra.mrb[40].mxu0 %vm3466_vm2, %v7667_v56 }
 0x9fb   : > { %13648 = vmatprep.mubr.msk.f32.mxu0 %vm3466_vm2, %v7668_v2 }
 0x9fe   : > { %13649 = vmatmul.mubr.msk.f32.gmra.mrb[42].mxu0 %vm3466_vm2, %v7669_v7 }
 0x9ff   : > { %13759 = vmatprep.mubr.msk.f32.mxu0 %vm3466_vm2, %v17967_v27 }
 0xa02   : > { %13760 = vmatmul.mubr.msk.f32.vlgmr.msra.gmra.mrb[44].mxu0 %vm3466_vm2, %v17969_v29 }
 0xa03   : > { %13762 = vmatprep.mubr.msk.f32.mxu0 %vm3466_vm2, %v17980_v35  ;;  %13837 = vmatpush3.msra.mxu0 %v10711_v15 }
 0xa06   : > { %13763 = vmatmul.mubr.msk.f32.gmra.mrb[46].mxu0 %vm3466_vm2, %v17982_v37 }
 0xa07   : > { %13765 = vmatprep.mubr.msk.f32.mxu0 %vm3466_vm2, %v17989_v10 }
 0xa0a   : > { %13766 = vmatmul.mubr.msk.f32.gmra.mrb[48].mxu0 %vm3466_vm2, %v17991_v47 }
 0xa0b   : > { %13768 = vmatprep.mubr.msk.f32.mxu0 %vm3466_vm2, %v17997_v51 }
 0xa0e   : > { %13769 = vmatmul.mubr.msk.f32.gmra.mrb[50].mxu0 %vm3466_vm2, %v17999_v54 }
 0xa0f   : > { %13771 = vmatprep.mubr.msk.f32.mxu0 %vm3466_vm2, %v18005_v34 }
 0xa12   : > { %13772 = vmatmul.mubr.msk.f32.gmra.mrb[52].mxu0 %vm3466_vm2, %v18007_v59 }
 0xa13   : > { %13774 = vmatprep.mubr.msk.f32.mxu0 %vm3466_vm2, %v18013_v26 }
 0xa16   : > { %13775 = vmatmul.mubr.msk.f32.gmra.mrb[54].mxu0 %vm3466_vm2, %v18015_v0 }
 0xa17   : > { %13777 = vmatprep.mubr.msk.f32.mxu0 %vm3466_vm2, %v7666_v60 }
 0xa1a   : > { %13778 = vmatmul.mubr.msk.f32.gmra.mrb[56].mxu0 %vm3466_vm2, %v7667_v56 }
 0xa1b   : > { %13780 = vmatprep.mubr.msk.f32.mxu0 %vm3466_vm2, %v7668_v2 }
 0xa1e   : > { %13781 = vmatmul.mubr.msk.f32.gmra.mrb[58].mxu0 %vm3466_vm2, %v7669_v7 }
 0xa1f   : > { %13838 = vmatprep.mubr.msk.f32.mxu0 %vm3466_vm2, %v17967_v27 }
 0xa22   : > { %13839 = vmatmul.mubr.msk.f32.vlgmr.msra.gmra.mrb[60].mxu0 %vm3466_vm2, %v17969_v29 }
 0xa23   : > { %13841 = vmatprep.mubr.msk.f32.mxu0 %vm3466_vm2, %v17980_v35 }
 0xa26   : > { %13842 = vmatmul.mubr.msk.f32.gmra.mrb[62].mxu0 %vm3466_vm2, %v17982_v37 }
 0xa27   : > { %13844 = vmatprep.mubr.msk.f32.mxu0 %vm3466_vm2, %v17989_v10 }
 0xa2a   : > { %13845 = vmatmul.mubr.msk.f32.gmra.mrb[64].mxu0 %vm3466_vm2, %v17991_v47 }
 0xa2b   : > { %13847 = vmatprep.mubr.msk.f32.mxu0 %vm3466_vm2, %v17997_v51 }
 0xa2e   : > { %13848 = vmatmul.mubr.msk.f32.gmra.mrb[66].mxu0 %vm3466_vm2, %v17999_v54 }
 0xa2f   : > { %13850 = vmatprep.mubr.msk.f32.mxu0 %vm3466_vm2, %v18005_v34 }
 0xa32   : > { %13851 = vmatmul.mubr.msk.f32.gmra.mrb[68].mxu0 %vm3466_vm2, %v18007_v59 }
 0xa33   : > { %13853 = vmatprep.mubr.msk.f32.mxu0 %vm3466_vm2, %v18013_v26  ;;  %v9044_v26 = vld [vmem:[%s18622_s17] sm:$0xff] }
 0xa34   : > { %v14841_v36 = vpack.c.bf16 %v9045_v62, %v9044_v26 }
 0xa36   : > { %13854 = vmatmul.mubr.msk.f32.gmra.mrb[70].mxu0 %vm3466_vm2, %v18015_v0  ;;  %14843 = vmatprep.subr.msk.bf16.mxu0 %vm18138_vm7, %v14841_v36 }
 0xa37   : > { %13856 = vmatprep.mubr.msk.f32.mxu0 %vm3466_vm2, %v7666_v60  ;;  %14846 = vmatpush3.bf16.msk.msra.mxu0 %vm18138_vm7, %v14841_v36 }
 0xa3a   : > { %13857 = vmatmul.mubr.msk.f32.gmra.mrb[72].mxu0 %vm3466_vm2, %v7667_v56  ;;  %v10668_v56 = vld [vmem:[%s18618_s13 + $0x80] sm:$0xff] }
 0xa3b   : > { %13859 = vmatprep.mubr.msk.f32.mxu0 %vm3466_vm2, %v7668_v2 }
 0xa3e   : > { %13860 = vmatmul.mubr.msk.f32.gmra.mrb[74].mxu0 %vm3466_vm2, %v7669_v7  ;;  %v10670_v7 = vld [vmem:[%s18618_s13 + $0x90] sm:$0xff] }
 0xa95   : > { %v13603_v12 = vpop.f32.mrb[12].mxu0 }
 0xa96   : > { %v7785_v13 = vpop.f32.mrb[13].mxu0 }
 0xa97   : > { %v18116_v14 = vpack.c.bf16 %v13603_v12, %v7785_v13  ;;  %v10671_v12 = vld [vmem:[%s18618_s13 + $0x98] sm:$0xff] }
 0xa99   : > { %v13606_v22 = vpop.f32.mrb[14].mxu0 }
 0xa9a   : > { %v7795_v17 = vpop.f32.mrb[15].mxu0 }
 0xa9b   : > { %v18118_v20 = vpack.c.bf16 %v13606_v22, %v7795_v17 }
 0xa9d   : > { %v13609_v21 = vpop.f32.mrb[16].mxu0 }
 0xa9e   : > { %v7805_v19 = vpop.f32.mrb[17].mxu0 }
 0xa9f   : > { %v18120_v27 = vpack.c.bf16 %v13609_v21, %v7805_v19  ;;  %v10674_v19 = vld [vmem:[%s18618_s13 + $0xb0] sm:$0xff] }
 0xaa1   : > { %v13612_v24 = vpop.f32.mrb[18].mxu0 }
 0xaa2   : > { %v7815_v25 = vpop.f32.mrb[19].mxu0 }
 0xaa3   : > { %v18122_v29 = vpack.c.bf16 %v13612_v24, %v7815_v25 }
 0xaa5   : > { %v13615_v30 = vpop.f32.mrb[20].mxu0 }
 0xaa6   : > { %v7825_v33 = vpop.f32.mrb[21].mxu0 }
 0xaa7   : > { %v18124_v31 = vpack.c.bf16 %v13615_v30, %v7825_v33  ;;  %v10676_v33 = vld [vmem:[%s18618_s13 + $0xc0] sm:$0xff] }
 0xaa9   : > { %v13618_v32 = vpop.f32.mrb[22].mxu0 }
 0xaaa   : > { %v7835_v35 = vpop.f32.mrb[23].mxu0 }
 0xaab   : > { %v18126_v39 = vpack.c.bf16 %v13618_v32, %v7835_v35 }
 0xaad   : > { %v13621_v37 = vpop.f32.mrb[24].mxu0 }
 0xaae   : > { %v7845_v45 = vpop.f32.mrb[25].mxu0 }
 0xaaf   : > { %v18128_v38 = vpack.c.bf16 %v13621_v37, %v7845_v45  ;;  %v10678_v45 = vld [vmem:[%s18618_s13 + $0xd0] sm:$0xff] }
 0xab1   : > { %v13624_v41 = vpop.f32.mrb[26].mxu0 }
 0xab2   : > { %v7855_v4 = vpop.f32.mrb[27].mxu0 }
 0xab3   : > { %v18130_v42 = vpack.c.bf16 %v13624_v41, %v7855_v4 }
 0xab5   : > { %v13629_v10 = vpop.f32.mrb[28].mxu0 }
 0xab6   : > { %v7946_v43 = vpop.f32.mrb[29].mxu0 }
 0xab7   : > { %v14713_v47 = vpack.c.bf16 %v13629_v10, %v7946_v43  ;;  %v7864_v43 = vld [vmem:[%s18618_s13] sm:$0xff] }
 0xab9   : > { %v13632_v23 = vpop.f32.mrb[30].mxu0  ;;  %14714 = vmatprep.subr.bf16.mxu1 %v14713_v47 }
 0xaba   : > { %v7956_v16 = vpop.f32.mrb[31].mxu0  ;;  %14716 = vmatpush3.bf16.msra.mxu1 %v14713_v47 }
 0xabb   : > { %v14717_v28 = vpack.c.bf16 %v13632_v23, %v7956_v16 }
 0xabd   : > { %v13635_v49 = vpop.f32.mrb[32].mxu0  ;;  %14718 = vmatprep.subr.bf16.mxu1 %v14717_v28 }
 0xabe   : > { %v7966_v51 = vpop.f32.mrb[33].mxu0  ;;  %14720 = vmatpush3.bf16.msra.mxu1 %v14717_v28 }
 0xabf   : > { %v14721_v40 = vpack.c.bf16 %v13635_v49, %v7966_v51  ;;  %v7865_v49 = vld [vmem:[%s18618_s13 + $0x8] sm:$0xff] }
 0xac1   : > { %v13638_v48 = vpop.f32.mrb[34].mxu0  ;;  %14722 = vmatprep.subr.bf16.mxu1 %v14721_v40 }
 0xac2   : > { %v7976_v54 = vpop.f32.mrb[35].mxu0  ;;  %14724 = vmatpush3.bf16.msra.mxu1 %v14721_v40 }
 0xac3   : > { %v14725_v52 = vpack.c.bf16 %v13638_v48, %v7976_v54 }
 0xac5   : > { %v13641_v46 = vpop.f32.mrb[36].mxu0  ;;  %14726 = vmatprep.subr.bf16.mxu1 %v14725_v52 }
 0xac6   : > { %v7986_v58 = vpop.f32.mrb[37].mxu0  ;;  %14728 = vmatpush3.bf16.msra.mxu1 %v14725_v52  ;;  %v7868_v52 = vld [vmem:[%s18618_s13 + $0x20] sm:$0xff] }
 0xac7   : > { %v14729_v34 = vpack.c.bf16 %v13641_v46, %v7986_v58 }
 0xac9   : > { %v13644_v57 = vpop.f32.mrb[38].mxu0  ;;  %14730 = vmatprep.subr.bf16.mxu1 %v14729_v34 }
 0xaca   : > { %v7996_v59 = vpop.f32.mrb[39].mxu0  ;;  %14732 = vmatpush3.bf16.msra.mxu1 %v14729_v34  ;;  %v7869_v34 = vld [vmem:[%s18618_s13 + $0x28] sm:$0xff] }
 0xacb   : > { %v14733_v8 = vpack.c.bf16 %v13644_v57, %v7996_v59  ;;  %v7870_v59 = vld [vmem:[%s18618_s13 + $0x30] sm:$0xff] }
 0xacd   : > { %v13647_v55 = vpop.f32.mrb[40].mxu0  ;;  %14734 = vmatprep.subr.bf16.mxu1 %v14733_v8 }
 0xace   : > { %v8006_v53 = vpop.f32.mrb[41].mxu0  ;;  %14736 = vmatpush3.bf16.msra.mxu1 %v14733_v8 }
 0xacf   : > { %v14737_v18 = vpack.c.bf16 %v13647_v55, %v8006_v53  ;;  %v7871_v53 = vld [vmem:[%s18618_s13 + $0x38] sm:$0xff] }
 0xad1   : > { %v13650_v3 = vpop.f32.mrb[42].mxu0  ;;  %14738 = vmatprep.subr.bf16.mxu1 %v14737_v18 }
 0xad2   : > { %v8016_v0 = vpop.f32.mrb[43].mxu0  ;;  %14740 = vmatpush3.bf16.msra.mxu1 %v14737_v18 }
 0xad3   : > { %v14741_v44 = vpack.c.bf16 %v13650_v3, %v8016_v0  ;;  %v7872_v3 = vld [vmem:[%s18618_s13 + $0x40] sm:$0xff]  ;;  %v7873_v0 = vld [vmem:[%s18618_s13 + $0x48] sm:$0xff] }
 0xad5   : > { %14742 = vmatprep.subr.bf16.mxu1 %v14741_v44  ;;  %v13761_v1 = vpop.f32.mrb[44].mxu0 }
 0xad6   : > { %14744 = vmatpush3.bf16.msra.mxu1 %v14741_v44  ;;  %v8378_v60 = vpop.f32.mrb[45].mxu0  ;;  %v7874_v44 = vld [vmem:[%s18618_s13 + $0x50] sm:$0xff] }
 0xad7   : > { %v18149_v9 = vpack.c.bf16 %v13761_v1, %v8378_v60  ;;  %14746 = vmatprep.subr.bf16.mxu1 %v18116_v14 }
 0xad9   : > { %v13764_v5 = vpop.f32.mrb[46].mxu0  ;;  %13684 = vmatmul.mubr.f32.vlgmr.msra.gmra.mrb[86].mxu1 %v10667_v50  ;;  %v7875_v50 = vld [vmem:[%s18618_s13 + $0x58] sm:$0xff] }
 0xada   : > { %14748 = vmatpush3.bf16.msra.mxu1 %v18116_v14  ;;  %v8388_v61 = vpop.f32.mrb[47].mxu0  ;;  %13686 = vmatprep.mubr.f32.mxu1 %v10668_v56  ;;  %v10672_v14 = vld [vmem:[%s18618_s13 + $0xa0] sm:$0xff] }
 0xadb   : > { %v18159_v2 = vpack.c.bf16 %v13764_v5, %v8388_v61  ;;  %14750 = vmatprep.subr.bf16.mxu1 %v18118_v20  ;;  %v7876_v56 = vld [vmem:[%s18618_s13 + $0x60] sm:$0xff] }
 0xadd   : > { %v13767_v15 = vpop.f32.mrb[48].mxu0  ;;  %13687 = vmatmul.mubr.f32.gmra.mrb[88].mxu1 %v10669_v6  ;;  %v7877_v6 = vld [vmem:[%s18618_s13 + $0x68] sm:$0xff] }
 0xade   : > { %14752 = vmatpush3.bf16.msra.mxu1 %v18118_v20  ;;  %v8398_v11 = vpop.f32.mrb[49].mxu0  ;;  %13689 = vmatprep.mubr.f32.mxu1 %v10670_v7  ;;  %v10673_v20 = vld [vmem:[%s18618_s13 + $0xa8] sm:$0xff]  ;;  %v10697_v7 = vld [vmem:[%s18618_s13 + $0xe0] sm:$0xff] }
 0xadf   : > { %v18169_v13 = vpack.c.bf16 %v13767_v15, %v8398_v11  ;;  %14754 = vmatprep.subr.bf16.mxu1 %v18120_v27 }
 0xae1   : > { %v13770_v22 = vpop.f32.mrb[50].mxu0  ;;  %13690 = vmatmul.mubr.f32.gmra.mrb[90].mxu1 %v10671_v12 }
 0xae2   : > { %14756 = vmatpush3.bf16.msra.mxu1 %v18120_v27  ;;  %v8408_v17 = vpop.f32.mrb[51].mxu0  ;;  %13692 = vmatprep.mubr.f32.mxu1 %v10672_v14  ;;  %v10675_v27 = vld [vmem:[%s18618_s13 + $0xb8] sm:$0xff]  ;;  %v10699_v14 = vld [vmem:[%s18618_s13 + $0xf0] sm:$0xff] }
 0xae3   : > { %v18179_v21 = vpack.c.bf16 %v13770_v22, %v8408_v17  ;;  %14758 = vmatprep.subr.bf16.mxu1 %v18122_v29  ;;  %v10700_v22 = vld [vmem:[%s18618_s13 + $0xf8] sm:$0xff]  ;;  %v10701_v17 = vld [vmem:[%s18618_s13 + $0x100] sm:$0xff] }
 0xae5   : > { %v13773_v24 = vpop.f32.mrb[52].mxu0  ;;  %13693 = vmatmul.mubr.f32.gmra.mrb[92].mxu1 %v10673_v20  ;;  %v10702_v20 = vld [vmem:[%s18618_s13 + $0x108] sm:$0xff] }
 0xae6   : > { %14760 = vmatpush3.bf16.msra.mxu1 %v18122_v29  ;;  %v8418_v25 = vpop.f32.mrb[53].mxu0  ;;  %13695 = vmatprep.mubr.f32.mxu1 %v10674_v19  ;;  %v10677_v29 = vld [vmem:[%s18618_s13 + $0xc8] sm:$0xff]  ;;  %v10704_v19 = vld [vmem:[%s18618_s13 + $0x118] sm:$0xff] }
 0xae7   : > { %v18189_v30 = vpack.c.bf16 %v13773_v24, %v8418_v25  ;;  %14762 = vmatprep.subr.bf16.mxu1 %v18124_v31  ;;  %v10705_v24 = vld [vmem:[%s18618_s13 + $0x120] sm:$0xff]  ;;  %v10706_v25 = vld [vmem:[%s18618_s13 + $0x128] sm:$0xff] }
 0xae9   : > { %v13776_v32 = vpop.f32.mrb[54].mxu0  ;;  %13696 = vmatmul.mubr.f32.gmra.mrb[94].mxu1 %v10675_v27  ;;  %v10707_v27 = vld [vmem:[%s18618_s13 + $0x130] sm:$0xff] }
 0xaea   : > { %14764 = vmatpush3.bf16.msra.mxu1 %v18124_v31  ;;  %v8428_v35 = vpop.f32.mrb[55].mxu0  ;;  %13698 = vmatprep.mubr.f32.mxu1 %v10676_v33  ;;  %v10679_v31 = vld [vmem:[%s18618_s13 + $0xd8] sm:$0xff]  ;;  %v10709_v33 = vld [vmem:[%s18618_s13 + $0x140] sm:$0xff] }
 0xaeb   : > { %v18199_v37 = vpack.c.bf16 %v13776_v32, %v8428_v35  ;;  %14766 = vmatprep.subr.bf16.mxu1 %v18126_v39  ;;  %v10710_v32 = vld [vmem:[%s18618_s13 + $0x148] sm:$0xff]  ;;  %v10728_v35 = vld [vmem:[%s18618_s13 + $0x150] sm:$0xff] }
 0xaed   : > { %v13779_v41 = vpop.f32.mrb[56].mxu0  ;;  %13699 = vmatmul.mubr.f32.gmra.mrb[96].mxu1 %v10677_v29  ;;  %v10729_v29 = vld [vmem:[%s18618_s13 + $0x158] sm:$0xff] }
 0xaee   : > { %14768 = vmatpush3.bf16.msra.mxu1 %v18126_v39  ;;  %v8438_v4 = vpop.f32.mrb[57].mxu0  ;;  %13701 = vmatprep.mubr.f32.mxu1 %v10678_v45  ;;  %v10731_v45 = vld [vmem:[%s18618_s13 + $0x168] sm:$0xff] }
 0xaef   : > { %v18209_v10 = vpack.c.bf16 %v13779_v41, %v8438_v4  ;;  %14770 = vmatprep.subr.bf16.mxu1 %v18128_v38  ;;  %v10732_v41 = vld [vmem:[%s18618_s13 + $0x170] sm:$0xff]  ;;  %v10733_v4 = vld [vmem:[%s18618_s13 + $0x178] sm:$0xff] }
 0xaf1   : > { %v13782_v47 = vpop.f32.mrb[58].mxu0  ;;  %13702 = vmatmul.mubr.f32.gmra.mrb[98].mxu1 %v10679_v31  ;;  %v10734_v31 = vld [vmem:[%s18618_s13 + $0x180] sm:$0xff] }
 0xaf2   : > { %14772 = vmatpush3.bf16.msra.mxu1 %v18128_v38  ;;  %v8448_v23 = vpop.f32.mrb[59].mxu0  ;;  %13736 = vmatprep.mubr.f32.mxu1 %v7864_v43  ;;  %v7866_v38 = vld [vmem:[%s18618_s13 + $0x10] sm:$0xff] }
 0xaf3   : > { %v18216_v39 = vpack.c.bf16 %v13782_v47, %v8448_v23  ;;  %14774 = vmatprep.subr.bf16.mxu1 %v18130_v42  ;;  %v10736_v43 = vld [vmem:[%s18618_s13 + $0x190] sm:$0xff]  ;;  %v10737_v47 = vld [vmem:[%s18618_s13 + $0x198] sm:$0xff]  ;;  %v10738_v23 = vld [vmem:[%s18618_s13 + $0x1a0] sm:$0xff] }
 0xaf5   : > { %v13840_v16 = vpop.f32.mrb[60].mxu0 }
 0xaf6   : > { %14776 = vmatpush3.bf16.msra.mxu1 %v18130_v42  ;;  %v8689_v28 = vpop.f32.mrb[61].mxu0  ;;  %v7867_v42 = vld [vmem:[%s18618_s13 + $0x18] sm:$0xff] }
 0xaf7   : > { %v18223_v51 = vpack.c.bf16 %v13840_v16, %v8689_v28  ;;  %14778 = vmatprep.subr.bf16.mxu1 %v18149_v9  ;;  %v10740_v16 = vld [vmem:[%s18618_s13 + $0x1b0] sm:$0xff]  ;;  %v10741_v28 = vld [vmem:[%s18618_s13 + $0x1b8] sm:$0xff] }
 0xaf9   : > { %v13843_v40 = vpop.f32.mrb[62].mxu0  ;;  %13737 = vmatmul.mubr.f32.vlgmr.msra.gmra.mrb[86].mxu1 %v7865_v49  ;;  %v10757_v49 = vld [vmem:[%s18622_s17 + $0x10] sm:$0xff] }
 0xafa   : > { %14780 = vmatpush3.bf16.msra.mxu1 %v18149_v9  ;;  %v8699_v48 = vpop.f32.mrb[63].mxu0  ;;  %13739 = vmatprep.mubr.f32.mxu1 %v7866_v38 }
 0xafb   : > { %v18233_v54 = vpack.c.bf16 %v13843_v40, %v8699_v48  ;;  %14782 = vmatprep.subr.bf16.mxu1 %v18159_v2  ;;  %v8954_v40 = vpop.permute.xlu1 %8953  ;;  %v8949_v48 = vpop.permute.xlu0 %8948 }
 0xafd   : > { %v13846_v46 = vpop.f32.mrb[64].mxu0  ;;  %13740 = vmatmul.mubr.f32.gmra.mrb[88].mxu1 %v7867_v42 }
 0xafe   : > { %14784 = vmatpush3.bf16.msra.mxu1 %v18159_v2  ;;  %v8709_v58 = vpop.f32.mrb[65].mxu0  ;;  %13742 = vmatprep.mubr.f32.mxu1 %v7868_v52 }
 0xaff   : > { %v14817_v57 = vpack.c.bf16 %v13846_v46, %v8709_v58  ;;  %14786 = vmatprep.subr.bf16.mxu1 %v18169_v13  ;;  %v8964_v42 = vpop.permute.xlu1 %8963 }
 0xb01   : > { %v13849_v8 = vpop.f32.mrb[66].mxu0  ;;  %13743 = vmatmul.mubr.f32.gmra.mrb[90].mxu1 %v7869_v34 }
 0xb02   : > { %14788 = vmatpush3.bf16.msra.mxu1 %v18169_v13  ;;  %v8719_v55 = vpop.f32.mrb[67].mxu0  ;;  %13745 = vmatprep.mubr.f32.mxu1 %v7870_v59  ;;  %v10698_v13 = vld [vmem:[%s18618_s13 + $0xe8] sm:$0xff] }
 0xb03   : > { %v14821_v18 = vpack.c.bf16 %v13849_v8, %v8719_v55  ;;  %14790 = vmatprep.subr.bf16.mxu1 %v18179_v21  ;;  %v8974_v52 = vpop.permute.xlu1 %8973  ;;  %v10792_v8 = vld [vmem:[%s18622_s17 + $0x20] sm:$0xff]  ;;  %v10793_v55 = vld [vmem:[%s18622_s17 + $0x28] sm:$0x3f] }
 0xb05   : > { %v13852_v26 = vpop.f32.mrb[68].mxu0  ;;  %13746 = vmatmul.mubr.f32.gmra.mrb[92].mxu1 %v7871_v53 }
 0xb06   : > { %14792 = vmatpush3.bf16.msra.mxu1 %v18179_v21  ;;  %v8729_v62 = vpop.f32.mrb[69].mxu0  ;;  %13748 = vmatprep.mubr.f32.mxu1 %v7872_v3  ;;  %v10703_v21 = vld [vmem:[%s18618_s13 + $0x110] sm:$0xff] }
 0xb07   : > { %v14825_v36 = vpack.c.bf16 %v13852_v26, %v8729_v62  ;;  %14794 = vmatprep.subr.bf16.mxu1 %v18189_v30 }
 0xb09   : > { %v13855_v1 = vpop.f32.mrb[70].mxu0  ;;  %13749 = vmatmul.mubr.f32.gmra.mrb[94].mxu1 %v7873_v0  ;;  %v14909_v0 = vpack.c.bf16 %v10793_v55, %v10792_v8 }
 0xb0a   : > { %14796 = vmatpush3.bf16.msra.mxu1 %v18189_v30  ;;  %v8739_v60 = vpop.f32.mrb[71].mxu0  ;;  %13751 = vmatprep.mubr.f32.mxu1 %v7874_v44  ;;  %v10708_v30 = vld [vmem:[%s18618_s13 + $0x138] sm:$0xff] }
 0xb0b   : > { %v14829_v9 = vpack.c.bf16 %v13855_v1, %v8739_v60  ;;  %14798 = vmatprep.subr.bf16.mxu1 %v18199_v37 }
 0xb0d   : > { %v13858_v5 = vpop.f32.mrb[72].mxu0  ;;  %13752 = vmatmul.mubr.f32.gmra.mrb[96].mxu1 %v7875_v50 }
 0xb0e   : > { %14800 = vmatpush3.bf16.msra.mxu1 %v18199_v37  ;;  %v8749_v61 = vpop.f32.mrb[73].mxu0  ;;  %13754 = vmatprep.mubr.f32.mxu1 %v7876_v56  ;;  %v10730_v37 = vld [vmem:[%s18618_s13 + $0x160] sm:$0xff] }
 0xb0f   : > { %v14833_v2 = vpack.c.bf16 %v13858_v5, %v8749_v61  ;;  %14802 = vmatprep.subr.bf16.mxu1 %v18209_v10 }
 0xb11   : > { %v13861_v15 = vpop.f32.mrb[74].mxu0  ;;  %13755 = vmatmul.mubr.f32.gmra.mrb[98].mxu1 %v7877_v6 }
 0xb12   : > { %14804 = vmatpush3.bf16.msra.mxu1 %v18209_v10  ;;  %v8759_v11 = vpop.f32.mrb[75].mxu0  ;;  %13815 = vmatprep.mubr.f32.mxu1 %v10697_v7  ;;  %v10735_v10 = vld [vmem:[%s18618_s13 + $0x188] sm:$0xff] }
 0xb13   : > { %v14837_v12 = vpack.c.bf16 %v13861_v15, %v8759_v11  ;;  %14806 = vmatprep.subr.bf16.mxu1 %v18216_v39 }
 0xb16   : > { %14808 = vmatpush3.bf16.msra.mxu1 %v18216_v39  ;;  %v10739_v39 = vld [vmem:[%s18618_s13 + $0x1a8] sm:$0xff] }
 0xb17   : > { %14810 = vmatprep.subr.bf16.mxu1 %v18223_v51 }
 0xb19   : > { %13816 = vmatmul.mubr.f32.vlgmr.msra.gmra.mrb[86].mxu1 %v10698_v13 }
 0xb1a   : > { %14812 = vmatpush3.bf16.msra.mxu1 %v18223_v51  ;;  %13818 = vmatprep.mubr.f32.mxu1 %v10699_v14  ;;  %v10758_v51 = vld [vmem:[%s18622_s17 + $0x18] sm:$0x3f] }
 0xb1b   : > { %14814 = vmatprep.subr.bf16.mxu1 %v18233_v54  ;;  %v14847_v38 = vpack.c.bf16 %v10758_v51, %v10757_v49 }
 0xb1d   : > { %13819 = vmatmul.mubr.f32.gmra.mrb[88].mxu1 %v10700_v22  ;;  %14849 = vmatprep.subr.msk.bf16.mxu0 %vm18138_vm7, %v14847_v38 }
 0xb1e   : > { %14816 = vmatpush3.bf16.msra.mxu1 %v18233_v54  ;;  %13821 = vmatprep.mubr.f32.mxu1 %v10701_v17  ;;  %v8959_v54 = vpop.permute.xlu0 %8958 }
 0xb1f   : > { %14818 = vmatprep.subr.bf16.mxu1 %v14817_v57 }
 0xb21   : > { %13822 = vmatmul.mubr.f32.gmra.mrb[90].mxu1 %v10702_v20 }
 0xb22   : > { %14820 = vmatpush3.bf16.msra.mxu1 %v14817_v57  ;;  %13824 = vmatprep.mubr.f32.mxu1 %v10703_v21  ;;  %v8969_v58 = vpop.permute.xlu0 %8968 }
 0xb23   : > { %14822 = vmatprep.subr.bf16.mxu1 %v14821_v18 }
 0xb25   : > { %13825 = vmatmul.mubr.f32.gmra.mrb[92].mxu1 %v10704_v19 }
 0xb26   : > { %14824 = vmatpush3.bf16.msra.mxu1 %v14821_v18  ;;  %13827 = vmatprep.mubr.f32.mxu1 %v10705_v24  ;;  %v8979_v1 = vpop.permute.xlu0 %8978 }
 0xb27   : > { %14826 = vmatprep.subr.bf16.mxu1 %v14825_v36 }
 0xb29   : > { %13828 = vmatmul.mubr.f32.gmra.mrb[94].mxu1 %v10706_v25 }
 0xb2a   : > { %14828 = vmatpush3.bf16.msra.mxu1 %v14825_v36  ;;  %13830 = vmatprep.mubr.f32.mxu1 %v10707_v27  ;;  %v8984_v36 = vpop.permute.xlu1 %8983  ;;  %v8989_v15 = vpop.permute.xlu0 %8988 }
 0xb2b   : > { %14830 = vmatprep.subr.bf16.mxu1 %v14829_v9 }
 0xb2d   : > { %13831 = vmatmul.mubr.f32.gmra.mrb[96].mxu1 %v10708_v30 }
 0xb2e   : > { %14832 = vmatpush3.bf16.msra.mxu1 %v14829_v9  ;;  %13833 = vmatprep.mubr.f32.mxu1 %v10709_v33  ;;  %v8994_v6 = vpop.permute.xlu1 %8993  ;;  %v8999_v27 = vpop.permute.xlu0 %8998 }
 0xb2f   : > { %14834 = vmatprep.subr.bf16.mxu1 %v14833_v2 }
 0xb31   : > { %13834 = vmatmul.mubr.f32.gmra.mrb[98].mxu1 %v10710_v32 }
 0xb32   : > { %14836 = vmatpush3.bf16.msra.mxu1 %v14833_v2  ;;  %13894 = vmatprep.mubr.f32.mxu1 %v10728_v35  ;;  %v9004_v24 = vpop.permute.xlu1 %9003 }
 0xb33   : > { %14838 = vmatprep.subr.bf16.mxu1 %v14837_v12 }
 0xb36   : > { %14840 = vmatpush3.bf16.msra.mxu1 %v14837_v12 }
 0xb39   : > { %13895 = vmatmul.mubr.f32.vlgmr.msra.gmra.mrb[86].mxu1 %v10729_v29 }
 0xb3a   : > { %13897 = vmatprep.mubr.f32.mxu1 %v10730_v37 }
 0xb3d   : > { %13898 = vmatmul.mubr.f32.gmra.mrb[88].mxu1 %v10731_v45  ;;  %v9014_v45 = vpop.permute.xlu1 %9013 }
 0xb3e   : > { %13900 = vmatprep.mubr.f32.mxu1 %v10732_v41 }
 0xb41   : > { %13901 = vmatmul.mubr.f32.gmra.mrb[90].mxu1 %v10733_v4 }
 0xb42   : > { %13903 = vmatprep.mubr.f32.mxu1 %v10734_v31  ;;  %v9009_v31 = vpop.permute.xlu0 %9008 }
 0xb45   : > { %13904 = vmatmul.mubr.f32.gmra.mrb[92].mxu1 %v10735_v10 }
 0xb46   : > { %13906 = vmatprep.mubr.f32.mxu1 %v10736_v43 }
 0xb49   : > { %13907 = vmatmul.mubr.f32.gmra.mrb[94].mxu1 %v10737_v47 }
 0xb4a   : > { %13909 = vmatprep.mubr.f32.mxu1 %v10738_v23 }
 0xb4d   : > { %13910 = vmatmul.mubr.f32.gmra.mrb[96].mxu1 %v10739_v39 }
 0xb4e   : > { %13912 = vmatprep.mubr.f32.mxu1 %v10740_v16 }
 0xb51   : > { %13913 = vmatmul.mubr.f32.gmra.mrb[98].mxu1 %v10741_v28 }
 0xb52   : > { %13993 = vmatprep.mubr.msk.f32.mxu1 %vm9382_vm9, %v10774_v63 }
 0xc0c   : > { %v13896_v46 = vpop.f32.mrb[86].mxu1 }
 0xc0d   : > { %v9017_v34 = vadd.f32 %v13896_v46, %v8954_v40  ;;  %v8849_v57 = vpop.f32.mrb[87].mxu1 }
 0xc0e   : > { %v9016_v59 = vadd.f32 %v8949_v48, %v8849_v57 }
 0xc0f   : > { %v18383_v3 = vmax.f32 %v9017_v34, 0.0 }
 0xc10   : > { %v18381_v53 = vmax.f32 %v9016_v59, 0.0  ;;  %v13899_v18 = vpop.f32.mrb[88].mxu1 }
 0xc11   : > { %v9019_v26 = vadd.f32 %v13899_v18, %v8964_v42  ;;  %v8859_v62 = vpop.f32.mrb[89].mxu1 }
 0xc12   : > { %v9018_v44 = vadd.f32 %v8959_v54, %v8859_v62  ;;  %13919 = vmatprep.mubr.msk.f32.mxu0 %vm9046_vm8, %v18381_v53 }
 0xc13   : > { %13920 = vmatmul.mubr.msk.f32.vlgmr.msra.gmra.mrb[76].mxu0 %vm9046_vm8, %v18383_v3  ;;  %v18393_v9 = vmax.f32 %v9019_v26, 0.0 }
 0xc14   : > { %v18389_v60 = vmax.f32 %v9018_v44, 0.0  ;;  %v13902_v50 = vpop.f32.mrb[90].mxu1  ;;  %14852 = vmatpush3.bf16.msk.msra.mxu0 %vm18138_vm7, %v14847_v38 }
 0xc15   : > { %v9021_v56 = vadd.f32 %v13902_v50, %v8974_v52  ;;  %v8869_v5 = vpop.f32.mrb[91].mxu1  ;;  %14911 = vmatprep.subr.msk.bf16.mxu0 %vm18138_vm7, %v14909_v0 }
 0xc16   : > { %v9020_v61 = vadd.f32 %v8969_v58, %v8869_v5  ;;  %13922 = vmatprep.mubr.msk.f32.mxu0 %vm9046_vm8, %v18389_v60 }
 0xc17   : > { %13923 = vmatmul.mubr.msk.f32.gmra.mrb[78].mxu0 %vm9046_vm8, %v18393_v9  ;;  %v9035_v11 = vmax.f32 %v9021_v56, 0.0 }
 0xc18   : > { %v9034_v2 = vmax.f32 %v9020_v61, 0.0  ;;  %v13905_v7 = vpop.f32.mrb[92].mxu1 }
 0xc19   : > { %v9023_v12 = vadd.f32 %v13905_v7, %v8984_v36  ;;  %v8879_v13 = vpop.f32.mrb[93].mxu1 }
 0xc1a   : > { %v9022_v14 = vadd.f32 %v8979_v1, %v8879_v13  ;;  %13925 = vmatprep.mubr.msk.f32.mxu0 %vm9046_vm8, %v9034_v2 }
 0xc1b   : > { %13926 = vmatmul.mubr.msk.f32.gmra.mrb[80].mxu0 %vm9046_vm8, %v9035_v11  ;;  %v9037_v20 = vmax.f32 %v9023_v12, 0.0 }
 0xc1c   : > { %v9036_v22 = vmax.f32 %v9022_v14, 0.0  ;;  %v13908_v17 = vpop.f32.mrb[94].mxu1 }
 0xc1d   : > { %v9025_v21 = vadd.f32 %v13908_v17, %v8994_v6  ;;  %v8889_v19 = vpop.f32.mrb[95].mxu1 }
 0xc1e   : > { %v9024_v25 = vadd.f32 %v8989_v15, %v8889_v19  ;;  %13928 = vmatprep.mubr.msk.f32.mxu0 %vm9046_vm8, %v9036_v22 }
 0xc1f   : > { %13929 = vmatmul.mubr.msk.f32.gmra.mrb[82].mxu0 %vm9046_vm8, %v9037_v20  ;;  %v9039_v32 = vmax.f32 %v9025_v21, 0.0 }
 0xc20   : > { %v9038_v30 = vmax.f32 %v9024_v25, 0.0  ;;  %v13911_v33 = vpop.f32.mrb[96].mxu1 }
 0xc21   : > { %v9027_v35 = vadd.f32 %v13911_v33, %v9004_v24  ;;  %v8899_v29 = vpop.f32.mrb[97].mxu1  ;;  %v10775_v24 = vld [vmem:[%s18621_s16 + $0x38] sm:$0xff] }
 0xc22   : > { %v9026_v37 = vadd.f32 %v8999_v27, %v8899_v29  ;;  %13931 = vmatprep.mubr.msk.f32.mxu0 %vm9046_vm8, %v9038_v30  ;;  %v10776_v27 = vld [vmem:[%s18621_s16 + $0x40] sm:$0xff]  ;;  %v10778_v29 = vld [vmem:[%s18621_s16 + $0x50] sm:$0xff] }
 0xc23   : > { %13932 = vmatmul.mubr.msk.f32.gmra.mrb[84].mxu0 %vm9046_vm8, %v9039_v32  ;;  %v9041_v10 = vmax.f32 %v9027_v35, 0.0 }
 0xc24   : > { %v9040_v41 = vmax.f32 %v9026_v37, 0.0  ;;  %v13914_v4 = vpop.f32.mrb[98].mxu1 }
 0xc25   : > { %v9029_v43 = vadd.f32 %v13914_v4, %v9014_v45  ;;  %v8909_v47 = vpop.f32.mrb[99].mxu1 }
 0xc26   : > { %v9028_v23 = vadd.f32 %v9009_v31, %v8909_v47  ;;  %13934 = vmatprep.mubr.msk.f32.mxu0 %vm9046_vm8, %v9040_v41  ;;  %v9228_v31 = vld [vmem:[%s18621_s16] sm:$0xff] }
 0xc27   : > { %13935 = vmatmul.mubr.msk.f32.gmra.mrb[86].mxu0 %vm9046_vm8, %v9041_v10  ;;  %v9043_v16 = vmax.f32 %v9029_v43, 0.0 }
 0xc28   : > { %v9042_v39 = vmax.f32 %v9028_v23, 0.0 }
 0xc2a   : > { %13937 = vmatprep.mubr.msk.f32.mxu0 %vm9046_vm8, %v9042_v39 }
 0xc2b   : > { %13938 = vmatmul.mubr.msk.f32.gmra.mrb[88].mxu0 %vm9046_vm8, %v9043_v16 }
 0xc2c   : > { %13944 = vmatprep.mubr.msk.f32.mxu0 %vm9046_vm8, %v18381_v53 }
 0xc2f   : > { %13945 = vmatmul.mubr.msk.f32.vlgmr.msra.gmra.mrb[90].mxu0 %vm9046_vm8, %v18383_v3 }
 0xc30   : > { %13947 = vmatprep.mubr.msk.f32.mxu0 %vm9046_vm8, %v18389_v60  ;;  %14914 = vmatpush3.bf16.msk.msra.mxu0 %vm18138_vm7, %v14909_v0 }
 0xc33   : > { %13948 = vmatmul.mubr.msk.f32.gmra.mrb[92].mxu0 %vm9046_vm8, %v18393_v9 }
 0xc34   : > { %13950 = vmatprep.mubr.msk.f32.mxu0 %vm9046_vm8, %v9034_v2 }
 0xc37   : > { %13951 = vmatmul.mubr.msk.f32.gmra.mrb[94].mxu0 %vm9046_vm8, %v9035_v11 }
 0xc38   : > { %13953 = vmatprep.mubr.msk.f32.mxu0 %vm9046_vm8, %v9036_v22 }
 0xc3b   : > { %13954 = vmatmul.mubr.msk.f32.gmra.mrb[96].mxu0 %vm9046_vm8, %v9037_v20 }
 0xc3c   : > { %13956 = vmatprep.mubr.msk.f32.mxu0 %vm9046_vm8, %v9038_v30 }
 0xc3f   : > { %13957 = vmatmul.mubr.msk.f32.gmra.mrb[98].mxu0 %vm9046_vm8, %v9039_v32 }
 0xc40   : > { %13959 = vmatprep.mubr.msk.f32.mxu0 %vm9046_vm8, %v9040_v41 }
 0xc43   : > { %13960 = vmatmul.mubr.msk.f32.gmra.mrb[100].mxu0 %vm9046_vm8, %v9041_v10 }
 0xc44   : > { %13962 = vmatprep.mubr.msk.f32.mxu0 %vm9046_vm8, %v9042_v39 }
 0xc47   : > { %13963 = vmatmul.mubr.msk.f32.gmra.mrb[102].mxu0 %vm9046_vm8, %v9043_v16 }
 0xc48   : > { %14043 = vmatprep.mubr.msk.f32.mxu0 %vm9046_vm8, %v18381_v53 }
 0xc4b   : > { %14044 = vmatmul.mubr.msk.f32.vlgmr.msra.gmra.mrb[104].mxu0 %vm9046_vm8, %v18383_v3 }
 0xc4c   : > { %14046 = vmatprep.mubr.msk.f32.mxu0 %vm9046_vm8, %v18389_v60 }
 0xc4f   : > { %14047 = vmatmul.mubr.msk.f32.gmra.mrb[106].mxu0 %vm9046_vm8, %v18393_v9 }
 0xc50   : > { %14049 = vmatprep.mubr.msk.f32.mxu0 %vm9046_vm8, %v9034_v2 }
 0xc53   : > { %14050 = vmatmul.mubr.msk.f32.gmra.mrb[108].mxu0 %vm9046_vm8, %v9035_v11 }
 0xc54   : > { %14052 = vmatprep.mubr.msk.f32.mxu0 %vm9046_vm8, %v9036_v22 }
 0xc57   : > { %14053 = vmatmul.mubr.msk.f32.gmra.mrb[110].mxu0 %vm9046_vm8, %v9037_v20 }
 0xc58   : > { %14055 = vmatprep.mubr.msk.f32.mxu0 %vm9046_vm8, %v9038_v30 }
 0xc5b   : > { %14056 = vmatmul.mubr.msk.f32.gmra.mrb[112].mxu0 %vm9046_vm8, %v9039_v32  ;;  %v10777_v32 = vld [vmem:[%s18621_s16 + $0x48] sm:$0xff] }
 0xc5c   : > { %14058 = vmatprep.mubr.msk.f32.mxu0 %vm9046_vm8, %v9040_v41  ;;  %v10779_v41 = vld [vmem:[%s18621_s16 + $0x58] sm:$0xff] }
 0xc5f   : > { %14059 = vmatmul.mubr.msk.f32.gmra.mrb[114].mxu0 %vm9046_vm8, %v9041_v10 }
 0xc60   : > { %14061 = vmatprep.mubr.msk.f32.mxu0 %vm9046_vm8, %v9042_v39 }
 0xc63   : > { %14062 = vmatmul.mubr.msk.f32.gmra.mrb[116].mxu0 %vm9046_vm8, %v9043_v16 }
 0xce6   : > { %v13921_v28 = vpop.f32.mrb[76].mxu0 }
 0xce7   : > { %v9159_v49 = vpop.f32.mrb[77].mxu0 }
 0xce8   : > { %v14881_v51 = vpack.c.bf16 %v13921_v28, %v9159_v49 }
 0xcea   : > { %v13924_v38 = vpop.f32.mrb[78].mxu0 }
 0xceb   : > { %v9169_v40 = vpop.f32.mrb[79].mxu0 }
 0xcec   : > { %v18453_v48 = vpack.c.bf16 %v13924_v38, %v9169_v40 }
 0xcee   : > { %v13927_v42 = vpop.f32.mrb[80].mxu0 }
 0xcef   : > { %v9179_v54 = vpop.f32.mrb[81].mxu0 }
 0xcf0   : > { %v18455_v52 = vpack.c.bf16 %v13927_v42, %v9179_v54  ;;  %v9230_v42 = vld [vmem:[%s18621_s16 + $0x10] sm:$0xff]  ;;  %v9231_v54 = vld [vmem:[%s18621_s16 + $0x18] sm:$0xff] }
 0xcf2   : > { %v13930_v46 = vpop.f32.mrb[82].mxu0 }
 0xcf3   : > { %v9189_v58 = vpop.f32.mrb[83].mxu0 }
 0xcf4   : > { %v18457_v34 = vpack.c.bf16 %v13930_v46, %v9189_v58  ;;  %v9233_v46 = vld [vmem:[%s18621_s16 + $0x28] sm:$0xff]  ;;  %v10809_v58 = vld [vmem:[%s18621_s16 + $0x60] sm:$0xff] }
 0xcf6   : > { %v13933_v57 = vpop.f32.mrb[84].mxu0 }
 0xcf7   : > { %v9199_v59 = vpop.f32.mrb[85].mxu0 }
 0xcf8   : > { %v18459_v8 = vpack.c.bf16 %v13933_v57, %v9199_v59  ;;  %v10811_v57 = vld [vmem:[%s18621_s16 + $0x70] sm:$0xff]  ;;  %v10812_v59 = vld [vmem:[%s18621_s16 + $0x78] sm:$0xff] }
 0xcfa   : > { %v13936_v55 = vpop.f32.mrb[86].mxu0 }
 0xcfb   : > { %v9209_v53 = vpop.f32.mrb[87].mxu0 }
 0xcfc   : > { %v18461_v18 = vpack.c.bf16 %v13936_v55, %v9209_v53  ;;  %v10814_v55 = vld [vmem:[%s18621_s16 + $0x88] sm:$0xff]  ;;  %v9890_v53 = vpop.permute.xlu1 %9889 }
 0xcfe   : > { %v13939_v3 = vpop.f32.mrb[88].mxu0 }
 0xcff   : > { %v9219_v26 = vpop.f32.mrb[89].mxu0 }
 0xd00   : > { %v18463_v62 = vpack.c.bf16 %v13939_v3, %v9219_v26 }
 0xd02   : > { %v13946_v0 = vpop.f32.mrb[90].mxu0 }
 0xd03   : > { %v9306_v36 = vpop.f32.mrb[91].mxu0 }
 0xd04   : > { %v14853_v44 = vpack.c.bf16 %v13946_v0, %v9306_v36  ;;  %v9900_v0 = vpop.permute.xlu1 %9899 }
 0xd06   : > { %v13949_v1 = vpop.f32.mrb[92].mxu0  ;;  %14854 = vmatprep.subr.bf16.mxu1 %v14853_v44 }
 0xd07   : > { %v9316_v60 = vpop.f32.mrb[93].mxu0  ;;  %14856 = vmatpush3.bf16.msra.mxu1 %v14853_v44 }
 0xd08   : > { %v14857_v50 = vpack.c.bf16 %v13949_v1, %v9316_v60 }
 0xd0a   : > { %v13952_v9 = vpop.f32.mrb[94].mxu0  ;;  %14858 = vmatprep.subr.bf16.mxu1 %v14857_v50 }
 0xd0b   : > { %v9326_v56 = vpop.f32.mrb[95].mxu0  ;;  %14860 = vmatpush3.bf16.msra.mxu1 %v14857_v50 }
 0xd0c   : > { %v14861_v5 = vpack.c.bf16 %v13952_v9, %v9326_v56  ;;  %v9910_v56 = vpop.permute.xlu1 %9909 }
 0xd0e   : > { %v13955_v61 = vpop.f32.mrb[96].mxu0  ;;  %14862 = vmatprep.subr.bf16.mxu1 %v14861_v5 }
 0xd0f   : > { %v9336_v6 = vpop.f32.mrb[97].mxu0  ;;  %14864 = vmatpush3.bf16.msra.mxu1 %v14861_v5 }
 0xd10   : > { %v14865_v2 = vpack.c.bf16 %v13955_v61, %v9336_v6 }
 0xd12   : > { %v13958_v7 = vpop.f32.mrb[98].mxu0  ;;  %14866 = vmatprep.subr.bf16.mxu1 %v14865_v2 }
 0xd13   : > { %v9346_v15 = vpop.f32.mrb[99].mxu0  ;;  %14868 = vmatpush3.bf16.msra.mxu1 %v14865_v2 }
 0xd14   : > { %v14869_v11 = vpack.c.bf16 %v13958_v7, %v9346_v15 }
 0xd16   : > { %v13961_v12 = vpop.f32.mrb[100].mxu0  ;;  %14870 = vmatprep.subr.bf16.mxu1 %v14869_v11 }
 0xd17   : > { %v9356_v13 = vpop.f32.mrb[101].mxu0  ;;  %14872 = vmatpush3.bf16.msra.mxu1 %v14869_v11 }
 0xd18   : > { %v14873_v14 = vpack.c.bf16 %v13961_v12, %v9356_v13 }
 0xd1a   : > { %v13964_v22 = vpop.f32.mrb[102].mxu0  ;;  %14874 = vmatprep.subr.bf16.mxu1 %v14873_v14 }
 0xd1b   : > { %v9366_v17 = vpop.f32.mrb[103].mxu0  ;;  %14876 = vmatpush3.bf16.msra.mxu1 %v14873_v14 }
 0xd1c   : > { %v14877_v20 = vpack.c.bf16 %v13964_v22, %v9366_v17 }
 0xd1e   : > { %14878 = vmatprep.subr.bf16.mxu1 %v14877_v20  ;;  %v14045_v21 = vpop.f32.mrb[104].mxu0 }
 0xd1f   : > { %14880 = vmatpush3.bf16.msra.mxu1 %v14877_v20  ;;  %v9681_v19 = vpop.f32.mrb[105].mxu0 }
 0xd20   : > { %v14915_v25 = vpack.c.bf16 %v14045_v21, %v9681_v19  ;;  %14882 = vmatprep.subr.bf16.mxu1 %v14881_v51 }
 0xd22   : > { %v14048_v30 = vpop.f32.mrb[106].mxu0  ;;  %13994 = vmatmul.mubr.msk.f32.vlgmr.msra.gmra.mrb[100].mxu1 %vm9382_vm9, %v10775_v24 }
 0xd23   : > { %14884 = vmatpush3.bf16.msra.mxu1 %v14881_v51  ;;  %v9691_v33 = vpop.f32.mrb[107].mxu0  ;;  %13996 = vmatprep.mubr.msk.f32.mxu1 %vm9382_vm9, %v10776_v27 }
 0xd24   : > { %v14919_v35 = vpack.c.bf16 %v14048_v30, %v9691_v33  ;;  %14886 = vmatprep.subr.bf16.mxu1 %v18453_v48 }
 0xd26   : > { %v14051_v37 = vpop.f32.mrb[108].mxu0  ;;  %13997 = vmatmul.mubr.msk.f32.gmra.mrb[102].mxu1 %vm9382_vm9, %v10777_v32 }
 0xd27   : > { %14888 = vmatpush3.bf16.msra.mxu1 %v18453_v48  ;;  %v9701_v45 = vpop.f32.mrb[109].mxu0  ;;  %13999 = vmatprep.mubr.msk.f32.mxu1 %vm9382_vm9, %v10778_v29  ;;  %v9229_v48 = vld [vmem:[%s18621_s16 + $0x8] sm:$0xff] }
 0xd28   : > { %v14923_v4 = vpack.c.bf16 %v14051_v37, %v9701_v45  ;;  %14890 = vmatprep.subr.bf16.mxu1 %v18455_v52 }
 0xd2a   : > { %v14054_v10 = vpop.f32.mrb[110].mxu0  ;;  %14000 = vmatmul.mubr.msk.f32.gmra.mrb[104].mxu1 %vm9382_vm9, %v10779_v41 }
 0xd2b   : > { %14892 = vmatpush3.bf16.msra.mxu1 %v18455_v52  ;;  %v9711_v43 = vpop.f32.mrb[111].mxu0  ;;  %14030 = vmatprep.mubr.msk.f32.mxu1 %vm9382_vm9, %v9228_v31  ;;  %v9232_v52 = vld [vmem:[%s18621_s16 + $0x20] sm:$0xff] }
 0xd2c   : > { %v14927_v47 = vpack.c.bf16 %v14054_v10, %v9711_v43  ;;  %14894 = vmatprep.subr.bf16.mxu1 %v18457_v34 }
 0xd2e   : > { %v14057_v23 = vpop.f32.mrb[112].mxu0 }
 0xd2f   : > { %14896 = vmatpush3.bf16.msra.mxu1 %v18457_v34  ;;  %v9721_v39 = vpop.f32.mrb[113].mxu0  ;;  %v10810_v34 = vld [vmem:[%s18621_s16 + $0x68] sm:$0xff] }
 0xd30   : > { %v14931_v16 = vpack.c.bf16 %v14057_v23, %v9721_v39  ;;  %14898 = vmatprep.subr.bf16.mxu1 %v18459_v8 }
 0xd32   : > { %v14060_v63 = vpop.f32.mrb[114].mxu0 }
 0xd33   : > { %14900 = vmatpush3.bf16.msra.mxu1 %v18459_v8  ;;  %v9731_v28 = vpop.f32.mrb[115].mxu0  ;;  %v10813_v8 = vld [vmem:[%s18621_s16 + $0x80] sm:$0xff] }
 0xd34   : > { %v14935_v49 = vpack.c.bf16 %v14060_v63, %v9731_v28  ;;  %14902 = vmatprep.subr.bf16.mxu1 %v18461_v18 }
 0xd36   : > { %v14063_v51 = vpop.f32.mrb[116].mxu0 }
 0xd37   : > { %14904 = vmatpush3.bf16.msra.mxu1 %v18461_v18  ;;  %v9741_v38 = vpop.f32.mrb[117].mxu0  ;;  %v9885_v18 = vpop.permute.xlu0 %9884 }
 0xd38   : > { %v14939_v40 = vpack.c.bf16 %v14063_v51, %v9741_v38  ;;  %14906 = vmatprep.subr.bf16.mxu1 %v18463_v62 }
 0xd3b   : > { %14908 = vmatpush3.bf16.msra.mxu1 %v18463_v62  ;;  %v9895_v44 = vpop.permute.xlu0 %9894 }
 0xd3c   : > { %14916 = vmatprep.subr.bf16.mxu1 %v14915_v25 }
 0xd3e   : > { %14031 = vmatmul.mubr.msk.f32.vlgmr.msra.gmra.mrb[100].mxu1 %vm9382_vm9, %v9229_v48 }
 0xd3f   : > { %14918 = vmatpush3.bf16.msra.mxu1 %v14915_v25  ;;  %14033 = vmatprep.mubr.msk.f32.mxu1 %vm9382_vm9, %v9230_v42  ;;  %v9905_v61 = vpop.permute.xlu0 %9904 }
 0xd40   : > { %14920 = vmatprep.subr.bf16.mxu1 %v14919_v35 }
 0xd42   : > { %14034 = vmatmul.mubr.msk.f32.gmra.mrb[102].mxu1 %vm9382_vm9, %v9231_v54 }
 0xd43   : > { %14922 = vmatpush3.bf16.msra.mxu1 %v14919_v35  ;;  %14036 = vmatprep.mubr.msk.f32.mxu1 %vm9382_vm9, %v9232_v52 }
 0xd44   : > { %14924 = vmatprep.subr.bf16.mxu1 %v14923_v4 }
 0xd46   : > { %14037 = vmatmul.mubr.msk.f32.gmra.mrb[104].mxu1 %vm9382_vm9, %v9233_v46 }
 0xd47   : > { %14926 = vmatpush3.bf16.msra.mxu1 %v14923_v4  ;;  %14092 = vmatprep.mubr.msk.f32.mxu1 %vm9382_vm9, %v10809_v58 }
 0xd48   : > { %14928 = vmatprep.subr.bf16.mxu1 %v14927_v47 }
 0xd4b   : > { %14930 = vmatpush3.bf16.msra.mxu1 %v14927_v47 }
 0xd4c   : > { %14932 = vmatprep.subr.bf16.mxu1 %v14931_v16 }
 0xd4f   : > { %14934 = vmatpush3.bf16.msra.mxu1 %v14931_v16 }
 0xd50   : > { %14936 = vmatprep.subr.bf16.mxu1 %v14935_v49 }
 0xd53   : > { %14938 = vmatpush3.bf16.msra.mxu1 %v14935_v49 }
 0xd54   : > { %14940 = vmatprep.subr.bf16.mxu1 %v14939_v40 }
 0xd57   : > { %14942 = vmatpush3.bf16.msra.mxu1 %v14939_v40 }
 0xd5a   : > { %14093 = vmatmul.mubr.msk.f32.vlgmr.msra.gmra.mrb[100].mxu1 %vm9382_vm9, %v10810_v34 }
 0xd5b   : > { %14095 = vmatprep.mubr.msk.f32.mxu1 %vm9382_vm9, %v10811_v57 }
 0xd5e   : > { %14096 = vmatmul.mubr.msk.f32.gmra.mrb[102].mxu1 %vm9382_vm9, %v10812_v59 }
 0xd5f   : > { %14098 = vmatprep.mubr.msk.f32.mxu1 %vm9382_vm9, %v10813_v8 }
 0xd62   : > { %14099 = vmatmul.mubr.msk.f32.gmra.mrb[104].mxu1 %vm9382_vm9, %v10814_v55 }
 0xe2d   : > { %v14094_v3 = vpop.f32.mrb[100].mxu1 }
 0xe2e   : > { %v9913_v26 = vadd.f32 %v14094_v3, %v9890_v53  ;;  %v9841_v62 = vpop.f32.mrb[101].mxu1 }
 0xe2f   : > { %v9912_v36 = vadd.f32 %v9885_v18, %v9841_v62 }
 0xe30   : > { %15301 = vtanh.f32 %v9913_v26 }
 0xe31   : > { %15303 = vtanh.f32 %v9912_v36  ;;  %v14097_v1 = vpop.f32.mrb[102].mxu1 }
 0xe32   : > { %v9915_v60 = vadd.f32 %v14097_v1, %v9900_v0  ;;  %v9851_v50 = vpop.f32.mrb[103].mxu1 }
 0xe33   : > { %v9914_v9 = vadd.f32 %v9895_v44, %v9851_v50 }
 0xe34   : > { %15305 = vtanh.f32 %v9915_v60 }
 0xe35   : > { %15307 = vtanh.f32 %v9914_v9  ;;  %v14100_v5 = vpop.f32.mrb[104].mxu1 }
 0xe36   : > { %v9917_v6 = vadd.f32 %v14100_v5, %v9910_v56  ;;  %v9861_v2 = vpop.f32.mrb[105].mxu1 }
 0xe37   : > { %v9916_v7 = vadd.f32 %v9905_v61, %v9861_v2 }
 0xe38   : > { %15309 = vtanh.f32 %v9917_v6 }
 0xe39   : > { %15311 = vtanh.f32 %v9916_v7 }
 0xe3a   : > { %v15302_v15 = vpop.eup %15301 }
 0xe3b   : > { %v15304_v11 = vpop.eup %15303  ;;  %9925 = vst.msk [vmem:[%s595_s21 + $0x8] sm:$0xff] %vm609_vm0, %v15302_v15 }
 0xe3c   : > { %9924 = vst.msk [vmem:[%s595_s21] sm:$0xff] %vm609_vm0, %v15304_v11 }
 0xe3e   : > { %v15306_v12 = vpop.eup %15305 }
 0xe3f   : > { %v15308_v13 = vpop.eup %15307  ;;  %9927 = vst.msk [vmem:[%s595_s21 + $0x18] sm:$0xff] %vm609_vm0, %v15306_v12 }
 0xe40   : > { %9926 = vst.msk [vmem:[%s595_s21 + $0x10] sm:$0xff] %vm609_vm0, %v15308_v13 }
 0xe42   : > { %v15310_v14 = vpop.eup %15309 }
 0xe43   : > { %v15312_v22 = vpop.eup %15311  ;;  %9929 = vst.msk [vmem:[%s595_s21 + $0x28] sm:$0xff] %vm609_vm0, %v15310_v14 }
 0xe44   : > { %9928 = vst.msk [vmem:[%s595_s21 + $0x20] sm:$0xff] %vm609_vm0, %v15312_v22 }
 0xe45   : > { %15326 = shalt.err (!%p15323_p3)
}
 0xe46   : > { %s15327_s28 = scalar_lea.hbm %s18556_s29, 768  ;;  %s15331_s23 = scalar_lea.hbm %s18624_s19, 1536 }
 0xe47   : > { %p15328_p4 = scmp.ne.s32.totalorder %s18556_s29, %s15327_s28  ;;  %p15332_p9 = scmp.lt.u32.totalorder %s18556_s29, %s18624_s19 }
 0xe48   : > { %p15333_p10 = scmp.lt.u32.totalorder %s15331_s23, %s15327_s28  ;;  %p15335_p12 = scmp.lt.u32.totalorder %s15327_s28, %s18556_s29 }
 0xe49   : > { %p15329_p7 = pnand %p15328_p4, %p15520_p5 }
 0xe4a   : > { %p15334_p11 = por %p15333_p10, %p15332_p9 }
 0xe4b   : > { %p15330_p8 = pneg %p15329_p7 }
 0xe4c   : > { %p15336_p13 = por %p15335_p12, %p15334_p11 }
 0xe4e   : > { %p15337_p0 = pnand %p15336_p13, %p15330_p8 }
 0xe50   : > { %15340 = shalt.err (!%p15337_p0)
}
 0xe51   : > { %s15380_s24 = smov 128   ;;  %s15381_s25 = smov 8  }
 0xe52   : > { %15256 = dma.vmem_to_hbm [thread:$0]  (%p15520_p5), %s18558_s20, 768, %s18556_s29, %s18564_s1, %s15380_s24, %s15380_s24, %s15381_s25  }
 0xe53 PF: > { %s18656_s21 = sld [smem:[#allocation7_spill]]  ;;  %s18657_s2 = sld [smem:[#allocation5_spill]] }
 0xe59   : > { %p15262_p1 = scmp.ge.s32.totalorder %s18656_s21, 2  ;;  %s9959_s0 = sand.u32 1, %s18657_s2  }
 0xe5a   : > { %s9960_s28 = scalar_lea.sflag [#allocation3], %s9959_s0 }
 0xe5b   : > { %p15259_p2 = pnand %p15262_p1, %p15524_p6 }
 0xe5d   : > { %15358 = dma.done.wait (!%p15259_p2), %s9960_s28, 768  }
 0xe5e   : > { %15360 = vsyncadd (!%p15259_p2), %s9960_s28, 4294966528  ;;  %s18659_s21 = sld [smem:[#allocation8_spill]]  ;;  %s18660_s23 = sld [smem:[#allocation6_spill]] }
 0xe5f   : > { %s18661_s20 = sld [smem:[#allocation9_spill]]  ;;  %s18662_s0 = smov %s15367_s30 }
 0xe64   : > { %p29_p3 = scmp.ge.s32.totalorder %s18659_s21, 4   ;;  %s18663_s30 = smov %s18660_s23 }
 0xe66   :  { %31 = sbr.rel (!%p29_p3) target bundleno = 9 (0x9), region = 173 }
 0xe6d   :  { %9965 = vsyncpa [#allocation3], 1 }
 0xe6e   :  { %9967 = vsyncpa [#allocation3 + $0x1], 1 }

</bundles_post_ra>
